<compile_context>
chip_gen: v7x
topology: tpu7x:2x2x1
jax: 0.10.0
libtpu: 0.0.40
codegen_flags: <defaults>
</compile_context>

<pallas_src>
import math
import functools

import jax
import jax.numpy as jnp
from jax.experimental import pallas as pl
from jax.experimental.pallas import tpu as pltpu

D_MODEL = 32
N_HEAD = 4
L_BLOCKS = 2
FF_MULT = 4
TANH_CLIP = 10.0


# ------------------------------ in-kernel helpers ------------------------------

def _layernorm(x, g, b):
    mu = jnp.mean(x, axis=-1, keepdims=True)
    xc = x - mu
    var = jnp.mean(xc * xc, axis=-1, keepdims=True)
    return xc * jax.lax.rsqrt(var + 1e-5) * g + b


def _mha(h, wqkv, bqkv, wo, bo, n_head):
    """Multi-head self-attention on one sequence h: (S, D), fused QKV matmul."""
    S, D = h.shape
    dh = D // n_head
    scale = 1.0 / math.sqrt(dh)
    qkv = jnp.dot(h, wqkv, preferred_element_type=jnp.float32) + bqkv    # (S, 3D)
    out = None
    for hd in range(n_head):                                             # static loop
        q = qkv[:, hd * dh:(hd + 1) * dh]
        k = qkv[:, D + hd * dh:D + (hd + 1) * dh]
        v = qkv[:, 2 * D + hd * dh:2 * D + (hd + 1) * dh]
        s = jnp.dot(q, k.T, preferred_element_type=jnp.float32) * scale  # (S, S)
        s = s - jnp.max(s, axis=-1, keepdims=True)
        p = jnp.exp(s)
        p = p * pl.reciprocal(jnp.sum(p, axis=-1, keepdims=True), approx=True)
        hv = jnp.dot(p, v, preferred_element_type=jnp.float32)           # (S, dh)
        # concat(heads) @ Wo == sum_h head_h @ Wo[h*dh:(h+1)*dh, :]  (no concat needed)
        contrib = jnp.dot(hv, wo[hd * dh:(hd + 1) * dh, :],
                          preferred_element_type=jnp.float32)
        out = contrib if out is None else out + contrib
    return out + bo


# ------------------------------- fused DGTA kernel ------------------------------

def _dgta_kernel(
        # scalar-prefetch operands (SMEM)
        t_idx_ref, cur_ref,
        # VMEM inputs
        coords_ref, mask_ref, time_emb_ref, pe_ref,
        coord_W_ref, coord_b_ref,
        Wqkv_ref, bqkv_ref, Wo_ref, bo_ref, ln_g_ref, ln_b_ref,
        Wff1_ref, bff1_ref, Wff2_ref, bff2_ref,
        dyn_Wc_ref, dyn_bc_ref, dyn_lng_ref, dyn_lnb_ref,
        dec_Wq_ref, dec_bq_ref, dec_Wk_ref, dec_bk_ref,
        # output
        logits_ref,
        *, n_node, T, d_model, n_head, n_blocks, clip):
    b = pl.program_id(0)
    N = n_node
    D = d_model
    S = N * T

    # ------------------------------- embedding -------------------------------
    coords = coords_ref[0]                                               # (N, 2)
    ce = jnp.dot(coords, coord_W_ref[...],
                 preferred_element_type=jnp.float32) + coord_b_ref[...]  # (N, D/2)
    t_val = t_idx_ref[b]
    n_times = time_emb_ref.shape[0]
    t_sel = (jax.lax.broadcasted_iota(jnp.int32, (1, n_times), 1) == t_val
             ).astype(jnp.float32)                                       # (1, n_times)
    te = jnp.dot(t_sel, time_emb_ref[...],
                 preferred_element_type=jnp.float32)                     # (1, D/2)
    te = jnp.broadcast_to(te, (N, D // 2))
    E = jnp.concatenate([ce, te], axis=-1)                               # (N, D)
    h0 = E + pe_ref[...]                                                 # (N, D)
    H = jnp.concatenate([h0] * T, axis=0)                                # (S, D) == repeat(1,T,1)

    # -------------------------- dual attention blocks -------------------------
    for l in range(n_blocks):                                            # static loop
        a1 = _mha(H, Wqkv_ref[2 * l], bqkv_ref[2 * l],
                  Wo_ref[2 * l], bo_ref[2 * l], n_head)
        H = _layernorm(H + a1, ln_g_ref[3 * l], ln_b_ref[3 * l])
        # TODO(synk): DualAttentionBlock source unavailable; the second ("temporal")
        # attention is applied over the same full sequence instead of a split time axis.
        a2 = _mha(H, Wqkv_ref[2 * l + 1], bqkv_ref[2 * l + 1],
                  Wo_ref[2 * l + 1], bo_ref[2 * l + 1], n_head)
        H = _layernorm(H + a2, ln_g_ref[3 * l + 1], ln_b_ref[3 * l + 1])
        f = jnp.dot(H, Wff1_ref[l], preferred_element_type=jnp.float32) + bff1_ref[l]
        f = jnp.maximum(f, 0.0)
        f = jnp.dot(f, Wff2_ref[l], preferred_element_type=jnp.float32) + bff2_ref[l]
        H = _layernorm(H + f, ln_g_ref[3 * l + 2], ln_b_ref[3 * l + 2])

    # ------------------------------ dynamic encoder ---------------------------
    # TODO(synk): DynamicEncoder source unavailable; current-node context projection
    # + residual + LayerNorm is used as the dynamic-state update (t_idx unused here).
    cur = cur_ref[b]
    sel = (jax.lax.broadcasted_iota(jnp.int32, (1, S), 1) == cur
           ).astype(jnp.float32)                                         # (1, S)
    h_cur = jnp.dot(sel, H, preferred_element_type=jnp.float32)          # (1, D)
    ctx = jnp.dot(h_cur, dyn_Wc_ref[...],
                  preferred_element_type=jnp.float32) + dyn_bc_ref[...]  # (1, D)
    Hd = _layernorm(H + ctx, dyn_lng_ref[...], dyn_lnb_ref[...])         # (S, D)

    # ------------------------------ pointer decoder ---------------------------
    # TODO(synk): PointerDecoder source unavailable; masked tanh-clipped pointer
    # scores over the N nodes (time-averaged embeddings) are produced as logits.
    Hn = Hd[0:N, :]
    for t in range(1, T):                                                # static loop
        Hn = Hn + Hd[t * N:(t + 1) * N, :]
    Hn = Hn * (1.0 / T)                                                  # (N, D)
    g = jnp.mean(Hn, axis=0, keepdims=True)                              # (1, D)
    q = jnp.dot(g, dec_Wq_ref[...],
                preferred_element_type=jnp.float32) + dec_bq_ref[...]    # (1, D)
    k = jnp.dot(Hn, dec_Wk_ref[...],
                preferred_element_type=jnp.float32) + dec_bk_ref[...]    # (N, D)
    u = jnp.dot(q, k.T, preferred_element_type=jnp.float32) * (1.0 / math.sqrt(D))
    logit = clip * jnp.tanh(u)                                           # (1, N)
    logits_ref[0] = jnp.where(mask_ref[0] > 0.0, -1e9, logit)


# --------------------------------- wrapper / glue --------------------------------

def sinusoidal_pe(n_pos, d_model):
    pos = jnp.arange(n_pos, dtype=jnp.float32)[:, None]
    i = jnp.arange(0, d_model, 2, dtype=jnp.float32)[None, :]
    angle = pos / jnp.power(10000.0, i / d_model)
    # interleave sin (even cols) / cos (odd cols) without strided scatter
    return jnp.stack([jnp.sin(angle), jnp.cos(angle)], axis=-1).reshape(n_pos, d_model)


@functools.partial(jax.jit, static_argnames=("T",))
def dgta_forward(params, coords, t_idx, visited_mask, current_idx, *, T):
    B, N, _ = coords.shape
    d_model = D_MODEL
    n_head = N_HEAD
    n_blocks = params['Wff1'].shape[0]

    coords = coords.astype(jnp.float32)
    mask = visited_mask.astype(jnp.float32).reshape(B, 1, N)
    pe = sinusoidal_pe(N, d_model)

    kernel = functools.partial(
        _dgta_kernel, n_node=N, T=T, d_model=d_model, n_head=n_head,
        n_blocks=n_blocks, clip=TANH_CLIP)

    def batched3(b, t_ref, c_ref):
        return (b, 0, 0)

    def full_spec(x):
        if x.ndim == 2:
            return pl.BlockSpec(x.shape, lambda b, t_ref, c_ref: (0, 0))
        return pl.BlockSpec(x.shape, lambda b, t_ref, c_ref: (0, 0, 0))

    weights = [
        params['time_emb'], pe,
        params['coord_W'], params['coord_b'],
        params['Wqkv'], params['bqkv'], params['Wo'], params['bo'],
        params['ln_g'], params['ln_b'],
        params['Wff1'], params['bff1'], params['Wff2'], params['bff2'],
        params['dyn_Wc'], params['dyn_bc'], params['dyn_ln_g'], params['dyn_ln_b'],
        params['dec_Wq'], params['dec_bq'], params['dec_Wk'], params['dec_bk'],
    ]

    in_specs = [pl.BlockSpec((1, N, 2), batched3),      # coords (per batch)
                pl.BlockSpec((1, 1, N), batched3)]      # visited mask (per batch)
    in_specs += [full_spec(w) for w in weights]         # weights: whole array in VMEM

    grid_spec = pltpu.PrefetchScalarGridSpec(
        num_scalar_prefetch=2,                          # t_idx, current_idx -> SMEM
        grid=(B,),
        in_specs=in_specs,
        out_specs=pl.BlockSpec((1, 1, N), batched3),
    )

    out = pl.pallas_call(
        kernel,
        out_shape=jax.ShapeDtypeStruct((B, 1, N), jnp.float32),
        grid_spec=grid_spec,
        compiler_params=pltpu.CompilerParams(
            dimension_semantics=("parallel",)),         # v7x: split batch over 2 TCs
    )(t_idx.reshape(B).astype(jnp.int32),
      current_idx.reshape(B).astype(jnp.int32),
      coords, mask, *weights)

    return out[:, 0, :]


# --------------------------------- parameter init --------------------------------

def _init_linear(key, fan_in, fan_out):
    kw, kb = jax.random.split(key)
    lim = 1.0 / math.sqrt(fan_in)
    w = jax.random.uniform(kw, (fan_in, fan_out), jnp.float32, -lim, lim)
    b = jax.random.uniform(kb, (fan_out,), jnp.float32, -lim, lim)
    return w, b


def init_params(key, d_model=D_MODEL, n_blocks=L_BLOCKS):
    keys = jax.random.split(key, 5 + n_blocks)
    p = {}
    cw, cb = _init_linear(keys[0], 2, d_model // 2)
    p['coord_W'] = cw
    p['coord_b'] = cb.reshape(1, d_model // 2)
    p['time_emb'] = jax.random.normal(keys[1], (24, d_model // 2), jnp.float32)

    Wqkv, bqkv, Wo, bo = [], [], [], []
    ln_g, ln_b = [], []
    Wff1, bff1, Wff2, bff2 = [], [], [], []
    for l in range(n_blocks):
        bkeys = jax.random.split(keys[2 + l], 10)
        for a in range(2):                                   # two attention sub-layers
            wq, bq_ = _init_linear(bkeys[4 * a + 0], d_model, d_model)
            wk, bk_ = _init_linear(bkeys[4 * a + 1], d_model, d_model)
            wv, bv_ = _init_linear(bkeys[4 * a + 2], d_model, d_model)
            wo_, bo_ = _init_linear(bkeys[4 * a + 3], d_model, d_model)
            Wqkv.append(jnp.concatenate([wq, wk, wv], axis=1))            # (D, 3D) fused
            bqkv.append(jnp.concatenate([bq_, bk_, bv_]).reshape(1, 3 * d_model))
            Wo.append(wo_)
            bo.append(bo_.reshape(1, d_model))
        w1, b1 = _init_linear(bkeys[8], d_model, FF_MULT * d_model)
        w2, b2 = _init_linear(bkeys[9], FF_MULT * d_model, d_model)
        Wff1.append(w1); bff1.append(b1.reshape(1, FF_MULT * d_model))
        Wff2.append(w2); bff2.append(b2.reshape(1, d_model))
        for _ in range(3):
            ln_g.append(jnp.ones((1, d_model), jnp.float32))
            ln_b.append(jnp.zeros((1, d_model), jnp.float32))

    p['Wqkv'] = jnp.stack(Wqkv); p['bqkv'] = jnp.stack(bqkv)
    p['Wo'] = jnp.stack(Wo);     p['bo'] = jnp.stack(bo)
    p['ln_g'] = jnp.stack(ln_g); p['ln_b'] = jnp.stack(ln_b)
    p['Wff1'] = jnp.stack(Wff1); p['bff1'] = jnp.stack(bff1)
    p['Wff2'] = jnp.stack(Wff2); p['bff2'] = jnp.stack(bff2)

    wc, bc = _init_linear(keys[2 + n_blocks], d_model, d_model)
    p['dyn_Wc'] = wc; p['dyn_bc'] = bc.reshape(1, d_model)
    p['dyn_ln_g'] = jnp.ones((1, d_model), jnp.float32)
    p['dyn_ln_b'] = jnp.zeros((1, d_model), jnp.float32)
    wq, bq_ = _init_linear(keys[3 + n_blocks], d_model, d_model)
    p['dec_Wq'] = wq; p['dec_bq'] = bq_.reshape(1, d_model)
    wk, bk_ = _init_linear(keys[4 + n_blocks], d_model, d_model)
    p['dec_Wk'] = wk; p['dec_bk'] = bk_.reshape(1, d_model)
    return p


if __name__ == "__main__":
    key = jax.random.PRNGKey(0)
    k_coords, k_mask, k_cur = jax.random.split(key, 3)

    B, N = 2, 8
    coords = jax.random.uniform(k_coords, (B, N, 2), jnp.float32)
    t_idx = jnp.array([[1], [2]], dtype=jnp.int32)              # -> T = 3
    visited_mask = jax.random.bernoulli(k_mask, 0.3, (B, N))
    current_idx = jax.random.randint(k_cur, (B,), 0, N)

    params = init_params(jax.random.PRNGKey(42))

    # T = t_idx.max().item() + 1 in the reference: computed once on the host, passed
    # as a static argument so the whole forward stays under one jit (no mid-forward sync).
    T = int(t_idx.max()) + 1

    logits = dgta_forward(params, coords, t_idx, visited_mask, current_idx, T=T)
    logits = jax.block_until_ready(logits)
    assert logits.shape == (B, N) and logits.dtype == jnp.float32
    assert bool(jnp.all(jnp.isfinite(logits)))
    print("KERNEL_OK")
</pallas_src>

<mosaic_0001>
module attributes {stable_mosaic.version = 11 : i64} {
  func.func @_dgta_kernel(%arg0: i32, %arg1: memref<2xi32, #tpu.memory_space<smem>>, %arg2: memref<2xi32, #tpu.memory_space<smem>>, %arg3: memref<1x8x2xf32, #tpu.memory_space<vmem>>, %arg4: memref<1x1x8xf32, #tpu.memory_space<vmem>>, %arg5: memref<24x16xf32, #tpu.memory_space<vmem>>, %arg6: memref<8x32xf32, #tpu.memory_space<vmem>>, %arg7: memref<2x16xf32, #tpu.memory_space<vmem>>, %arg8: memref<1x16xf32, #tpu.memory_space<vmem>>, %arg9: memref<4x32x96xf32, #tpu.memory_space<vmem>>, %arg10: memref<4x1x96xf32, #tpu.memory_space<vmem>>, %arg11: memref<4x32x32xf32, #tpu.memory_space<vmem>>, %arg12: memref<4x1x32xf32, #tpu.memory_space<vmem>>, %arg13: memref<6x1x32xf32, #tpu.memory_space<vmem>>, %arg14: memref<6x1x32xf32, #tpu.memory_space<vmem>>, %arg15: memref<2x32x128xf32, #tpu.memory_space<vmem>>, %arg16: memref<2x1x128xf32, #tpu.memory_space<vmem>>, %arg17: memref<2x128x32xf32, #tpu.memory_space<vmem>>, %arg18: memref<2x1x32xf32, #tpu.memory_space<vmem>>, %arg19: memref<32x32xf32, #tpu.memory_space<vmem>>, %arg20: memref<1x32xf32, #tpu.memory_space<vmem>>, %arg21: memref<1x32xf32, #tpu.memory_space<vmem>>, %arg22: memref<1x32xf32, #tpu.memory_space<vmem>>, %arg23: memref<32x32xf32, #tpu.memory_space<vmem>>, %arg24: memref<1x32xf32, #tpu.memory_space<vmem>>, %arg25: memref<32x32xf32, #tpu.memory_space<vmem>>, %arg26: memref<1x32xf32, #tpu.memory_space<vmem>>, %arg27: memref<1x1x8xf32, #tpu.memory_space<vmem>>) attributes {dimension_semantics = [#tpu.dimension_semantics<parallel>], iteration_bounds = array<i64: 2>, scalar_prefetch = 2 : i64, scratch_operands = 0 : i64, tpu.core_type = #tpu.core_type<tc>, window_params = [{transform_indices = @transform_0, window_bounds = array<i64: 1, 8, 2>}, {transform_indices = @transform_1, window_bounds = array<i64: 1, 1, 8>}, {pipeline_mode = #tpu.pipeline_mode<synchronous>, transform_indices = @transform_2, window_bounds = array<i64: 24, 16>}, {pipeline_mode = #tpu.pipeline_mode<synchronous>, transform_indices = @transform_3, window_bounds = array<i64: 8, 32>}, {pipeline_mode = #tpu.pipeline_mode<synchronous>, transform_indices = @transform_4, window_bounds = array<i64: 2, 16>}, {pipeline_mode = #tpu.pipeline_mode<synchronous>, transform_indices = @transform_5, window_bounds = array<i64: 1, 16>}, {pipeline_mode = #tpu.pipeline_mode<synchronous>, transform_indices = @transform_6, window_bounds = array<i64: 4, 32, 96>}, {pipeline_mode = #tpu.pipeline_mode<synchronous>, transform_indices = @transform_7, window_bounds = array<i64: 4, 1, 96>}, {pipeline_mode = #tpu.pipeline_mode<synchronous>, transform_indices = @transform_8, window_bounds = array<i64: 4, 32, 32>}, {pipeline_mode = #tpu.pipeline_mode<synchronous>, transform_indices = @transform_9, window_bounds = array<i64: 4, 1, 32>}, {pipeline_mode = #tpu.pipeline_mode<synchronous>, transform_indices = @transform_10, window_bounds = array<i64: 6, 1, 32>}, {pipeline_mode = #tpu.pipeline_mode<synchronous>, transform_indices = @transform_11, window_bounds = array<i64: 6, 1, 32>}, {pipeline_mode = #tpu.pipeline_mode<synchronous>, transform_indices = @transform_12, window_bounds = array<i64: 2, 32, 128>}, {pipeline_mode = #tpu.pipeline_mode<synchronous>, transform_indices = @transform_13, window_bounds = array<i64: 2, 1, 128>}, {pipeline_mode = #tpu.pipeline_mode<synchronous>, transform_indices = @transform_14, window_bounds = array<i64: 2, 128, 32>}, {pipeline_mode = #tpu.pipeline_mode<synchronous>, transform_indices = @transform_15, window_bounds = array<i64: 2, 1, 32>}, {pipeline_mode = #tpu.pipeline_mode<synchronous>, transform_indices = @transform_16, window_bounds = array<i64: 32, 32>}, {pipeline_mode = #tpu.pipeline_mode<synchronous>, transform_indices = @transform_17, window_bounds = array<i64: 1, 32>}, {pipeline_mode = #tpu.pipeline_mode<synchronous>, transform_indices = @transform_18, window_bounds = array<i64: 1, 32>}, {pipeline_mode = #tpu.pipeline_mode<synchronous>, transform_indices = @transform_19, window_bounds = array<i64: 1, 32>}, {pipeline_mode = #tpu.pipeline_mode<synchronous>, transform_indices = @transform_20, window_bounds = array<i64: 32, 32>}, {pipeline_mode = #tpu.pipeline_mode<synchronous>, transform_indices = @transform_21, window_bounds = array<i64: 1, 32>}, {pipeline_mode = #tpu.pipeline_mode<synchronous>, transform_indices = @transform_22, window_bounds = array<i64: 32, 32>}, {pipeline_mode = #tpu.pipeline_mode<synchronous>, transform_indices = @transform_23, window_bounds = array<i64: 1, 32>}, {transform_indices = @transform_24, window_bounds = array<i64: 1, 1, 8>}]} {
    %c0 = arith.constant 0 : index
    %c0_0 = arith.constant 0 : index
    %c0_1 = arith.constant 0 : index
    %0 = vector.load %arg3[%c0, %c0_0, %c0_1] : memref<1x8x2xf32, #tpu.memory_space<vmem>>, vector<1x8x2xf32>
    %1 = vector.shape_cast %0 : vector<1x8x2xf32> to vector<8x2xf32>
    %c0_2 = arith.constant 0 : index
    %c0_3 = arith.constant 0 : index
    %2 = vector.load %arg7[%c0_2, %c0_3] : memref<2x16xf32, #tpu.memory_space<vmem>>, vector<2x16xf32>
    %cst = arith.constant dense<0.000000e+00> : vector<8x16xf32>
    %3 = tpu.matmul %1, %2, %cst {dimension_numbers = #tpu.dot_dimension_numbers<[1], [0], [0], [1], [0, 0, 1, 1], [], []>} : vector<8x2xf32>, vector<2x16xf32>, vector<8x16xf32> -> vector<8x16xf32>
    %c0_4 = arith.constant 0 : index
    %c0_5 = arith.constant 0 : index
    %4 = vector.load %arg8[%c0_4, %c0_5] : memref<1x16xf32, #tpu.memory_space<vmem>>, vector<1x16xf32>
    %5 = vector.broadcast %4 : vector<1x16xf32> to vector<8x16xf32>
    %6 = arith.addf %3, %5 : vector<8x16xf32>
    %7 = arith.index_cast %arg0 : i32 to index
    %8 = memref.load %arg1[%7] : memref<2xi32, #tpu.memory_space<smem>>
    %9 = tpu.iota {dimensions = array<i32: 1>} : vector<1x24xi32>
    %10 = vector.broadcast %8 : i32 to vector<1x24xi32>
    %11 = arith.cmpi eq, %9, %10 : vector<1x24xi32>
    %12 = arith.extui %11 : vector<1x24xi1> to vector<1x24xi32>
    %13 = arith.sitofp %12 : vector<1x24xi32> to vector<1x24xf32>
    %c0_6 = arith.constant 0 : index
    %c0_7 = arith.constant 0 : index
    %14 = vector.load %arg5[%c0_6, %c0_7] : memref<24x16xf32, #tpu.memory_space<vmem>>, vector<24x16xf32>
    %cst_8 = arith.constant dense<0.000000e+00> : vector<1x16xf32>
    %15 = tpu.matmul %13, %14, %cst_8 {dimension_numbers = #tpu.dot_dimension_numbers<[1], [0], [0], [1], [0, 0, 1, 1], [], []>} : vector<1x24xf32>, vector<24x16xf32>, vector<1x16xf32> -> vector<1x16xf32>
    %16 = vector.shape_cast %15 : vector<1x16xf32> to vector<1x16xf32>
    %17 = vector.broadcast %16 : vector<1x16xf32> to vector<8x16xf32>
    %18 = tpu.concatenate %6, %17 in 1 : vector<8x16xf32>, vector<8x16xf32> -> vector<8x32xf32>
    %c0_9 = arith.constant 0 : index
    %c0_10 = arith.constant 0 : index
    %19 = vector.load %arg6[%c0_9, %c0_10] : memref<8x32xf32, #tpu.memory_space<vmem>>, vector<8x32xf32>
    %20 = arith.addf %18, %19 : vector<8x32xf32>
    %21 = tpu.concatenate %20, %20, %20 in 0 : vector<8x32xf32>, vector<8x32xf32>, vector<8x32xf32> -> vector<24x32xf32>
    %c0_11 = arith.constant 0 : index
    %c0_12 = arith.constant 0 : index
    %c0_13 = arith.constant 0 : index
    %22 = vector.load %arg9[%c0_11, %c0_12, %c0_13] : memref<4x32x96xf32, #tpu.memory_space<vmem>>, vector<1x32x96xf32>
    %23 = vector.shape_cast %22 : vector<1x32x96xf32> to vector<32x96xf32>
    %c0_14 = arith.constant 0 : index
    %c0_15 = arith.constant 0 : index
    %c0_16 = arith.constant 0 : index
    %24 = vector.load %arg10[%c0_14, %c0_15, %c0_16] : memref<4x1x96xf32, #tpu.memory_space<vmem>>, vector<1x1x96xf32>
    %25 = vector.shape_cast %24 : vector<1x1x96xf32> to vector<1x96xf32>
    %c0_17 = arith.constant 0 : index
    %c0_18 = arith.constant 0 : index
    %c0_19 = arith.constant 0 : index
    %26 = vector.load %arg11[%c0_17, %c0_18, %c0_19] : memref<4x32x32xf32, #tpu.memory_space<vmem>>, vector<1x32x32xf32>
    %27 = vector.shape_cast %26 : vector<1x32x32xf32> to vector<32x32xf32>
    %c0_20 = arith.constant 0 : index
    %c0_21 = arith.constant 0 : index
    %c0_22 = arith.constant 0 : index
    %28 = vector.load %arg12[%c0_20, %c0_21, %c0_22] : memref<4x1x32xf32, #tpu.memory_space<vmem>>, vector<1x1x32xf32>
    %29 = vector.shape_cast %28 : vector<1x1x32xf32> to vector<1x32xf32>
    %cst_23 = arith.constant dense<0.000000e+00> : vector<24x96xf32>
    %30 = tpu.matmul %21, %23, %cst_23 {dimension_numbers = #tpu.dot_dimension_numbers<[1], [0], [0], [1], [0, 0, 1, 1], [], []>} : vector<24x32xf32>, vector<32x96xf32>, vector<24x96xf32> -> vector<24x96xf32>
    %31 = vector.broadcast %25 : vector<1x96xf32> to vector<24x96xf32>
    %32 = arith.addf %30, %31 : vector<24x96xf32>
    %33 = vector.extract_strided_slice %32 {offsets = [0, 0], sizes = [24, 8], strides = [1, 1]} : vector<24x96xf32> to vector<24x8xf32>
    %34 = vector.extract_strided_slice %32 {offsets = [0, 32], sizes = [24, 8], strides = [1, 1]} : vector<24x96xf32> to vector<24x8xf32>
    %35 = vector.extract_strided_slice %32 {offsets = [0, 64], sizes = [24, 8], strides = [1, 1]} : vector<24x96xf32> to vector<24x8xf32>
    %36 = tpu.transpose %34, [1, 0] : vector<24x8xf32> -> vector<8x24xf32>
    %cst_24 = arith.constant dense<0.000000e+00> : vector<24x24xf32>
    %37 = tpu.matmul %33, %36, %cst_24 {dimension_numbers = #tpu.dot_dimension_numbers<[1], [0], [0], [1], [0, 0, 1, 1], [], []>} : vector<24x8xf32>, vector<8x24xf32>, vector<24x24xf32> -> vector<24x24xf32>
    %cst_25 = arith.constant 0.353553385 : f32
    %38 = vector.broadcast %cst_25 : f32 to vector<24x24xf32>
    %39 = arith.mulf %37, %38 : vector<24x24xf32>
    %cst_26 = arith.constant dense<0xFF800000> : vector<24xf32>
    %40 = vector.multi_reduction <maximumf>, %39, %cst_26 [1] : vector<24x24xf32> to vector<24xf32>
    %41 = vector.shape_cast %40 : vector<24xf32> to vector<24x1xf32>
    %42 = vector.broadcast %41 : vector<24x1xf32> to vector<24x24xf32>
    %43 = arith.subf %39, %42 : vector<24x24xf32>
    %44 = math.exp %43 : vector<24x24xf32>
    %cst_27 = arith.constant dense<0.000000e+00> : vector<24xf32>
    %45 = vector.multi_reduction <add>, %44, %cst_27 [1] : vector<24x24xf32> to vector<24xf32>
    %46 = vector.shape_cast %45 : vector<24xf32> to vector<24x1xf32>
    %47 = tpu.reciprocal %46 {approx = true} : vector<24x1xf32> -> vector<24x1xf32>
    %48 = vector.broadcast %47 : vector<24x1xf32> to vector<24x24xf32>
    %49 = arith.mulf %44, %48 : vector<24x24xf32>
    %cst_28 = arith.constant dense<0.000000e+00> : vector<24x8xf32>
    %50 = tpu.matmul %49, %35, %cst_28 {dimension_numbers = #tpu.dot_dimension_numbers<[1], [0], [0], [1], [0, 0, 1, 1], [], []>} : vector<24x24xf32>, vector<24x8xf32>, vector<24x8xf32> -> vector<24x8xf32>
    %51 = vector.extract_strided_slice %27 {offsets = [0, 0], sizes = [8, 32], strides = [1, 1]} : vector<32x32xf32> to vector<8x32xf32>
    %cst_29 = arith.constant dense<0.000000e+00> : vector<24x32xf32>
    %52 = tpu.matmul %50, %51, %cst_29 {dimension_numbers = #tpu.dot_dimension_numbers<[1], [0], [0], [1], [0, 0, 1, 1], [], []>} : vector<24x8xf32>, vector<8x32xf32>, vector<24x32xf32> -> vector<24x32xf32>
    %53 = vector.extract_strided_slice %32 {offsets = [0, 8], sizes = [24, 8], strides = [1, 1]} : vector<24x96xf32> to vector<24x8xf32>
    %54 = vector.extract_strided_slice %32 {offsets = [0, 40], sizes = [24, 8], strides = [1, 1]} : vector<24x96xf32> to vector<24x8xf32>
    %55 = vector.extract_strided_slice %32 {offsets = [0, 72], sizes = [24, 8], strides = [1, 1]} : vector<24x96xf32> to vector<24x8xf32>
    %56 = tpu.transpose %54, [1, 0] : vector<24x8xf32> -> vector<8x24xf32>
    %cst_30 = arith.constant dense<0.000000e+00> : vector<24x24xf32>
    %57 = tpu.matmul %53, %56, %cst_30 {dimension_numbers = #tpu.dot_dimension_numbers<[1], [0], [0], [1], [0, 0, 1, 1], [], []>} : vector<24x8xf32>, vector<8x24xf32>, vector<24x24xf32> -> vector<24x24xf32>
    %cst_31 = arith.constant 0.353553385 : f32
    %58 = vector.broadcast %cst_31 : f32 to vector<24x24xf32>
    %59 = arith.mulf %57, %58 : vector<24x24xf32>
    %cst_32 = arith.constant dense<0xFF800000> : vector<24xf32>
    %60 = vector.multi_reduction <maximumf>, %59, %cst_32 [1] : vector<24x24xf32> to vector<24xf32>
    %61 = vector.shape_cast %60 : vector<24xf32> to vector<24x1xf32>
    %62 = vector.broadcast %61 : vector<24x1xf32> to vector<24x24xf32>
    %63 = arith.subf %59, %62 : vector<24x24xf32>
    %64 = math.exp %63 : vector<24x24xf32>
    %cst_33 = arith.constant dense<0.000000e+00> : vector<24xf32>
    %65 = vector.multi_reduction <add>, %64, %cst_33 [1] : vector<24x24xf32> to vector<24xf32>
    %66 = vector.shape_cast %65 : vector<24xf32> to vector<24x1xf32>
    %67 = tpu.reciprocal %66 {approx = true} : vector<24x1xf32> -> vector<24x1xf32>
    %68 = vector.broadcast %67 : vector<24x1xf32> to vector<24x24xf32>
    %69 = arith.mulf %64, %68 : vector<24x24xf32>
    %cst_34 = arith.constant dense<0.000000e+00> : vector<24x8xf32>
    %70 = tpu.matmul %69, %55, %cst_34 {dimension_numbers = #tpu.dot_dimension_numbers<[1], [0], [0], [1], [0, 0, 1, 1], [], []>} : vector<24x24xf32>, vector<24x8xf32>, vector<24x8xf32> -> vector<24x8xf32>
    %71 = vector.extract_strided_slice %27 {offsets = [8, 0], sizes = [8, 32], strides = [1, 1]} : vector<32x32xf32> to vector<8x32xf32>
    %cst_35 = arith.constant dense<0.000000e+00> : vector<24x32xf32>
    %72 = tpu.matmul %70, %71, %cst_35 {dimension_numbers = #tpu.dot_dimension_numbers<[1], [0], [0], [1], [0, 0, 1, 1], [], []>} : vector<24x8xf32>, vector<8x32xf32>, vector<24x32xf32> -> vector<24x32xf32>
    %73 = arith.addf %52, %72 : vector<24x32xf32>
    %74 = vector.extract_strided_slice %32 {offsets = [0, 16], sizes = [24, 8], strides = [1, 1]} : vector<24x96xf32> to vector<24x8xf32>
    %75 = vector.extract_strided_slice %32 {offsets = [0, 48], sizes = [24, 8], strides = [1, 1]} : vector<24x96xf32> to vector<24x8xf32>
    %76 = vector.extract_strided_slice %32 {offsets = [0, 80], sizes = [24, 8], strides = [1, 1]} : vector<24x96xf32> to vector<24x8xf32>
    %77 = tpu.transpose %75, [1, 0] : vector<24x8xf32> -> vector<8x24xf32>
    %cst_36 = arith.constant dense<0.000000e+00> : vector<24x24xf32>
    %78 = tpu.matmul %74, %77, %cst_36 {dimension_numbers = #tpu.dot_dimension_numbers<[1], [0], [0], [1], [0, 0, 1, 1], [], []>} : vector<24x8xf32>, vector<8x24xf32>, vector<24x24xf32> -> vector<24x24xf32>
    %cst_37 = arith.constant 0.353553385 : f32
    %79 = vector.broadcast %cst_37 : f32 to vector<24x24xf32>
    %80 = arith.mulf %78, %79 : vector<24x24xf32>
    %cst_38 = arith.constant dense<0xFF800000> : vector<24xf32>
    %81 = vector.multi_reduction <maximumf>, %80, %cst_38 [1] : vector<24x24xf32> to vector<24xf32>
    %82 = vector.shape_cast %81 : vector<24xf32> to vector<24x1xf32>
    %83 = vector.broadcast %82 : vector<24x1xf32> to vector<24x24xf32>
    %84 = arith.subf %80, %83 : vector<24x24xf32>
    %85 = math.exp %84 : vector<24x24xf32>
    %cst_39 = arith.constant dense<0.000000e+00> : vector<24xf32>
    %86 = vector.multi_reduction <add>, %85, %cst_39 [1] : vector<24x24xf32> to vector<24xf32>
    %87 = vector.shape_cast %86 : vector<24xf32> to vector<24x1xf32>
    %88 = tpu.reciprocal %87 {approx = true} : vector<24x1xf32> -> vector<24x1xf32>
    %89 = vector.broadcast %88 : vector<24x1xf32> to vector<24x24xf32>
    %90 = arith.mulf %85, %89 : vector<24x24xf32>
    %cst_40 = arith.constant dense<0.000000e+00> : vector<24x8xf32>
    %91 = tpu.matmul %90, %76, %cst_40 {dimension_numbers = #tpu.dot_dimension_numbers<[1], [0], [0], [1], [0, 0, 1, 1], [], []>} : vector<24x24xf32>, vector<24x8xf32>, vector<24x8xf32> -> vector<24x8xf32>
    %92 = vector.extract_strided_slice %27 {offsets = [16, 0], sizes = [8, 32], strides = [1, 1]} : vector<32x32xf32> to vector<8x32xf32>
    %cst_41 = arith.constant dense<0.000000e+00> : vector<24x32xf32>
    %93 = tpu.matmul %91, %92, %cst_41 {dimension_numbers = #tpu.dot_dimension_numbers<[1], [0], [0], [1], [0, 0, 1, 1], [], []>} : vector<24x8xf32>, vector<8x32xf32>, vector<24x32xf32> -> vector<24x32xf32>
    %94 = arith.addf %73, %93 : vector<24x32xf32>
    %95 = vector.extract_strided_slice %32 {offsets = [0, 24], sizes = [24, 8], strides = [1, 1]} : vector<24x96xf32> to vector<24x8xf32>
    %96 = vector.extract_strided_slice %32 {offsets = [0, 56], sizes = [24, 8], strides = [1, 1]} : vector<24x96xf32> to vector<24x8xf32>
    %97 = vector.extract_strided_slice %32 {offsets = [0, 88], sizes = [24, 8], strides = [1, 1]} : vector<24x96xf32> to vector<24x8xf32>
    %98 = tpu.transpose %96, [1, 0] : vector<24x8xf32> -> vector<8x24xf32>
    %cst_42 = arith.constant dense<0.000000e+00> : vector<24x24xf32>
    %99 = tpu.matmul %95, %98, %cst_42 {dimension_numbers = #tpu.dot_dimension_numbers<[1], [0], [0], [1], [0, 0, 1, 1], [], []>} : vector<24x8xf32>, vector<8x24xf32>, vector<24x24xf32> -> vector<24x24xf32>
    %cst_43 = arith.constant 0.353553385 : f32
    %100 = vector.broadcast %cst_43 : f32 to vector<24x24xf32>
    %101 = arith.mulf %99, %100 : vector<24x24xf32>
    %cst_44 = arith.constant dense<0xFF800000> : vector<24xf32>
    %102 = vector.multi_reduction <maximumf>, %101, %cst_44 [1] : vector<24x24xf32> to vector<24xf32>
    %103 = vector.shape_cast %102 : vector<24xf32> to vector<24x1xf32>
    %104 = vector.broadcast %103 : vector<24x1xf32> to vector<24x24xf32>
    %105 = arith.subf %101, %104 : vector<24x24xf32>
    %106 = math.exp %105 : vector<24x24xf32>
    %cst_45 = arith.constant dense<0.000000e+00> : vector<24xf32>
    %107 = vector.multi_reduction <add>, %106, %cst_45 [1] : vector<24x24xf32> to vector<24xf32>
    %108 = vector.shape_cast %107 : vector<24xf32> to vector<24x1xf32>
    %109 = tpu.reciprocal %108 {approx = true} : vector<24x1xf32> -> vector<24x1xf32>
    %110 = vector.broadcast %109 : vector<24x1xf32> to vector<24x24xf32>
    %111 = arith.mulf %106, %110 : vector<24x24xf32>
    %cst_46 = arith.constant dense<0.000000e+00> : vector<24x8xf32>
    %112 = tpu.matmul %111, %97, %cst_46 {dimension_numbers = #tpu.dot_dimension_numbers<[1], [0], [0], [1], [0, 0, 1, 1], [], []>} : vector<24x24xf32>, vector<24x8xf32>, vector<24x8xf32> -> vector<24x8xf32>
    %113 = vector.extract_strided_slice %27 {offsets = [24, 0], sizes = [8, 32], strides = [1, 1]} : vector<32x32xf32> to vector<8x32xf32>
    %cst_47 = arith.constant dense<0.000000e+00> : vector<24x32xf32>
    %114 = tpu.matmul %112, %113, %cst_47 {dimension_numbers = #tpu.dot_dimension_numbers<[1], [0], [0], [1], [0, 0, 1, 1], [], []>} : vector<24x8xf32>, vector<8x32xf32>, vector<24x32xf32> -> vector<24x32xf32>
    %115 = arith.addf %94, %114 : vector<24x32xf32>
    %116 = vector.broadcast %29 : vector<1x32xf32> to vector<24x32xf32>
    %117 = arith.addf %115, %116 : vector<24x32xf32>
    %118 = arith.addf %21, %117 : vector<24x32xf32>
    %c0_48 = arith.constant 0 : index
    %c0_49 = arith.constant 0 : index
    %c0_50 = arith.constant 0 : index
    %119 = vector.load %arg13[%c0_48, %c0_49, %c0_50] : memref<6x1x32xf32, #tpu.memory_space<vmem>>, vector<1x1x32xf32>
    %120 = vector.shape_cast %119 : vector<1x1x32xf32> to vector<1x32xf32>
    %c0_51 = arith.constant 0 : index
    %c0_52 = arith.constant 0 : index
    %c0_53 = arith.constant 0 : index
    %121 = vector.load %arg14[%c0_51, %c0_52, %c0_53] : memref<6x1x32xf32, #tpu.memory_space<vmem>>, vector<1x1x32xf32>
    %122 = vector.shape_cast %121 : vector<1x1x32xf32> to vector<1x32xf32>
    %cst_54 = arith.constant dense<0.000000e+00> : vector<24xf32>
    %123 = vector.multi_reduction <add>, %118, %cst_54 [1] : vector<24x32xf32> to vector<24xf32>
    %124 = vector.shape_cast %123 : vector<24xf32> to vector<24x1xf32>
    %cst_55 = arith.constant 3.200000e+01 : f32
    %125 = vector.broadcast %cst_55 : f32 to vector<24x1xf32>
    %126 = arith.divf %124, %125 : vector<24x1xf32>
    %127 = vector.broadcast %126 : vector<24x1xf32> to vector<24x32xf32>
    %128 = arith.subf %118, %127 : vector<24x32xf32>
    %129 = arith.mulf %128, %128 : vector<24x32xf32>
    %cst_56 = arith.constant dense<0.000000e+00> : vector<24xf32>
    %130 = vector.multi_reduction <add>, %129, %cst_56 [1] : vector<24x32xf32> to vector<24xf32>
    %131 = vector.shape_cast %130 : vector<24xf32> to vector<24x1xf32>
    %cst_57 = arith.constant 3.200000e+01 : f32
    %132 = vector.broadcast %cst_57 : f32 to vector<24x1xf32>
    %133 = arith.divf %131, %132 : vector<24x1xf32>
    %cst_58 = arith.constant 9.99999974E-6 : f32
    %134 = vector.broadcast %cst_58 : f32 to vector<24x1xf32>
    %135 = arith.addf %133, %134 : vector<24x1xf32>
    %136 = math.rsqrt %135 : vector<24x1xf32>
    %137 = vector.broadcast %136 : vector<24x1xf32> to vector<24x32xf32>
    %138 = arith.mulf %128, %137 : vector<24x32xf32>
    %139 = vector.broadcast %120 : vector<1x32xf32> to vector<24x32xf32>
    %140 = arith.mulf %138, %139 : vector<24x32xf32>
    %141 = vector.broadcast %122 : vector<1x32xf32> to vector<24x32xf32>
    %142 = arith.addf %140, %141 : vector<24x32xf32>
    %c1 = arith.constant 1 : index
    %c0_59 = arith.constant 0 : index
    %c0_60 = arith.constant 0 : index
    %143 = vector.load %arg9[%c1, %c0_59, %c0_60] : memref<4x32x96xf32, #tpu.memory_space<vmem>>, vector<1x32x96xf32>
    %144 = vector.shape_cast %143 : vector<1x32x96xf32> to vector<32x96xf32>
    %c1_61 = arith.constant 1 : index
    %c0_62 = arith.constant 0 : index
    %c0_63 = arith.constant 0 : index
    %145 = vector.load %arg10[%c1_61, %c0_62, %c0_63] : memref<4x1x96xf32, #tpu.memory_space<vmem>>, vector<1x1x96xf32>
    %146 = vector.shape_cast %145 : vector<1x1x96xf32> to vector<1x96xf32>
    %c1_64 = arith.constant 1 : index
    %c0_65 = arith.constant 0 : index
    %c0_66 = arith.constant 0 : index
    %147 = vector.load %arg11[%c1_64, %c0_65, %c0_66] : memref<4x32x32xf32, #tpu.memory_space<vmem>>, vector<1x32x32xf32>
    %148 = vector.shape_cast %147 : vector<1x32x32xf32> to vector<32x32xf32>
    %c1_67 = arith.constant 1 : index
    %c0_68 = arith.constant 0 : index
    %c0_69 = arith.constant 0 : index
    %149 = vector.load %arg12[%c1_67, %c0_68, %c0_69] : memref<4x1x32xf32, #tpu.memory_space<vmem>>, vector<1x1x32xf32>
    %150 = vector.shape_cast %149 : vector<1x1x32xf32> to vector<1x32xf32>
    %cst_70 = arith.constant dense<0.000000e+00> : vector<24x96xf32>
    %151 = tpu.matmul %142, %144, %cst_70 {dimension_numbers = #tpu.dot_dimension_numbers<[1], [0], [0], [1], [0, 0, 1, 1], [], []>} : vector<24x32xf32>, vector<32x96xf32>, vector<24x96xf32> -> vector<24x96xf32>
    %152 = vector.broadcast %146 : vector<1x96xf32> to vector<24x96xf32>
    %153 = arith.addf %151, %152 : vector<24x96xf32>
    %154 = vector.extract_strided_slice %153 {offsets = [0, 0], sizes = [24, 8], strides = [1, 1]} : vector<24x96xf32> to vector<24x8xf32>
    %155 = vector.extract_strided_slice %153 {offsets = [0, 32], sizes = [24, 8], strides = [1, 1]} : vector<24x96xf32> to vector<24x8xf32>
    %156 = vector.extract_strided_slice %153 {offsets = [0, 64], sizes = [24, 8], strides = [1, 1]} : vector<24x96xf32> to vector<24x8xf32>
    %157 = tpu.transpose %155, [1, 0] : vector<24x8xf32> -> vector<8x24xf32>
    %cst_71 = arith.constant dense<0.000000e+00> : vector<24x24xf32>
    %158 = tpu.matmul %154, %157, %cst_71 {dimension_numbers = #tpu.dot_dimension_numbers<[1], [0], [0], [1], [0, 0, 1, 1], [], []>} : vector<24x8xf32>, vector<8x24xf32>, vector<24x24xf32> -> vector<24x24xf32>
    %cst_72 = arith.constant 0.353553385 : f32
    %159 = vector.broadcast %cst_72 : f32 to vector<24x24xf32>
    %160 = arith.mulf %158, %159 : vector<24x24xf32>
    %cst_73 = arith.constant dense<0xFF800000> : vector<24xf32>
    %161 = vector.multi_reduction <maximumf>, %160, %cst_73 [1] : vector<24x24xf32> to vector<24xf32>
    %162 = vector.shape_cast %161 : vector<24xf32> to vector<24x1xf32>
    %163 = vector.broadcast %162 : vector<24x1xf32> to vector<24x24xf32>
    %164 = arith.subf %160, %163 : vector<24x24xf32>
    %165 = math.exp %164 : vector<24x24xf32>
    %cst_74 = arith.constant dense<0.000000e+00> : vector<24xf32>
    %166 = vector.multi_reduction <add>, %165, %cst_74 [1] : vector<24x24xf32> to vector<24xf32>
    %167 = vector.shape_cast %166 : vector<24xf32> to vector<24x1xf32>
    %168 = tpu.reciprocal %167 {approx = true} : vector<24x1xf32> -> vector<24x1xf32>
    %169 = vector.broadcast %168 : vector<24x1xf32> to vector<24x24xf32>
    %170 = arith.mulf %165, %169 : vector<24x24xf32>
    %cst_75 = arith.constant dense<0.000000e+00> : vector<24x8xf32>
    %171 = tpu.matmul %170, %156, %cst_75 {dimension_numbers = #tpu.dot_dimension_numbers<[1], [0], [0], [1], [0, 0, 1, 1], [], []>} : vector<24x24xf32>, vector<24x8xf32>, vector<24x8xf32> -> vector<24x8xf32>
    %172 = vector.extract_strided_slice %148 {offsets = [0, 0], sizes = [8, 32], strides = [1, 1]} : vector<32x32xf32> to vector<8x32xf32>
    %cst_76 = arith.constant dense<0.000000e+00> : vector<24x32xf32>
    %173 = tpu.matmul %171, %172, %cst_76 {dimension_numbers = #tpu.dot_dimension_numbers<[1], [0], [0], [1], [0, 0, 1, 1], [], []>} : vector<24x8xf32>, vector<8x32xf32>, vector<24x32xf32> -> vector<24x32xf32>
    %174 = vector.extract_strided_slice %153 {offsets = [0, 8], sizes = [24, 8], strides = [1, 1]} : vector<24x96xf32> to vector<24x8xf32>
    %175 = vector.extract_strided_slice %153 {offsets = [0, 40], sizes = [24, 8], strides = [1, 1]} : vector<24x96xf32> to vector<24x8xf32>
    %176 = vector.extract_strided_slice %153 {offsets = [0, 72], sizes = [24, 8], strides = [1, 1]} : vector<24x96xf32> to vector<24x8xf32>
    %177 = tpu.transpose %175, [1, 0] : vector<24x8xf32> -> vector<8x24xf32>
    %cst_77 = arith.constant dense<0.000000e+00> : vector<24x24xf32>
    %178 = tpu.matmul %174, %177, %cst_77 {dimension_numbers = #tpu.dot_dimension_numbers<[1], [0], [0], [1], [0, 0, 1, 1], [], []>} : vector<24x8xf32>, vector<8x24xf32>, vector<24x24xf32> -> vector<24x24xf32>
    %cst_78 = arith.constant 0.353553385 : f32
    %179 = vector.broadcast %cst_78 : f32 to vector<24x24xf32>
    %180 = arith.mulf %178, %179 : vector<24x24xf32>
    %cst_79 = arith.constant dense<0xFF800000> : vector<24xf32>
    %181 = vector.multi_reduction <maximumf>, %180, %cst_79 [1] : vector<24x24xf32> to vector<24xf32>
    %182 = vector.shape_cast %181 : vector<24xf32> to vector<24x1xf32>
    %183 = vector.broadcast %182 : vector<24x1xf32> to vector<24x24xf32>
    %184 = arith.subf %180, %183 : vector<24x24xf32>
    %185 = math.exp %184 : vector<24x24xf32>
    %cst_80 = arith.constant dense<0.000000e+00> : vector<24xf32>
    %186 = vector.multi_reduction <add>, %185, %cst_80 [1] : vector<24x24xf32> to vector<24xf32>
    %187 = vector.shape_cast %186 : vector<24xf32> to vector<24x1xf32>
    %188 = tpu.reciprocal %187 {approx = true} : vector<24x1xf32> -> vector<24x1xf32>
    %189 = vector.broadcast %188 : vector<24x1xf32> to vector<24x24xf32>
    %190 = arith.mulf %185, %189 : vector<24x24xf32>
    %cst_81 = arith.constant dense<0.000000e+00> : vector<24x8xf32>
    %191 = tpu.matmul %190, %176, %cst_81 {dimension_numbers = #tpu.dot_dimension_numbers<[1], [0], [0], [1], [0, 0, 1, 1], [], []>} : vector<24x24xf32>, vector<24x8xf32>, vector<24x8xf32> -> vector<24x8xf32>
    %192 = vector.extract_strided_slice %148 {offsets = [8, 0], sizes = [8, 32], strides = [1, 1]} : vector<32x32xf32> to vector<8x32xf32>
    %cst_82 = arith.constant dense<0.000000e+00> : vector<24x32xf32>
    %193 = tpu.matmul %191, %192, %cst_82 {dimension_numbers = #tpu.dot_dimension_numbers<[1], [0], [0], [1], [0, 0, 1, 1], [], []>} : vector<24x8xf32>, vector<8x32xf32>, vector<24x32xf32> -> vector<24x32xf32>
    %194 = arith.addf %173, %193 : vector<24x32xf32>
    %195 = vector.extract_strided_slice %153 {offsets = [0, 16], sizes = [24, 8], strides = [1, 1]} : vector<24x96xf32> to vector<24x8xf32>
    %196 = vector.extract_strided_slice %153 {offsets = [0, 48], sizes = [24, 8], strides = [1, 1]} : vector<24x96xf32> to vector<24x8xf32>
    %197 = vector.extract_strided_slice %153 {offsets = [0, 80], sizes = [24, 8], strides = [1, 1]} : vector<24x96xf32> to vector<24x8xf32>
    %198 = tpu.transpose %196, [1, 0] : vector<24x8xf32> -> vector<8x24xf32>
    %cst_83 = arith.constant dense<0.000000e+00> : vector<24x24xf32>
    %199 = tpu.matmul %195, %198, %cst_83 {dimension_numbers = #tpu.dot_dimension_numbers<[1], [0], [0], [1], [0, 0, 1, 1], [], []>} : vector<24x8xf32>, vector<8x24xf32>, vector<24x24xf32> -> vector<24x24xf32>
    %cst_84 = arith.constant 0.353553385 : f32
    %200 = vector.broadcast %cst_84 : f32 to vector<24x24xf32>
    %201 = arith.mulf %199, %200 : vector<24x24xf32>
    %cst_85 = arith.constant dense<0xFF800000> : vector<24xf32>
    %202 = vector.multi_reduction <maximumf>, %201, %cst_85 [1] : vector<24x24xf32> to vector<24xf32>
    %203 = vector.shape_cast %202 : vector<24xf32> to vector<24x1xf32>
    %204 = vector.broadcast %203 : vector<24x1xf32> to vector<24x24xf32>
    %205 = arith.subf %201, %204 : vector<24x24xf32>
    %206 = math.exp %205 : vector<24x24xf32>
    %cst_86 = arith.constant dense<0.000000e+00> : vector<24xf32>
    %207 = vector.multi_reduction <add>, %206, %cst_86 [1] : vector<24x24xf32> to vector<24xf32>
    %208 = vector.shape_cast %207 : vector<24xf32> to vector<24x1xf32>
    %209 = tpu.reciprocal %208 {approx = true} : vector<24x1xf32> -> vector<24x1xf32>
    %210 = vector.broadcast %209 : vector<24x1xf32> to vector<24x24xf32>
    %211 = arith.mulf %206, %210 : vector<24x24xf32>
    %cst_87 = arith.constant dense<0.000000e+00> : vector<24x8xf32>
    %212 = tpu.matmul %211, %197, %cst_87 {dimension_numbers = #tpu.dot_dimension_numbers<[1], [0], [0], [1], [0, 0, 1, 1], [], []>} : vector<24x24xf32>, vector<24x8xf32>, vector<24x8xf32> -> vector<24x8xf32>
    %213 = vector.extract_strided_slice %148 {offsets = [16, 0], sizes = [8, 32], strides = [1, 1]} : vector<32x32xf32> to vector<8x32xf32>
    %cst_88 = arith.constant dense<0.000000e+00> : vector<24x32xf32>
    %214 = tpu.matmul %212, %213, %cst_88 {dimension_numbers = #tpu.dot_dimension_numbers<[1], [0], [0], [1], [0, 0, 1, 1], [], []>} : vector<24x8xf32>, vector<8x32xf32>, vector<24x32xf32> -> vector<24x32xf32>
    %215 = arith.addf %194, %214 : vector<24x32xf32>
    %216 = vector.extract_strided_slice %153 {offsets = [0, 24], sizes = [24, 8], strides = [1, 1]} : vector<24x96xf32> to vector<24x8xf32>
    %217 = vector.extract_strided_slice %153 {offsets = [0, 56], sizes = [24, 8], strides = [1, 1]} : vector<24x96xf32> to vector<24x8xf32>
    %218 = vector.extract_strided_slice %153 {offsets = [0, 88], sizes = [24, 8], strides = [1, 1]} : vector<24x96xf32> to vector<24x8xf32>
    %219 = tpu.transpose %217, [1, 0] : vector<24x8xf32> -> vector<8x24xf32>
    %cst_89 = arith.constant dense<0.000000e+00> : vector<24x24xf32>
    %220 = tpu.matmul %216, %219, %cst_89 {dimension_numbers = #tpu.dot_dimension_numbers<[1], [0], [0], [1], [0, 0, 1, 1], [], []>} : vector<24x8xf32>, vector<8x24xf32>, vector<24x24xf32> -> vector<24x24xf32>
    %cst_90 = arith.constant 0.353553385 : f32
    %221 = vector.broadcast %cst_90 : f32 to vector<24x24xf32>
    %222 = arith.mulf %220, %221 : vector<24x24xf32>
    %cst_91 = arith.constant dense<0xFF800000> : vector<24xf32>
    %223 = vector.multi_reduction <maximumf>, %222, %cst_91 [1] : vector<24x24xf32> to vector<24xf32>
    %224 = vector.shape_cast %223 : vector<24xf32> to vector<24x1xf32>
    %225 = vector.broadcast %224 : vector<24x1xf32> to vector<24x24xf32>
    %226 = arith.subf %222, %225 : vector<24x24xf32>
    %227 = math.exp %226 : vector<24x24xf32>
    %cst_92 = arith.constant dense<0.000000e+00> : vector<24xf32>
    %228 = vector.multi_reduction <add>, %227, %cst_92 [1] : vector<24x24xf32> to vector<24xf32>
    %229 = vector.shape_cast %228 : vector<24xf32> to vector<24x1xf32>
    %230 = tpu.reciprocal %229 {approx = true} : vector<24x1xf32> -> vector<24x1xf32>
    %231 = vector.broadcast %230 : vector<24x1xf32> to vector<24x24xf32>
    %232 = arith.mulf %227, %231 : vector<24x24xf32>
    %cst_93 = arith.constant dense<0.000000e+00> : vector<24x8xf32>
    %233 = tpu.matmul %232, %218, %cst_93 {dimension_numbers = #tpu.dot_dimension_numbers<[1], [0], [0], [1], [0, 0, 1, 1], [], []>} : vector<24x24xf32>, vector<24x8xf32>, vector<24x8xf32> -> vector<24x8xf32>
    %234 = vector.extract_strided_slice %148 {offsets = [24, 0], sizes = [8, 32], strides = [1, 1]} : vector<32x32xf32> to vector<8x32xf32>
    %cst_94 = arith.constant dense<0.000000e+00> : vector<24x32xf32>
    %235 = tpu.matmul %233, %234, %cst_94 {dimension_numbers = #tpu.dot_dimension_numbers<[1], [0], [0], [1], [0, 0, 1, 1], [], []>} : vector<24x8xf32>, vector<8x32xf32>, vector<24x32xf32> -> vector<24x32xf32>
    %236 = arith.addf %215, %235 : vector<24x32xf32>
    %237 = vector.broadcast %150 : vector<1x32xf32> to vector<24x32xf32>
    %238 = arith.addf %236, %237 : vector<24x32xf32>
    %239 = arith.addf %142, %238 : vector<24x32xf32>
    %c1_95 = arith.constant 1 : index
    %c0_96 = arith.constant 0 : index
    %c0_97 = arith.constant 0 : index
    %240 = vector.load %arg13[%c1_95, %c0_96, %c0_97] : memref<6x1x32xf32, #tpu.memory_space<vmem>>, vector<1x1x32xf32>
    %241 = vector.shape_cast %240 : vector<1x1x32xf32> to vector<1x32xf32>
    %c1_98 = arith.constant 1 : index
    %c0_99 = arith.constant 0 : index
    %c0_100 = arith.constant 0 : index
    %242 = vector.load %arg14[%c1_98, %c0_99, %c0_100] : memref<6x1x32xf32, #tpu.memory_space<vmem>>, vector<1x1x32xf32>
    %243 = vector.shape_cast %242 : vector<1x1x32xf32> to vector<1x32xf32>
    %cst_101 = arith.constant dense<0.000000e+00> : vector<24xf32>
    %244 = vector.multi_reduction <add>, %239, %cst_101 [1] : vector<24x32xf32> to vector<24xf32>
    %245 = vector.shape_cast %244 : vector<24xf32> to vector<24x1xf32>
    %cst_102 = arith.constant 3.200000e+01 : f32
    %246 = vector.broadcast %cst_102 : f32 to vector<24x1xf32>
    %247 = arith.divf %245, %246 : vector<24x1xf32>
    %248 = vector.broadcast %247 : vector<24x1xf32> to vector<24x32xf32>
    %249 = arith.subf %239, %248 : vector<24x32xf32>
    %250 = arith.mulf %249, %249 : vector<24x32xf32>
    %cst_103 = arith.constant dense<0.000000e+00> : vector<24xf32>
    %251 = vector.multi_reduction <add>, %250, %cst_103 [1] : vector<24x32xf32> to vector<24xf32>
    %252 = vector.shape_cast %251 : vector<24xf32> to vector<24x1xf32>
    %cst_104 = arith.constant 3.200000e+01 : f32
    %253 = vector.broadcast %cst_104 : f32 to vector<24x1xf32>
    %254 = arith.divf %252, %253 : vector<24x1xf32>
    %cst_105 = arith.constant 9.99999974E-6 : f32
    %255 = vector.broadcast %cst_105 : f32 to vector<24x1xf32>
    %256 = arith.addf %254, %255 : vector<24x1xf32>
    %257 = math.rsqrt %256 : vector<24x1xf32>
    %258 = vector.broadcast %257 : vector<24x1xf32> to vector<24x32xf32>
    %259 = arith.mulf %249, %258 : vector<24x32xf32>
    %260 = vector.broadcast %241 : vector<1x32xf32> to vector<24x32xf32>
    %261 = arith.mulf %259, %260 : vector<24x32xf32>
    %262 = vector.broadcast %243 : vector<1x32xf32> to vector<24x32xf32>
    %263 = arith.addf %261, %262 : vector<24x32xf32>
    %c0_106 = arith.constant 0 : index
    %c0_107 = arith.constant 0 : index
    %c0_108 = arith.constant 0 : index
    %264 = vector.load %arg15[%c0_106, %c0_107, %c0_108] : memref<2x32x128xf32, #tpu.memory_space<vmem>>, vector<1x32x128xf32>
    %265 = vector.shape_cast %264 : vector<1x32x128xf32> to vector<32x128xf32>
    %cst_109 = arith.constant dense<0.000000e+00> : vector<24x128xf32>
    %266 = tpu.matmul %263, %265, %cst_109 {dimension_numbers = #tpu.dot_dimension_numbers<[1], [0], [0], [1], [0, 0, 1, 1], [], []>} : vector<24x32xf32>, vector<32x128xf32>, vector<24x128xf32> -> vector<24x128xf32>
    %c0_110 = arith.constant 0 : index
    %c0_111 = arith.constant 0 : index
    %c0_112 = arith.constant 0 : index
    %267 = vector.load %arg16[%c0_110, %c0_111, %c0_112] : memref<2x1x128xf32, #tpu.memory_space<vmem>>, vector<1x1x128xf32>
    %268 = vector.shape_cast %267 : vector<1x1x128xf32> to vector<1x128xf32>
    %269 = vector.broadcast %268 : vector<1x128xf32> to vector<24x128xf32>
    %270 = arith.addf %266, %269 : vector<24x128xf32>
    %cst_113 = arith.constant 0.000000e+00 : f32
    %271 = vector.broadcast %cst_113 : f32 to vector<24x128xf32>
    %272 = arith.maximumf %270, %271 : vector<24x128xf32>
    %c0_114 = arith.constant 0 : index
    %c0_115 = arith.constant 0 : index
    %c0_116 = arith.constant 0 : index
    %273 = vector.load %arg17[%c0_114, %c0_115, %c0_116] : memref<2x128x32xf32, #tpu.memory_space<vmem>>, vector<1x128x32xf32>
    %274 = vector.shape_cast %273 : vector<1x128x32xf32> to vector<128x32xf32>
    %cst_117 = arith.constant dense<0.000000e+00> : vector<24x32xf32>
    %275 = tpu.matmul %272, %274, %cst_117 {dimension_numbers = #tpu.dot_dimension_numbers<[1], [0], [0], [1], [0, 0, 1, 1], [], []>} : vector<24x128xf32>, vector<128x32xf32>, vector<24x32xf32> -> vector<24x32xf32>
    %c0_118 = arith.constant 0 : index
    %c0_119 = arith.constant 0 : index
    %c0_120 = arith.constant 0 : index
    %276 = vector.load %arg18[%c0_118, %c0_119, %c0_120] : memref<2x1x32xf32, #tpu.memory_space<vmem>>, vector<1x1x32xf32>
    %277 = vector.shape_cast %276 : vector<1x1x32xf32> to vector<1x32xf32>
    %278 = vector.broadcast %277 : vector<1x32xf32> to vector<24x32xf32>
    %279 = arith.addf %275, %278 : vector<24x32xf32>
    %280 = arith.addf %263, %279 : vector<24x32xf32>
    %c2 = arith.constant 2 : index
    %c0_121 = arith.constant 0 : index
    %c0_122 = arith.constant 0 : index
    %281 = vector.load %arg13[%c2, %c0_121, %c0_122] : memref<6x1x32xf32, #tpu.memory_space<vmem>>, vector<1x1x32xf32>
    %282 = vector.shape_cast %281 : vector<1x1x32xf32> to vector<1x32xf32>
    %c2_123 = arith.constant 2 : index
    %c0_124 = arith.constant 0 : index
    %c0_125 = arith.constant 0 : index
    %283 = vector.load %arg14[%c2_123, %c0_124, %c0_125] : memref<6x1x32xf32, #tpu.memory_space<vmem>>, vector<1x1x32xf32>
    %284 = vector.shape_cast %283 : vector<1x1x32xf32> to vector<1x32xf32>
    %cst_126 = arith.constant dense<0.000000e+00> : vector<24xf32>
    %285 = vector.multi_reduction <add>, %280, %cst_126 [1] : vector<24x32xf32> to vector<24xf32>
    %286 = vector.shape_cast %285 : vector<24xf32> to vector<24x1xf32>
    %cst_127 = arith.constant 3.200000e+01 : f32
    %287 = vector.broadcast %cst_127 : f32 to vector<24x1xf32>
    %288 = arith.divf %286, %287 : vector<24x1xf32>
    %289 = vector.broadcast %288 : vector<24x1xf32> to vector<24x32xf32>
    %290 = arith.subf %280, %289 : vector<24x32xf32>
    %291 = arith.mulf %290, %290 : vector<24x32xf32>
    %cst_128 = arith.constant dense<0.000000e+00> : vector<24xf32>
    %292 = vector.multi_reduction <add>, %291, %cst_128 [1] : vector<24x32xf32> to vector<24xf32>
    %293 = vector.shape_cast %292 : vector<24xf32> to vector<24x1xf32>
    %cst_129 = arith.constant 3.200000e+01 : f32
    %294 = vector.broadcast %cst_129 : f32 to vector<24x1xf32>
    %295 = arith.divf %293, %294 : vector<24x1xf32>
    %cst_130 = arith.constant 9.99999974E-6 : f32
    %296 = vector.broadcast %cst_130 : f32 to vector<24x1xf32>
    %297 = arith.addf %295, %296 : vector<24x1xf32>
    %298 = math.rsqrt %297 : vector<24x1xf32>
    %299 = vector.broadcast %298 : vector<24x1xf32> to vector<24x32xf32>
    %300 = arith.mulf %290, %299 : vector<24x32xf32>
    %301 = vector.broadcast %282 : vector<1x32xf32> to vector<24x32xf32>
    %302 = arith.mulf %300, %301 : vector<24x32xf32>
    %303 = vector.broadcast %284 : vector<1x32xf32> to vector<24x32xf32>
    %304 = arith.addf %302, %303 : vector<24x32xf32>
    %c2_131 = arith.constant 2 : index
    %c0_132 = arith.constant 0 : index
    %c0_133 = arith.constant 0 : index
    %305 = vector.load %arg9[%c2_131, %c0_132, %c0_133] : memref<4x32x96xf32, #tpu.memory_space<vmem>>, vector<1x32x96xf32>
    %306 = vector.shape_cast %305 : vector<1x32x96xf32> to vector<32x96xf32>
    %c2_134 = arith.constant 2 : index
    %c0_135 = arith.constant 0 : index
    %c0_136 = arith.constant 0 : index
    %307 = vector.load %arg10[%c2_134, %c0_135, %c0_136] : memref<4x1x96xf32, #tpu.memory_space<vmem>>, vector<1x1x96xf32>
    %308 = vector.shape_cast %307 : vector<1x1x96xf32> to vector<1x96xf32>
    %c2_137 = arith.constant 2 : index
    %c0_138 = arith.constant 0 : index
    %c0_139 = arith.constant 0 : index
    %309 = vector.load %arg11[%c2_137, %c0_138, %c0_139] : memref<4x32x32xf32, #tpu.memory_space<vmem>>, vector<1x32x32xf32>
    %310 = vector.shape_cast %309 : vector<1x32x32xf32> to vector<32x32xf32>
    %c2_140 = arith.constant 2 : index
    %c0_141 = arith.constant 0 : index
    %c0_142 = arith.constant 0 : index
    %311 = vector.load %arg12[%c2_140, %c0_141, %c0_142] : memref<4x1x32xf32, #tpu.memory_space<vmem>>, vector<1x1x32xf32>
    %312 = vector.shape_cast %311 : vector<1x1x32xf32> to vector<1x32xf32>
    %cst_143 = arith.constant dense<0.000000e+00> : vector<24x96xf32>
    %313 = tpu.matmul %304, %306, %cst_143 {dimension_numbers = #tpu.dot_dimension_numbers<[1], [0], [0], [1], [0, 0, 1, 1], [], []>} : vector<24x32xf32>, vector<32x96xf32>, vector<24x96xf32> -> vector<24x96xf32>
    %314 = vector.broadcast %308 : vector<1x96xf32> to vector<24x96xf32>
    %315 = arith.addf %313, %314 : vector<24x96xf32>
    %316 = vector.extract_strided_slice %315 {offsets = [0, 0], sizes = [24, 8], strides = [1, 1]} : vector<24x96xf32> to vector<24x8xf32>
    %317 = vector.extract_strided_slice %315 {offsets = [0, 32], sizes = [24, 8], strides = [1, 1]} : vector<24x96xf32> to vector<24x8xf32>
    %318 = vector.extract_strided_slice %315 {offsets = [0, 64], sizes = [24, 8], strides = [1, 1]} : vector<24x96xf32> to vector<24x8xf32>
    %319 = tpu.transpose %317, [1, 0] : vector<24x8xf32> -> vector<8x24xf32>
    %cst_144 = arith.constant dense<0.000000e+00> : vector<24x24xf32>
    %320 = tpu.matmul %316, %319, %cst_144 {dimension_numbers = #tpu.dot_dimension_numbers<[1], [0], [0], [1], [0, 0, 1, 1], [], []>} : vector<24x8xf32>, vector<8x24xf32>, vector<24x24xf32> -> vector<24x24xf32>
    %cst_145 = arith.constant 0.353553385 : f32
    %321 = vector.broadcast %cst_145 : f32 to vector<24x24xf32>
    %322 = arith.mulf %320, %321 : vector<24x24xf32>
    %cst_146 = arith.constant dense<0xFF800000> : vector<24xf32>
    %323 = vector.multi_reduction <maximumf>, %322, %cst_146 [1] : vector<24x24xf32> to vector<24xf32>
    %324 = vector.shape_cast %323 : vector<24xf32> to vector<24x1xf32>
    %325 = vector.broadcast %324 : vector<24x1xf32> to vector<24x24xf32>
    %326 = arith.subf %322, %325 : vector<24x24xf32>
    %327 = math.exp %326 : vector<24x24xf32>
    %cst_147 = arith.constant dense<0.000000e+00> : vector<24xf32>
    %328 = vector.multi_reduction <add>, %327, %cst_147 [1] : vector<24x24xf32> to vector<24xf32>
    %329 = vector.shape_cast %328 : vector<24xf32> to vector<24x1xf32>
    %330 = tpu.reciprocal %329 {approx = true} : vector<24x1xf32> -> vector<24x1xf32>
    %331 = vector.broadcast %330 : vector<24x1xf32> to vector<24x24xf32>
    %332 = arith.mulf %327, %331 : vector<24x24xf32>
    %cst_148 = arith.constant dense<0.000000e+00> : vector<24x8xf32>
    %333 = tpu.matmul %332, %318, %cst_148 {dimension_numbers = #tpu.dot_dimension_numbers<[1], [0], [0], [1], [0, 0, 1, 1], [], []>} : vector<24x24xf32>, vector<24x8xf32>, vector<24x8xf32> -> vector<24x8xf32>
    %334 = vector.extract_strided_slice %310 {offsets = [0, 0], sizes = [8, 32], strides = [1, 1]} : vector<32x32xf32> to vector<8x32xf32>
    %cst_149 = arith.constant dense<0.000000e+00> : vector<24x32xf32>
    %335 = tpu.matmul %333, %334, %cst_149 {dimension_numbers = #tpu.dot_dimension_numbers<[1], [0], [0], [1], [0, 0, 1, 1], [], []>} : vector<24x8xf32>, vector<8x32xf32>, vector<24x32xf32> -> vector<24x32xf32>
    %336 = vector.extract_strided_slice %315 {offsets = [0, 8], sizes = [24, 8], strides = [1, 1]} : vector<24x96xf32> to vector<24x8xf32>
    %337 = vector.extract_strided_slice %315 {offsets = [0, 40], sizes = [24, 8], strides = [1, 1]} : vector<24x96xf32> to vector<24x8xf32>
    %338 = vector.extract_strided_slice %315 {offsets = [0, 72], sizes = [24, 8], strides = [1, 1]} : vector<24x96xf32> to vector<24x8xf32>
    %339 = tpu.transpose %337, [1, 0] : vector<24x8xf32> -> vector<8x24xf32>
    %cst_150 = arith.constant dense<0.000000e+00> : vector<24x24xf32>
    %340 = tpu.matmul %336, %339, %cst_150 {dimension_numbers = #tpu.dot_dimension_numbers<[1], [0], [0], [1], [0, 0, 1, 1], [], []>} : vector<24x8xf32>, vector<8x24xf32>, vector<24x24xf32> -> vector<24x24xf32>
    %cst_151 = arith.constant 0.353553385 : f32
    %341 = vector.broadcast %cst_151 : f32 to vector<24x24xf32>
    %342 = arith.mulf %340, %341 : vector<24x24xf32>
    %cst_152 = arith.constant dense<0xFF800000> : vector<24xf32>
    %343 = vector.multi_reduction <maximumf>, %342, %cst_152 [1] : vector<24x24xf32> to vector<24xf32>
    %344 = vector.shape_cast %343 : vector<24xf32> to vector<24x1xf32>
    %345 = vector.broadcast %344 : vector<24x1xf32> to vector<24x24xf32>
    %346 = arith.subf %342, %345 : vector<24x24xf32>
    %347 = math.exp %346 : vector<24x24xf32>
    %cst_153 = arith.constant dense<0.000000e+00> : vector<24xf32>
    %348 = vector.multi_reduction <add>, %347, %cst_153 [1] : vector<24x24xf32> to vector<24xf32>
    %349 = vector.shape_cast %348 : vector<24xf32> to vector<24x1xf32>
    %350 = tpu.reciprocal %349 {approx = true} : vector<24x1xf32> -> vector<24x1xf32>
    %351 = vector.broadcast %350 : vector<24x1xf32> to vector<24x24xf32>
    %352 = arith.mulf %347, %351 : vector<24x24xf32>
    %cst_154 = arith.constant dense<0.000000e+00> : vector<24x8xf32>
    %353 = tpu.matmul %352, %338, %cst_154 {dimension_numbers = #tpu.dot_dimension_numbers<[1], [0], [0], [1], [0, 0, 1, 1], [], []>} : vector<24x24xf32>, vector<24x8xf32>, vector<24x8xf32> -> vector<24x8xf32>
    %354 = vector.extract_strided_slice %310 {offsets = [8, 0], sizes = [8, 32], strides = [1, 1]} : vector<32x32xf32> to vector<8x32xf32>
    %cst_155 = arith.constant dense<0.000000e+00> : vector<24x32xf32>
    %355 = tpu.matmul %353, %354, %cst_155 {dimension_numbers = #tpu.dot_dimension_numbers<[1], [0], [0], [1], [0, 0, 1, 1], [], []>} : vector<24x8xf32>, vector<8x32xf32>, vector<24x32xf32> -> vector<24x32xf32>
    %356 = arith.addf %335, %355 : vector<24x32xf32>
    %357 = vector.extract_strided_slice %315 {offsets = [0, 16], sizes = [24, 8], strides = [1, 1]} : vector<24x96xf32> to vector<24x8xf32>
    %358 = vector.extract_strided_slice %315 {offsets = [0, 48], sizes = [24, 8], strides = [1, 1]} : vector<24x96xf32> to vector<24x8xf32>
    %359 = vector.extract_strided_slice %315 {offsets = [0, 80], sizes = [24, 8], strides = [1, 1]} : vector<24x96xf32> to vector<24x8xf32>
    %360 = tpu.transpose %358, [1, 0] : vector<24x8xf32> -> vector<8x24xf32>
    %cst_156 = arith.constant dense<0.000000e+00> : vector<24x24xf32>
    %361 = tpu.matmul %357, %360, %cst_156 {dimension_numbers = #tpu.dot_dimension_numbers<[1], [0], [0], [1], [0, 0, 1, 1], [], []>} : vector<24x8xf32>, vector<8x24xf32>, vector<24x24xf32> -> vector<24x24xf32>
    %cst_157 = arith.constant 0.353553385 : f32
    %362 = vector.broadcast %cst_157 : f32 to vector<24x24xf32>
    %363 = arith.mulf %361, %362 : vector<24x24xf32>
    %cst_158 = arith.constant dense<0xFF800000> : vector<24xf32>
    %364 = vector.multi_reduction <maximumf>, %363, %cst_158 [1] : vector<24x24xf32> to vector<24xf32>
    %365 = vector.shape_cast %364 : vector<24xf32> to vector<24x1xf32>
    %366 = vector.broadcast %365 : vector<24x1xf32> to vector<24x24xf32>
    %367 = arith.subf %363, %366 : vector<24x24xf32>
    %368 = math.exp %367 : vector<24x24xf32>
    %cst_159 = arith.constant dense<0.000000e+00> : vector<24xf32>
    %369 = vector.multi_reduction <add>, %368, %cst_159 [1] : vector<24x24xf32> to vector<24xf32>
    %370 = vector.shape_cast %369 : vector<24xf32> to vector<24x1xf32>
    %371 = tpu.reciprocal %370 {approx = true} : vector<24x1xf32> -> vector<24x1xf32>
    %372 = vector.broadcast %371 : vector<24x1xf32> to vector<24x24xf32>
    %373 = arith.mulf %368, %372 : vector<24x24xf32>
    %cst_160 = arith.constant dense<0.000000e+00> : vector<24x8xf32>
    %374 = tpu.matmul %373, %359, %cst_160 {dimension_numbers = #tpu.dot_dimension_numbers<[1], [0], [0], [1], [0, 0, 1, 1], [], []>} : vector<24x24xf32>, vector<24x8xf32>, vector<24x8xf32> -> vector<24x8xf32>
    %375 = vector.extract_strided_slice %310 {offsets = [16, 0], sizes = [8, 32], strides = [1, 1]} : vector<32x32xf32> to vector<8x32xf32>
    %cst_161 = arith.constant dense<0.000000e+00> : vector<24x32xf32>
    %376 = tpu.matmul %374, %375, %cst_161 {dimension_numbers = #tpu.dot_dimension_numbers<[1], [0], [0], [1], [0, 0, 1, 1], [], []>} : vector<24x8xf32>, vector<8x32xf32>, vector<24x32xf32> -> vector<24x32xf32>
    %377 = arith.addf %356, %376 : vector<24x32xf32>
    %378 = vector.extract_strided_slice %315 {offsets = [0, 24], sizes = [24, 8], strides = [1, 1]} : vector<24x96xf32> to vector<24x8xf32>
    %379 = vector.extract_strided_slice %315 {offsets = [0, 56], sizes = [24, 8], strides = [1, 1]} : vector<24x96xf32> to vector<24x8xf32>
    %380 = vector.extract_strided_slice %315 {offsets = [0, 88], sizes = [24, 8], strides = [1, 1]} : vector<24x96xf32> to vector<24x8xf32>
    %381 = tpu.transpose %379, [1, 0] : vector<24x8xf32> -> vector<8x24xf32>
    %cst_162 = arith.constant dense<0.000000e+00> : vector<24x24xf32>
    %382 = tpu.matmul %378, %381, %cst_162 {dimension_numbers = #tpu.dot_dimension_numbers<[1], [0], [0], [1], [0, 0, 1, 1], [], []>} : vector<24x8xf32>, vector<8x24xf32>, vector<24x24xf32> -> vector<24x24xf32>
    %cst_163 = arith.constant 0.353553385 : f32
    %383 = vector.broadcast %cst_163 : f32 to vector<24x24xf32>
    %384 = arith.mulf %382, %383 : vector<24x24xf32>
    %cst_164 = arith.constant dense<0xFF800000> : vector<24xf32>
    %385 = vector.multi_reduction <maximumf>, %384, %cst_164 [1] : vector<24x24xf32> to vector<24xf32>
    %386 = vector.shape_cast %385 : vector<24xf32> to vector<24x1xf32>
    %387 = vector.broadcast %386 : vector<24x1xf32> to vector<24x24xf32>
    %388 = arith.subf %384, %387 : vector<24x24xf32>
    %389 = math.exp %388 : vector<24x24xf32>
    %cst_165 = arith.constant dense<0.000000e+00> : vector<24xf32>
    %390 = vector.multi_reduction <add>, %389, %cst_165 [1] : vector<24x24xf32> to vector<24xf32>
    %391 = vector.shape_cast %390 : vector<24xf32> to vector<24x1xf32>
    %392 = tpu.reciprocal %391 {approx = true} : vector<24x1xf32> -> vector<24x1xf32>
    %393 = vector.broadcast %392 : vector<24x1xf32> to vector<24x24xf32>
    %394 = arith.mulf %389, %393 : vector<24x24xf32>
    %cst_166 = arith.constant dense<0.000000e+00> : vector<24x8xf32>
    %395 = tpu.matmul %394, %380, %cst_166 {dimension_numbers = #tpu.dot_dimension_numbers<[1], [0], [0], [1], [0, 0, 1, 1], [], []>} : vector<24x24xf32>, vector<24x8xf32>, vector<24x8xf32> -> vector<24x8xf32>
    %396 = vector.extract_strided_slice %310 {offsets = [24, 0], sizes = [8, 32], strides = [1, 1]} : vector<32x32xf32> to vector<8x32xf32>
    %cst_167 = arith.constant dense<0.000000e+00> : vector<24x32xf32>
    %397 = tpu.matmul %395, %396, %cst_167 {dimension_numbers = #tpu.dot_dimension_numbers<[1], [0], [0], [1], [0, 0, 1, 1], [], []>} : vector<24x8xf32>, vector<8x32xf32>, vector<24x32xf32> -> vector<24x32xf32>
    %398 = arith.addf %377, %397 : vector<24x32xf32>
    %399 = vector.broadcast %312 : vector<1x32xf32> to vector<24x32xf32>
    %400 = arith.addf %398, %399 : vector<24x32xf32>
    %401 = arith.addf %304, %400 : vector<24x32xf32>
    %c3 = arith.constant 3 : index
    %c0_168 = arith.constant 0 : index
    %c0_169 = arith.constant 0 : index
    %402 = vector.load %arg13[%c3, %c0_168, %c0_169] : memref<6x1x32xf32, #tpu.memory_space<vmem>>, vector<1x1x32xf32>
    %403 = vector.shape_cast %402 : vector<1x1x32xf32> to vector<1x32xf32>
    %c3_170 = arith.constant 3 : index
    %c0_171 = arith.constant 0 : index
    %c0_172 = arith.constant 0 : index
    %404 = vector.load %arg14[%c3_170, %c0_171, %c0_172] : memref<6x1x32xf32, #tpu.memory_space<vmem>>, vector<1x1x32xf32>
    %405 = vector.shape_cast %404 : vector<1x1x32xf32> to vector<1x32xf32>
    %cst_173 = arith.constant dense<0.000000e+00> : vector<24xf32>
    %406 = vector.multi_reduction <add>, %401, %cst_173 [1] : vector<24x32xf32> to vector<24xf32>
    %407 = vector.shape_cast %406 : vector<24xf32> to vector<24x1xf32>
    %cst_174 = arith.constant 3.200000e+01 : f32
    %408 = vector.broadcast %cst_174 : f32 to vector<24x1xf32>
    %409 = arith.divf %407, %408 : vector<24x1xf32>
    %410 = vector.broadcast %409 : vector<24x1xf32> to vector<24x32xf32>
    %411 = arith.subf %401, %410 : vector<24x32xf32>
    %412 = arith.mulf %411, %411 : vector<24x32xf32>
    %cst_175 = arith.constant dense<0.000000e+00> : vector<24xf32>
    %413 = vector.multi_reduction <add>, %412, %cst_175 [1] : vector<24x32xf32> to vector<24xf32>
    %414 = vector.shape_cast %413 : vector<24xf32> to vector<24x1xf32>
    %cst_176 = arith.constant 3.200000e+01 : f32
    %415 = vector.broadcast %cst_176 : f32 to vector<24x1xf32>
    %416 = arith.divf %414, %415 : vector<24x1xf32>
    %cst_177 = arith.constant 9.99999974E-6 : f32
    %417 = vector.broadcast %cst_177 : f32 to vector<24x1xf32>
    %418 = arith.addf %416, %417 : vector<24x1xf32>
    %419 = math.rsqrt %418 : vector<24x1xf32>
    %420 = vector.broadcast %419 : vector<24x1xf32> to vector<24x32xf32>
    %421 = arith.mulf %411, %420 : vector<24x32xf32>
    %422 = vector.broadcast %403 : vector<1x32xf32> to vector<24x32xf32>
    %423 = arith.mulf %421, %422 : vector<24x32xf32>
    %424 = vector.broadcast %405 : vector<1x32xf32> to vector<24x32xf32>
    %425 = arith.addf %423, %424 : vector<24x32xf32>
    %c3_178 = arith.constant 3 : index
    %c0_179 = arith.constant 0 : index
    %c0_180 = arith.constant 0 : index
    %426 = vector.load %arg9[%c3_178, %c0_179, %c0_180] : memref<4x32x96xf32, #tpu.memory_space<vmem>>, vector<1x32x96xf32>
    %427 = vector.shape_cast %426 : vector<1x32x96xf32> to vector<32x96xf32>
    %c3_181 = arith.constant 3 : index
    %c0_182 = arith.constant 0 : index
    %c0_183 = arith.constant 0 : index
    %428 = vector.load %arg10[%c3_181, %c0_182, %c0_183] : memref<4x1x96xf32, #tpu.memory_space<vmem>>, vector<1x1x96xf32>
    %429 = vector.shape_cast %428 : vector<1x1x96xf32> to vector<1x96xf32>
    %c3_184 = arith.constant 3 : index
    %c0_185 = arith.constant 0 : index
    %c0_186 = arith.constant 0 : index
    %430 = vector.load %arg11[%c3_184, %c0_185, %c0_186] : memref<4x32x32xf32, #tpu.memory_space<vmem>>, vector<1x32x32xf32>
    %431 = vector.shape_cast %430 : vector<1x32x32xf32> to vector<32x32xf32>
    %c3_187 = arith.constant 3 : index
    %c0_188 = arith.constant 0 : index
    %c0_189 = arith.constant 0 : index
    %432 = vector.load %arg12[%c3_187, %c0_188, %c0_189] : memref<4x1x32xf32, #tpu.memory_space<vmem>>, vector<1x1x32xf32>
    %433 = vector.shape_cast %432 : vector<1x1x32xf32> to vector<1x32xf32>
    %cst_190 = arith.constant dense<0.000000e+00> : vector<24x96xf32>
    %434 = tpu.matmul %425, %427, %cst_190 {dimension_numbers = #tpu.dot_dimension_numbers<[1], [0], [0], [1], [0, 0, 1, 1], [], []>} : vector<24x32xf32>, vector<32x96xf32>, vector<24x96xf32> -> vector<24x96xf32>
    %435 = vector.broadcast %429 : vector<1x96xf32> to vector<24x96xf32>
    %436 = arith.addf %434, %435 : vector<24x96xf32>
    %437 = vector.extract_strided_slice %436 {offsets = [0, 0], sizes = [24, 8], strides = [1, 1]} : vector<24x96xf32> to vector<24x8xf32>
    %438 = vector.extract_strided_slice %436 {offsets = [0, 32], sizes = [24, 8], strides = [1, 1]} : vector<24x96xf32> to vector<24x8xf32>
    %439 = vector.extract_strided_slice %436 {offsets = [0, 64], sizes = [24, 8], strides = [1, 1]} : vector<24x96xf32> to vector<24x8xf32>
    %440 = tpu.transpose %438, [1, 0] : vector<24x8xf32> -> vector<8x24xf32>
    %cst_191 = arith.constant dense<0.000000e+00> : vector<24x24xf32>
    %441 = tpu.matmul %437, %440, %cst_191 {dimension_numbers = #tpu.dot_dimension_numbers<[1], [0], [0], [1], [0, 0, 1, 1], [], []>} : vector<24x8xf32>, vector<8x24xf32>, vector<24x24xf32> -> vector<24x24xf32>
    %cst_192 = arith.constant 0.353553385 : f32
    %442 = vector.broadcast %cst_192 : f32 to vector<24x24xf32>
    %443 = arith.mulf %441, %442 : vector<24x24xf32>
    %cst_193 = arith.constant dense<0xFF800000> : vector<24xf32>
    %444 = vector.multi_reduction <maximumf>, %443, %cst_193 [1] : vector<24x24xf32> to vector<24xf32>
    %445 = vector.shape_cast %444 : vector<24xf32> to vector<24x1xf32>
    %446 = vector.broadcast %445 : vector<24x1xf32> to vector<24x24xf32>
    %447 = arith.subf %443, %446 : vector<24x24xf32>
    %448 = math.exp %447 : vector<24x24xf32>
    %cst_194 = arith.constant dense<0.000000e+00> : vector<24xf32>
    %449 = vector.multi_reduction <add>, %448, %cst_194 [1] : vector<24x24xf32> to vector<24xf32>
    %450 = vector.shape_cast %449 : vector<24xf32> to vector<24x1xf32>
    %451 = tpu.reciprocal %450 {approx = true} : vector<24x1xf32> -> vector<24x1xf32>
    %452 = vector.broadcast %451 : vector<24x1xf32> to vector<24x24xf32>
    %453 = arith.mulf %448, %452 : vector<24x24xf32>
    %cst_195 = arith.constant dense<0.000000e+00> : vector<24x8xf32>
    %454 = tpu.matmul %453, %439, %cst_195 {dimension_numbers = #tpu.dot_dimension_numbers<[1], [0], [0], [1], [0, 0, 1, 1], [], []>} : vector<24x24xf32>, vector<24x8xf32>, vector<24x8xf32> -> vector<24x8xf32>
    %455 = vector.extract_strided_slice %431 {offsets = [0, 0], sizes = [8, 32], strides = [1, 1]} : vector<32x32xf32> to vector<8x32xf32>
    %cst_196 = arith.constant dense<0.000000e+00> : vector<24x32xf32>
    %456 = tpu.matmul %454, %455, %cst_196 {dimension_numbers = #tpu.dot_dimension_numbers<[1], [0], [0], [1], [0, 0, 1, 1], [], []>} : vector<24x8xf32>, vector<8x32xf32>, vector<24x32xf32> -> vector<24x32xf32>
    %457 = vector.extract_strided_slice %436 {offsets = [0, 8], sizes = [24, 8], strides = [1, 1]} : vector<24x96xf32> to vector<24x8xf32>
    %458 = vector.extract_strided_slice %436 {offsets = [0, 40], sizes = [24, 8], strides = [1, 1]} : vector<24x96xf32> to vector<24x8xf32>
    %459 = vector.extract_strided_slice %436 {offsets = [0, 72], sizes = [24, 8], strides = [1, 1]} : vector<24x96xf32> to vector<24x8xf32>
    %460 = tpu.transpose %458, [1, 0] : vector<24x8xf32> -> vector<8x24xf32>
    %cst_197 = arith.constant dense<0.000000e+00> : vector<24x24xf32>
    %461 = tpu.matmul %457, %460, %cst_197 {dimension_numbers = #tpu.dot_dimension_numbers<[1], [0], [0], [1], [0, 0, 1, 1], [], []>} : vector<24x8xf32>, vector<8x24xf32>, vector<24x24xf32> -> vector<24x24xf32>
    %cst_198 = arith.constant 0.353553385 : f32
    %462 = vector.broadcast %cst_198 : f32 to vector<24x24xf32>
    %463 = arith.mulf %461, %462 : vector<24x24xf32>
    %cst_199 = arith.constant dense<0xFF800000> : vector<24xf32>
    %464 = vector.multi_reduction <maximumf>, %463, %cst_199 [1] : vector<24x24xf32> to vector<24xf32>
    %465 = vector.shape_cast %464 : vector<24xf32> to vector<24x1xf32>
    %466 = vector.broadcast %465 : vector<24x1xf32> to vector<24x24xf32>
    %467 = arith.subf %463, %466 : vector<24x24xf32>
    %468 = math.exp %467 : vector<24x24xf32>
    %cst_200 = arith.constant dense<0.000000e+00> : vector<24xf32>
    %469 = vector.multi_reduction <add>, %468, %cst_200 [1] : vector<24x24xf32> to vector<24xf32>
    %470 = vector.shape_cast %469 : vector<24xf32> to vector<24x1xf32>
    %471 = tpu.reciprocal %470 {approx = true} : vector<24x1xf32> -> vector<24x1xf32>
    %472 = vector.broadcast %471 : vector<24x1xf32> to vector<24x24xf32>
    %473 = arith.mulf %468, %472 : vector<24x24xf32>
    %cst_201 = arith.constant dense<0.000000e+00> : vector<24x8xf32>
    %474 = tpu.matmul %473, %459, %cst_201 {dimension_numbers = #tpu.dot_dimension_numbers<[1], [0], [0], [1], [0, 0, 1, 1], [], []>} : vector<24x24xf32>, vector<24x8xf32>, vector<24x8xf32> -> vector<24x8xf32>
    %475 = vector.extract_strided_slice %431 {offsets = [8, 0], sizes = [8, 32], strides = [1, 1]} : vector<32x32xf32> to vector<8x32xf32>
    %cst_202 = arith.constant dense<0.000000e+00> : vector<24x32xf32>
    %476 = tpu.matmul %474, %475, %cst_202 {dimension_numbers = #tpu.dot_dimension_numbers<[1], [0], [0], [1], [0, 0, 1, 1], [], []>} : vector<24x8xf32>, vector<8x32xf32>, vector<24x32xf32> -> vector<24x32xf32>
    %477 = arith.addf %456, %476 : vector<24x32xf32>
    %478 = vector.extract_strided_slice %436 {offsets = [0, 16], sizes = [24, 8], strides = [1, 1]} : vector<24x96xf32> to vector<24x8xf32>
    %479 = vector.extract_strided_slice %436 {offsets = [0, 48], sizes = [24, 8], strides = [1, 1]} : vector<24x96xf32> to vector<24x8xf32>
    %480 = vector.extract_strided_slice %436 {offsets = [0, 80], sizes = [24, 8], strides = [1, 1]} : vector<24x96xf32> to vector<24x8xf32>
    %481 = tpu.transpose %479, [1, 0] : vector<24x8xf32> -> vector<8x24xf32>
    %cst_203 = arith.constant dense<0.000000e+00> : vector<24x24xf32>
    %482 = tpu.matmul %478, %481, %cst_203 {dimension_numbers = #tpu.dot_dimension_numbers<[1], [0], [0], [1], [0, 0, 1, 1], [], []>} : vector<24x8xf32>, vector<8x24xf32>, vector<24x24xf32> -> vector<24x24xf32>
    %cst_204 = arith.constant 0.353553385 : f32
    %483 = vector.broadcast %cst_204 : f32 to vector<24x24xf32>
    %484 = arith.mulf %482, %483 : vector<24x24xf32>
    %cst_205 = arith.constant dense<0xFF800000> : vector<24xf32>
    %485 = vector.multi_reduction <maximumf>, %484, %cst_205 [1] : vector<24x24xf32> to vector<24xf32>
    %486 = vector.shape_cast %485 : vector<24xf32> to vector<24x1xf32>
    %487 = vector.broadcast %486 : vector<24x1xf32> to vector<24x24xf32>
    %488 = arith.subf %484, %487 : vector<24x24xf32>
    %489 = math.exp %488 : vector<24x24xf32>
    %cst_206 = arith.constant dense<0.000000e+00> : vector<24xf32>
    %490 = vector.multi_reduction <add>, %489, %cst_206 [1] : vector<24x24xf32> to vector<24xf32>
    %491 = vector.shape_cast %490 : vector<24xf32> to vector<24x1xf32>
    %492 = tpu.reciprocal %491 {approx = true} : vector<24x1xf32> -> vector<24x1xf32>
    %493 = vector.broadcast %492 : vector<24x1xf32> to vector<24x24xf32>
    %494 = arith.mulf %489, %493 : vector<24x24xf32>
    %cst_207 = arith.constant dense<0.000000e+00> : vector<24x8xf32>
    %495 = tpu.matmul %494, %480, %cst_207 {dimension_numbers = #tpu.dot_dimension_numbers<[1], [0], [0], [1], [0, 0, 1, 1], [], []>} : vector<24x24xf32>, vector<24x8xf32>, vector<24x8xf32> -> vector<24x8xf32>
    %496 = vector.extract_strided_slice %431 {offsets = [16, 0], sizes = [8, 32], strides = [1, 1]} : vector<32x32xf32> to vector<8x32xf32>
    %cst_208 = arith.constant dense<0.000000e+00> : vector<24x32xf32>
    %497 = tpu.matmul %495, %496, %cst_208 {dimension_numbers = #tpu.dot_dimension_numbers<[1], [0], [0], [1], [0, 0, 1, 1], [], []>} : vector<24x8xf32>, vector<8x32xf32>, vector<24x32xf32> -> vector<24x32xf32>
    %498 = arith.addf %477, %497 : vector<24x32xf32>
    %499 = vector.extract_strided_slice %436 {offsets = [0, 24], sizes = [24, 8], strides = [1, 1]} : vector<24x96xf32> to vector<24x8xf32>
    %500 = vector.extract_strided_slice %436 {offsets = [0, 56], sizes = [24, 8], strides = [1, 1]} : vector<24x96xf32> to vector<24x8xf32>
    %501 = vector.extract_strided_slice %436 {offsets = [0, 88], sizes = [24, 8], strides = [1, 1]} : vector<24x96xf32> to vector<24x8xf32>
    %502 = tpu.transpose %500, [1, 0] : vector<24x8xf32> -> vector<8x24xf32>
    %cst_209 = arith.constant dense<0.000000e+00> : vector<24x24xf32>
    %503 = tpu.matmul %499, %502, %cst_209 {dimension_numbers = #tpu.dot_dimension_numbers<[1], [0], [0], [1], [0, 0, 1, 1], [], []>} : vector<24x8xf32>, vector<8x24xf32>, vector<24x24xf32> -> vector<24x24xf32>
    %cst_210 = arith.constant 0.353553385 : f32
    %504 = vector.broadcast %cst_210 : f32 to vector<24x24xf32>
    %505 = arith.mulf %503, %504 : vector<24x24xf32>
    %cst_211 = arith.constant dense<0xFF800000> : vector<24xf32>
    %506 = vector.multi_reduction <maximumf>, %505, %cst_211 [1] : vector<24x24xf32> to vector<24xf32>
    %507 = vector.shape_cast %506 : vector<24xf32> to vector<24x1xf32>
    %508 = vector.broadcast %507 : vector<24x1xf32> to vector<24x24xf32>
    %509 = arith.subf %505, %508 : vector<24x24xf32>
    %510 = math.exp %509 : vector<24x24xf32>
    %cst_212 = arith.constant dense<0.000000e+00> : vector<24xf32>
    %511 = vector.multi_reduction <add>, %510, %cst_212 [1] : vector<24x24xf32> to vector<24xf32>
    %512 = vector.shape_cast %511 : vector<24xf32> to vector<24x1xf32>
    %513 = tpu.reciprocal %512 {approx = true} : vector<24x1xf32> -> vector<24x1xf32>
    %514 = vector.broadcast %513 : vector<24x1xf32> to vector<24x24xf32>
    %515 = arith.mulf %510, %514 : vector<24x24xf32>
    %cst_213 = arith.constant dense<0.000000e+00> : vector<24x8xf32>
    %516 = tpu.matmul %515, %501, %cst_213 {dimension_numbers = #tpu.dot_dimension_numbers<[1], [0], [0], [1], [0, 0, 1, 1], [], []>} : vector<24x24xf32>, vector<24x8xf32>, vector<24x8xf32> -> vector<24x8xf32>
    %517 = vector.extract_strided_slice %431 {offsets = [24, 0], sizes = [8, 32], strides = [1, 1]} : vector<32x32xf32> to vector<8x32xf32>
    %cst_214 = arith.constant dense<0.000000e+00> : vector<24x32xf32>
    %518 = tpu.matmul %516, %517, %cst_214 {dimension_numbers = #tpu.dot_dimension_numbers<[1], [0], [0], [1], [0, 0, 1, 1], [], []>} : vector<24x8xf32>, vector<8x32xf32>, vector<24x32xf32> -> vector<24x32xf32>
    %519 = arith.addf %498, %518 : vector<24x32xf32>
    %520 = vector.broadcast %433 : vector<1x32xf32> to vector<24x32xf32>
    %521 = arith.addf %519, %520 : vector<24x32xf32>
    %522 = arith.addf %425, %521 : vector<24x32xf32>
    %c4 = arith.constant 4 : index
    %c0_215 = arith.constant 0 : index
    %c0_216 = arith.constant 0 : index
    %523 = vector.load %arg13[%c4, %c0_215, %c0_216] : memref<6x1x32xf32, #tpu.memory_space<vmem>>, vector<1x1x32xf32>
    %524 = vector.shape_cast %523 : vector<1x1x32xf32> to vector<1x32xf32>
    %c4_217 = arith.constant 4 : index
    %c0_218 = arith.constant 0 : index
    %c0_219 = arith.constant 0 : index
    %525 = vector.load %arg14[%c4_217, %c0_218, %c0_219] : memref<6x1x32xf32, #tpu.memory_space<vmem>>, vector<1x1x32xf32>
    %526 = vector.shape_cast %525 : vector<1x1x32xf32> to vector<1x32xf32>
    %cst_220 = arith.constant dense<0.000000e+00> : vector<24xf32>
    %527 = vector.multi_reduction <add>, %522, %cst_220 [1] : vector<24x32xf32> to vector<24xf32>
    %528 = vector.shape_cast %527 : vector<24xf32> to vector<24x1xf32>
    %cst_221 = arith.constant 3.200000e+01 : f32
    %529 = vector.broadcast %cst_221 : f32 to vector<24x1xf32>
    %530 = arith.divf %528, %529 : vector<24x1xf32>
    %531 = vector.broadcast %530 : vector<24x1xf32> to vector<24x32xf32>
    %532 = arith.subf %522, %531 : vector<24x32xf32>
    %533 = arith.mulf %532, %532 : vector<24x32xf32>
    %cst_222 = arith.constant dense<0.000000e+00> : vector<24xf32>
    %534 = vector.multi_reduction <add>, %533, %cst_222 [1] : vector<24x32xf32> to vector<24xf32>
    %535 = vector.shape_cast %534 : vector<24xf32> to vector<24x1xf32>
    %cst_223 = arith.constant 3.200000e+01 : f32
    %536 = vector.broadcast %cst_223 : f32 to vector<24x1xf32>
    %537 = arith.divf %535, %536 : vector<24x1xf32>
    %cst_224 = arith.constant 9.99999974E-6 : f32
    %538 = vector.broadcast %cst_224 : f32 to vector<24x1xf32>
    %539 = arith.addf %537, %538 : vector<24x1xf32>
    %540 = math.rsqrt %539 : vector<24x1xf32>
    %541 = vector.broadcast %540 : vector<24x1xf32> to vector<24x32xf32>
    %542 = arith.mulf %532, %541 : vector<24x32xf32>
    %543 = vector.broadcast %524 : vector<1x32xf32> to vector<24x32xf32>
    %544 = arith.mulf %542, %543 : vector<24x32xf32>
    %545 = vector.broadcast %526 : vector<1x32xf32> to vector<24x32xf32>
    %546 = arith.addf %544, %545 : vector<24x32xf32>
    %c1_225 = arith.constant 1 : index
    %c0_226 = arith.constant 0 : index
    %c0_227 = arith.constant 0 : index
    %547 = vector.load %arg15[%c1_225, %c0_226, %c0_227] : memref<2x32x128xf32, #tpu.memory_space<vmem>>, vector<1x32x128xf32>
    %548 = vector.shape_cast %547 : vector<1x32x128xf32> to vector<32x128xf32>
    %cst_228 = arith.constant dense<0.000000e+00> : vector<24x128xf32>
    %549 = tpu.matmul %546, %548, %cst_228 {dimension_numbers = #tpu.dot_dimension_numbers<[1], [0], [0], [1], [0, 0, 1, 1], [], []>} : vector<24x32xf32>, vector<32x128xf32>, vector<24x128xf32> -> vector<24x128xf32>
    %c1_229 = arith.constant 1 : index
    %c0_230 = arith.constant 0 : index
    %c0_231 = arith.constant 0 : index
    %550 = vector.load %arg16[%c1_229, %c0_230, %c0_231] : memref<2x1x128xf32, #tpu.memory_space<vmem>>, vector<1x1x128xf32>
    %551 = vector.shape_cast %550 : vector<1x1x128xf32> to vector<1x128xf32>
    %552 = vector.broadcast %551 : vector<1x128xf32> to vector<24x128xf32>
    %553 = arith.addf %549, %552 : vector<24x128xf32>
    %cst_232 = arith.constant 0.000000e+00 : f32
    %554 = vector.broadcast %cst_232 : f32 to vector<24x128xf32>
    %555 = arith.maximumf %553, %554 : vector<24x128xf32>
    %c1_233 = arith.constant 1 : index
    %c0_234 = arith.constant 0 : index
    %c0_235 = arith.constant 0 : index
    %556 = vector.load %arg17[%c1_233, %c0_234, %c0_235] : memref<2x128x32xf32, #tpu.memory_space<vmem>>, vector<1x128x32xf32>
    %557 = vector.shape_cast %556 : vector<1x128x32xf32> to vector<128x32xf32>
    %cst_236 = arith.constant dense<0.000000e+00> : vector<24x32xf32>
    %558 = tpu.matmul %555, %557, %cst_236 {dimension_numbers = #tpu.dot_dimension_numbers<[1], [0], [0], [1], [0, 0, 1, 1], [], []>} : vector<24x128xf32>, vector<128x32xf32>, vector<24x32xf32> -> vector<24x32xf32>
    %c1_237 = arith.constant 1 : index
    %c0_238 = arith.constant 0 : index
    %c0_239 = arith.constant 0 : index
    %559 = vector.load %arg18[%c1_237, %c0_238, %c0_239] : memref<2x1x32xf32, #tpu.memory_space<vmem>>, vector<1x1x32xf32>
    %560 = vector.shape_cast %559 : vector<1x1x32xf32> to vector<1x32xf32>
    %561 = vector.broadcast %560 : vector<1x32xf32> to vector<24x32xf32>
    %562 = arith.addf %558, %561 : vector<24x32xf32>
    %563 = arith.addf %546, %562 : vector<24x32xf32>
    %c5 = arith.constant 5 : index
    %c0_240 = arith.constant 0 : index
    %c0_241 = arith.constant 0 : index
    %564 = vector.load %arg13[%c5, %c0_240, %c0_241] : memref<6x1x32xf32, #tpu.memory_space<vmem>>, vector<1x1x32xf32>
    %565 = vector.shape_cast %564 : vector<1x1x32xf32> to vector<1x32xf32>
    %c5_242 = arith.constant 5 : index
    %c0_243 = arith.constant 0 : index
    %c0_244 = arith.constant 0 : index
    %566 = vector.load %arg14[%c5_242, %c0_243, %c0_244] : memref<6x1x32xf32, #tpu.memory_space<vmem>>, vector<1x1x32xf32>
    %567 = vector.shape_cast %566 : vector<1x1x32xf32> to vector<1x32xf32>
    %cst_245 = arith.constant dense<0.000000e+00> : vector<24xf32>
    %568 = vector.multi_reduction <add>, %563, %cst_245 [1] : vector<24x32xf32> to vector<24xf32>
    %569 = vector.shape_cast %568 : vector<24xf32> to vector<24x1xf32>
    %cst_246 = arith.constant 3.200000e+01 : f32
    %570 = vector.broadcast %cst_246 : f32 to vector<24x1xf32>
    %571 = arith.divf %569, %570 : vector<24x1xf32>
    %572 = vector.broadcast %571 : vector<24x1xf32> to vector<24x32xf32>
    %573 = arith.subf %563, %572 : vector<24x32xf32>
    %574 = arith.mulf %573, %573 : vector<24x32xf32>
    %cst_247 = arith.constant dense<0.000000e+00> : vector<24xf32>
    %575 = vector.multi_reduction <add>, %574, %cst_247 [1] : vector<24x32xf32> to vector<24xf32>
    %576 = vector.shape_cast %575 : vector<24xf32> to vector<24x1xf32>
    %cst_248 = arith.constant 3.200000e+01 : f32
    %577 = vector.broadcast %cst_248 : f32 to vector<24x1xf32>
    %578 = arith.divf %576, %577 : vector<24x1xf32>
    %cst_249 = arith.constant 9.99999974E-6 : f32
    %579 = vector.broadcast %cst_249 : f32 to vector<24x1xf32>
    %580 = arith.addf %578, %579 : vector<24x1xf32>
    %581 = math.rsqrt %580 : vector<24x1xf32>
    %582 = vector.broadcast %581 : vector<24x1xf32> to vector<24x32xf32>
    %583 = arith.mulf %573, %582 : vector<24x32xf32>
    %584 = vector.broadcast %565 : vector<1x32xf32> to vector<24x32xf32>
    %585 = arith.mulf %583, %584 : vector<24x32xf32>
    %586 = vector.broadcast %567 : vector<1x32xf32> to vector<24x32xf32>
    %587 = arith.addf %585, %586 : vector<24x32xf32>
    %588 = arith.index_cast %arg0 : i32 to index
    %589 = memref.load %arg2[%588] : memref<2xi32, #tpu.memory_space<smem>>
    %590 = tpu.iota {dimensions = array<i32: 1>} : vector<1x24xi32>
    %591 = vector.broadcast %589 : i32 to vector<1x24xi32>
    %592 = arith.cmpi eq, %590, %591 : vector<1x24xi32>
    %593 = arith.extui %592 : vector<1x24xi1> to vector<1x24xi32>
    %594 = arith.sitofp %593 : vector<1x24xi32> to vector<1x24xf32>
    %cst_250 = arith.constant dense<0.000000e+00> : vector<1x32xf32>
    %595 = tpu.matmul %594, %587, %cst_250 {dimension_numbers = #tpu.dot_dimension_numbers<[1], [0], [0], [1], [0, 0, 1, 1], [], []>} : vector<1x24xf32>, vector<24x32xf32>, vector<1x32xf32> -> vector<1x32xf32>
    %c0_251 = arith.constant 0 : index
    %c0_252 = arith.constant 0 : index
    %596 = vector.load %arg19[%c0_251, %c0_252] : memref<32x32xf32, #tpu.memory_space<vmem>>, vector<32x32xf32>
    %cst_253 = arith.constant dense<0.000000e+00> : vector<1x32xf32>
    %597 = tpu.matmul %595, %596, %cst_253 {dimension_numbers = #tpu.dot_dimension_numbers<[1], [0], [0], [1], [0, 0, 1, 1], [], []>} : vector<1x32xf32>, vector<32x32xf32>, vector<1x32xf32> -> vector<1x32xf32>
    %c0_254 = arith.constant 0 : index
    %c0_255 = arith.constant 0 : index
    %598 = vector.load %arg20[%c0_254, %c0_255] : memref<1x32xf32, #tpu.memory_space<vmem>>, vector<1x32xf32>
    %599 = arith.addf %597, %598 : vector<1x32xf32>
    %600 = vector.broadcast %599 : vector<1x32xf32> to vector<24x32xf32>
    %601 = arith.addf %587, %600 : vector<24x32xf32>
    %c0_256 = arith.constant 0 : index
    %c0_257 = arith.constant 0 : index
    %602 = vector.load %arg21[%c0_256, %c0_257] : memref<1x32xf32, #tpu.memory_space<vmem>>, vector<1x32xf32>
    %c0_258 = arith.constant 0 : index
    %c0_259 = arith.constant 0 : index
    %603 = vector.load %arg22[%c0_258, %c0_259] : memref<1x32xf32, #tpu.memory_space<vmem>>, vector<1x32xf32>
    %cst_260 = arith.constant dense<0.000000e+00> : vector<24xf32>
    %604 = vector.multi_reduction <add>, %601, %cst_260 [1] : vector<24x32xf32> to vector<24xf32>
    %605 = vector.shape_cast %604 : vector<24xf32> to vector<24x1xf32>
    %cst_261 = arith.constant 3.200000e+01 : f32
    %606 = vector.broadcast %cst_261 : f32 to vector<24x1xf32>
    %607 = arith.divf %605, %606 : vector<24x1xf32>
    %608 = vector.broadcast %607 : vector<24x1xf32> to vector<24x32xf32>
    %609 = arith.subf %601, %608 : vector<24x32xf32>
    %610 = arith.mulf %609, %609 : vector<24x32xf32>
    %cst_262 = arith.constant dense<0.000000e+00> : vector<24xf32>
    %611 = vector.multi_reduction <add>, %610, %cst_262 [1] : vector<24x32xf32> to vector<24xf32>
    %612 = vector.shape_cast %611 : vector<24xf32> to vector<24x1xf32>
    %cst_263 = arith.constant 3.200000e+01 : f32
    %613 = vector.broadcast %cst_263 : f32 to vector<24x1xf32>
    %614 = arith.divf %612, %613 : vector<24x1xf32>
    %cst_264 = arith.constant 9.99999974E-6 : f32
    %615 = vector.broadcast %cst_264 : f32 to vector<24x1xf32>
    %616 = arith.addf %614, %615 : vector<24x1xf32>
    %617 = math.rsqrt %616 : vector<24x1xf32>
    %618 = vector.broadcast %617 : vector<24x1xf32> to vector<24x32xf32>
    %619 = arith.mulf %609, %618 : vector<24x32xf32>
    %620 = vector.broadcast %602 : vector<1x32xf32> to vector<24x32xf32>
    %621 = arith.mulf %619, %620 : vector<24x32xf32>
    %622 = vector.broadcast %603 : vector<1x32xf32> to vector<24x32xf32>
    %623 = arith.addf %621, %622 : vector<24x32xf32>
    %624 = vector.extract_strided_slice %623 {offsets = [0, 0], sizes = [8, 32], strides = [1, 1]} : vector<24x32xf32> to vector<8x32xf32>
    %625 = vector.extract_strided_slice %623 {offsets = [8, 0], sizes = [8, 32], strides = [1, 1]} : vector<24x32xf32> to vector<8x32xf32>
    %626 = arith.addf %624, %625 : vector<8x32xf32>
    %627 = vector.extract_strided_slice %623 {offsets = [16, 0], sizes = [8, 32], strides = [1, 1]} : vector<24x32xf32> to vector<8x32xf32>
    %628 = arith.addf %626, %627 : vector<8x32xf32>
    %cst_265 = arith.constant 0.333333343 : f32
    %629 = vector.broadcast %cst_265 : f32 to vector<8x32xf32>
    %630 = arith.mulf %628, %629 : vector<8x32xf32>
    %cst_266 = arith.constant dense<0.000000e+00> : vector<32xf32>
    %631 = vector.multi_reduction <add>, %630, %cst_266 [0] : vector<8x32xf32> to vector<32xf32>
    %632 = vector.shape_cast %631 : vector<32xf32> to vector<1x32xf32>
    %cst_267 = arith.constant 8.000000e+00 : f32
    %633 = vector.broadcast %cst_267 : f32 to vector<1x32xf32>
    %634 = arith.divf %632, %633 : vector<1x32xf32>
    %c0_268 = arith.constant 0 : index
    %c0_269 = arith.constant 0 : index
    %635 = vector.load %arg23[%c0_268, %c0_269] : memref<32x32xf32, #tpu.memory_space<vmem>>, vector<32x32xf32>
    %cst_270 = arith.constant dense<0.000000e+00> : vector<1x32xf32>
    %636 = tpu.matmul %634, %635, %cst_270 {dimension_numbers = #tpu.dot_dimension_numbers<[1], [0], [0], [1], [0, 0, 1, 1], [], []>} : vector<1x32xf32>, vector<32x32xf32>, vector<1x32xf32> -> vector<1x32xf32>
    %c0_271 = arith.constant 0 : index
    %c0_272 = arith.constant 0 : index
    %637 = vector.load %arg24[%c0_271, %c0_272] : memref<1x32xf32, #tpu.memory_space<vmem>>, vector<1x32xf32>
    %638 = arith.addf %636, %637 : vector<1x32xf32>
    %c0_273 = arith.constant 0 : index
    %c0_274 = arith.constant 0 : index
    %639 = vector.load %arg25[%c0_273, %c0_274] : memref<32x32xf32, #tpu.memory_space<vmem>>, vector<32x32xf32>
    %cst_275 = arith.constant dense<0.000000e+00> : vector<8x32xf32>
    %640 = tpu.matmul %630, %639, %cst_275 {dimension_numbers = #tpu.dot_dimension_numbers<[1], [0], [0], [1], [0, 0, 1, 1], [], []>} : vector<8x32xf32>, vector<32x32xf32>, vector<8x32xf32> -> vector<8x32xf32>
    %c0_276 = arith.constant 0 : index
    %c0_277 = arith.constant 0 : index
    %641 = vector.load %arg26[%c0_276, %c0_277] : memref<1x32xf32, #tpu.memory_space<vmem>>, vector<1x32xf32>
    %642 = vector.broadcast %641 : vector<1x32xf32> to vector<8x32xf32>
    %643 = arith.addf %640, %642 : vector<8x32xf32>
    %644 = tpu.transpose %643, [1, 0] : vector<8x32xf32> -> vector<32x8xf32>
    %cst_278 = arith.constant dense<0.000000e+00> : vector<1x8xf32>
    %645 = tpu.matmul %638, %644, %cst_278 {dimension_numbers = #tpu.dot_dimension_numbers<[1], [0], [0], [1], [0, 0, 1, 1], [], []>} : vector<1x32xf32>, vector<32x8xf32>, vector<1x8xf32> -> vector<1x8xf32>
    %cst_279 = arith.constant 0.176776692 : f32
    %646 = vector.broadcast %cst_279 : f32 to vector<1x8xf32>
    %647 = arith.mulf %645, %646 : vector<1x8xf32>
    %648 = math.tanh %647 : vector<1x8xf32>
    %cst_280 = arith.constant 1.000000e+01 : f32
    %649 = vector.broadcast %cst_280 : f32 to vector<1x8xf32>
    %650 = arith.mulf %649, %648 : vector<1x8xf32>
    %c0_281 = arith.constant 0 : index
    %c0_282 = arith.constant 0 : index
    %c0_283 = arith.constant 0 : index
    %651 = vector.load %arg4[%c0_281, %c0_282, %c0_283] : memref<1x1x8xf32, #tpu.memory_space<vmem>>, vector<1x1x8xf32>
    %652 = vector.shape_cast %651 : vector<1x1x8xf32> to vector<1x8xf32>
    %cst_284 = arith.constant 0.000000e+00 : f32
    %653 = vector.broadcast %cst_284 : f32 to vector<1x8xf32>
    %654 = arith.cmpf ogt, %652, %653 : vector<1x8xf32>
    %cst_285 = arith.constant -1.000000e+09 : f32
    %655 = vector.broadcast %cst_285 : f32 to vector<1x8xf32>
    %656 = arith.select %654, %655, %650 : vector<1x8xi1>, vector<1x8xf32>
    %c0_286 = arith.constant 0 : index
    %c0_287 = arith.constant 0 : index
    %c0_288 = arith.constant 0 : index
    %657 = vector.load %arg27[%c0_286, %c0_287, %c0_288] : memref<1x1x8xf32, #tpu.memory_space<vmem>>, vector<1x1x8xf32>
    %658 = vector.shape_cast %657 : vector<1x1x8xf32> to vector<1x8xf32>
    %659 = vector.shape_cast %656 : vector<1x8xf32> to vector<1x1x8xf32>
    tpu.vector_store %arg27[%c0_286, %c0_287, %c0_288], %659 {strides = array<i32>} : memref<1x1x8xf32, #tpu.memory_space<vmem>>, vector<1x1x8xf32>,
    return
  }
  func.func @transform_0(%arg0: i32, %arg1: memref<2xi32, #tpu.memory_space<smem>>, %arg2: memref<2xi32, #tpu.memory_space<smem>>) -> (i32, i32, i32) {
    %c0_i32 = arith.constant 0 : i32
    %c0_i32_0 = arith.constant 0 : i32
    %c0_i32_1 = arith.constant 0 : i32
    return %arg0, %c0_i32, %c0_i32_0 : i32, i32, i32
  }
  func.func @transform_1(%arg0: i32, %arg1: memref<2xi32, #tpu.memory_space<smem>>, %arg2: memref<2xi32, #tpu.memory_space<smem>>) -> (i32, i32, i32) {
    %c0_i32 = arith.constant 0 : i32
    %c0_i32_0 = arith.constant 0 : i32
    %c0_i32_1 = arith.constant 0 : i32
    return %arg0, %c0_i32, %c0_i32_0 : i32, i32, i32
  }
  func.func @transform_2(%arg0: i32, %arg1: memref<2xi32, #tpu.memory_space<smem>>, %arg2: memref<2xi32, #tpu.memory_space<smem>>) -> (i32, i32) {
    %c0_i32 = arith.constant 0 : i32
    %c0_i32_0 = arith.constant 0 : i32
    %c0_i32_1 = arith.constant 0 : i32
    return %c0_i32, %c0_i32_0 : i32, i32
  }
  func.func @transform_3(%arg0: i32, %arg1: memref<2xi32, #tpu.memory_space<smem>>, %arg2: memref<2xi32, #tpu.memory_space<smem>>) -> (i32, i32) {
    %c0_i32 = arith.constant 0 : i32
    %c0_i32_0 = arith.constant 0 : i32
    %c0_i32_1 = arith.constant 0 : i32
    return %c0_i32, %c0_i32_0 : i32, i32
  }
  func.func @transform_4(%arg0: i32, %arg1: memref<2xi32, #tpu.memory_space<smem>>, %arg2: memref<2xi32, #tpu.memory_space<smem>>) -> (i32, i32) {
    %c0_i32 = arith.constant 0 : i32
    %c0_i32_0 = arith.constant 0 : i32
    %c0_i32_1 = arith.constant 0 : i32
    return %c0_i32, %c0_i32_0 : i32, i32
  }
  func.func @transform_5(%arg0: i32, %arg1: memref<2xi32, #tpu.memory_space<smem>>, %arg2: memref<2xi32, #tpu.memory_space<smem>>) -> (i32, i32) {
    %c0_i32 = arith.constant 0 : i32
    %c0_i32_0 = arith.constant 0 : i32
    %c0_i32_1 = arith.constant 0 : i32
    return %c0_i32, %c0_i32_0 : i32, i32
  }
  func.func @transform_6(%arg0: i32, %arg1: memref<2xi32, #tpu.memory_space<smem>>, %arg2: memref<2xi32, #tpu.memory_space<smem>>) -> (i32, i32, i32) {
    %c0_i32 = arith.constant 0 : i32
    %c0_i32_0 = arith.constant 0 : i32
    %c0_i32_1 = arith.constant 0 : i32
    %c0_i32_2 = arith.constant 0 : i32
    return %c0_i32, %c0_i32_0, %c0_i32_1 : i32, i32, i32
  }
  func.func @transform_7(%arg0: i32, %arg1: memref<2xi32, #tpu.memory_space<smem>>, %arg2: memref<2xi32, #tpu.memory_space<smem>>) -> (i32, i32, i32) {
    %c0_i32 = arith.constant 0 : i32
    %c0_i32_0 = arith.constant 0 : i32
    %c0_i32_1 = arith.constant 0 : i32
    %c0_i32_2 = arith.constant 0 : i32
    return %c0_i32, %c0_i32_0, %c0_i32_1 : i32, i32, i32
  }
  func.func @transform_8(%arg0: i32, %arg1: memref<2xi32, #tpu.memory_space<smem>>, %arg2: memref<2xi32, #tpu.memory_space<smem>>) -> (i32, i32, i32) {
    %c0_i32 = arith.constant 0 : i32
    %c0_i32_0 = arith.constant 0 : i32
    %c0_i32_1 = arith.constant 0 : i32
    %c0_i32_2 = arith.constant 0 : i32
    return %c0_i32, %c0_i32_0, %c0_i32_1 : i32, i32, i32
  }
  func.func @transform_9(%arg0: i32, %arg1: memref<2xi32, #tpu.memory_space<smem>>, %arg2: memref<2xi32, #tpu.memory_space<smem>>) -> (i32, i32, i32) {
    %c0_i32 = arith.constant 0 : i32
    %c0_i32_0 = arith.constant 0 : i32
    %c0_i32_1 = arith.constant 0 : i32
    %c0_i32_2 = arith.constant 0 : i32
    return %c0_i32, %c0_i32_0, %c0_i32_1 : i32, i32, i32
  }
  func.func @transform_10(%arg0: i32, %arg1: memref<2xi32, #tpu.memory_space<smem>>, %arg2: memref<2xi32, #tpu.memory_space<smem>>) -> (i32, i32, i32) {
    %c0_i32 = arith.constant 0 : i32
    %c0_i32_0 = arith.constant 0 : i32
    %c0_i32_1 = arith.constant 0 : i32
    %c0_i32_2 = arith.constant 0 : i32
    return %c0_i32, %c0_i32_0, %c0_i32_1 : i32, i32, i32
  }
  func.func @transform_11(%arg0: i32, %arg1: memref<2xi32, #tpu.memory_space<smem>>, %arg2: memref<2xi32, #tpu.memory_space<smem>>) -> (i32, i32, i32) {
    %c0_i32 = arith.constant 0 : i32
    %c0_i32_0 = arith.constant 0 : i32
    %c0_i32_1 = arith.constant 0 : i32
    %c0_i32_2 = arith.constant 0 : i32
    return %c0_i32, %c0_i32_0, %c0_i32_1 : i32, i32, i32
  }
  func.func @transform_12(%arg0: i32, %arg1: memref<2xi32, #tpu.memory_space<smem>>, %arg2: memref<2xi32, #tpu.memory_space<smem>>) -> (i32, i32, i32) {
    %c0_i32 = arith.constant 0 : i32
    %c0_i32_0 = arith.constant 0 : i32
    %c0_i32_1 = arith.constant 0 : i32
    %c0_i32_2 = arith.constant 0 : i32
    return %c0_i32, %c0_i32_0, %c0_i32_1 : i32, i32, i32
  }
  func.func @transform_13(%arg0: i32, %arg1: memref<2xi32, #tpu.memory_space<smem>>, %arg2: memref<2xi32, #tpu.memory_space<smem>>) -> (i32, i32, i32) {
    %c0_i32 = arith.constant 0 : i32
    %c0_i32_0 = arith.constant 0 : i32
    %c0_i32_1 = arith.constant 0 : i32
    %c0_i32_2 = arith.constant 0 : i32
    return %c0_i32, %c0_i32_0, %c0_i32_1 : i32, i32, i32
  }
  func.func @transform_14(%arg0: i32, %arg1: memref<2xi32, #tpu.memory_space<smem>>, %arg2: memref<2xi32, #tpu.memory_space<smem>>) -> (i32, i32, i32) {
    %c0_i32 = arith.constant 0 : i32
    %c0_i32_0 = arith.constant 0 : i32
    %c0_i32_1 = arith.constant 0 : i32
    %c0_i32_2 = arith.constant 0 : i32
    return %c0_i32, %c0_i32_0, %c0_i32_1 : i32, i32, i32
  }
  func.func @transform_15(%arg0: i32, %arg1: memref<2xi32, #tpu.memory_space<smem>>, %arg2: memref<2xi32, #tpu.memory_space<smem>>) -> (i32, i32, i32) {
    %c0_i32 = arith.constant 0 : i32
    %c0_i32_0 = arith.constant 0 : i32
    %c0_i32_1 = arith.constant 0 : i32
    %c0_i32_2 = arith.constant 0 : i32
    return %c0_i32, %c0_i32_0, %c0_i32_1 : i32, i32, i32
  }
  func.func @transform_16(%arg0: i32, %arg1: memref<2xi32, #tpu.memory_space<smem>>, %arg2: memref<2xi32, #tpu.memory_space<smem>>) -> (i32, i32) {
    %c0_i32 = arith.constant 0 : i32
    %c0_i32_0 = arith.constant 0 : i32
    %c0_i32_1 = arith.constant 0 : i32
    return %c0_i32, %c0_i32_0 : i32, i32
  }
  func.func @transform_17(%arg0: i32, %arg1: memref<2xi32, #tpu.memory_space<smem>>, %arg2: memref<2xi32, #tpu.memory_space<smem>>) -> (i32, i32) {
    %c0_i32 = arith.constant 0 : i32
    %c0_i32_0 = arith.constant 0 : i32
    %c0_i32_1 = arith.constant 0 : i32
    return %c0_i32, %c0_i32_0 : i32, i32
  }
  func.func @transform_18(%arg0: i32, %arg1: memref<2xi32, #tpu.memory_space<smem>>, %arg2: memref<2xi32, #tpu.memory_space<smem>>) -> (i32, i32) {
    %c0_i32 = arith.constant 0 : i32
    %c0_i32_0 = arith.constant 0 : i32
    %c0_i32_1 = arith.constant 0 : i32
    return %c0_i32, %c0_i32_0 : i32, i32
  }
  func.func @transform_19(%arg0: i32, %arg1: memref<2xi32, #tpu.memory_space<smem>>, %arg2: memref<2xi32, #tpu.memory_space<smem>>) -> (i32, i32) {
    %c0_i32 = arith.constant 0 : i32
    %c0_i32_0 = arith.constant 0 : i32
    %c0_i32_1 = arith.constant 0 : i32
    return %c0_i32, %c0_i32_0 : i32, i32
  }
  func.func @transform_20(%arg0: i32, %arg1: memref<2xi32, #tpu.memory_space<smem>>, %arg2: memref<2xi32, #tpu.memory_space<smem>>) -> (i32, i32) {
    %c0_i32 = arith.constant 0 : i32
    %c0_i32_0 = arith.constant 0 : i32
    %c0_i32_1 = arith.constant 0 : i32
    return %c0_i32, %c0_i32_0 : i32, i32
  }
  func.func @transform_21(%arg0: i32, %arg1: memref<2xi32, #tpu.memory_space<smem>>, %arg2: memref<2xi32, #tpu.memory_space<smem>>) -> (i32, i32) {
    %c0_i32 = arith.constant 0 : i32
    %c0_i32_0 = arith.constant 0 : i32
    %c0_i32_1 = arith.constant 0 : i32
    return %c0_i32, %c0_i32_0 : i32, i32
  }
  func.func @transform_22(%arg0: i32, %arg1: memref<2xi32, #tpu.memory_space<smem>>, %arg2: memref<2xi32, #tpu.memory_space<smem>>) -> (i32, i32) {
    %c0_i32 = arith.constant 0 : i32
    %c0_i32_0 = arith.constant 0 : i32
    %c0_i32_1 = arith.constant 0 : i32
    return %c0_i32, %c0_i32_0 : i32, i32
  }
  func.func @transform_23(%arg0: i32, %arg1: memref<2xi32, #tpu.memory_space<smem>>, %arg2: memref<2xi32, #tpu.memory_space<smem>>) -> (i32, i32) {
    %c0_i32 = arith.constant 0 : i32
    %c0_i32_0 = arith.constant 0 : i32
    %c0_i32_1 = arith.constant 0 : i32
    return %c0_i32, %c0_i32_0 : i32, i32
  }
  func.func @transform_24(%arg0: i32, %arg1: memref<2xi32, #tpu.memory_space<smem>>, %arg2: memref<2xi32, #tpu.memory_space<smem>>) -> (i32, i32, i32) {
    %c0_i32 = arith.constant 0 : i32
    %c0_i32_0 = arith.constant 0 : i32
    %c0_i32_1 = arith.constant 0 : i32
    return %arg0, %c0_i32, %c0_i32_0 : i32, i32, i32
  }
}

</mosaic_0001>

<bundles_post_ra>
// kernel: dgta_forward.1
= control target key start
LH: loop header
LB: loop body
LE: loop exit
PB: predicated region body
PF: predicated region fallthrough
CT: control target
= control target key end

     0   :  { %s12210_s0 = inlined_call_operand.vmem [shape: s32[2], index: 0, kind: input, shape index: {}]   ;;  %s12211_s2 = inlined_call_operand.vmem [shape: f32[2,8,2], index: 2, kind: input, shape index: {}]   ;;  %s12212_s3 = inlined_call_operand.vmem [shape: f32[2,1,8], index: 3, kind: input, shape index: {}]   ;;  %s12213_s4 = inlined_call_operand.vmem [shape: f32[24,16], index: 4, kind: input, shape index: {}]   ;;  %s12214_s5 = inlined_call_operand.vmem [shape: f32[8,32], index: 5, kind: input, shape index: {}]   ;;  %s12215_s6 = inlined_call_operand.vmem [shape: f32[2,16], index: 6, kind: input, shape index: {}]   ;;  %s12216_s7 = inlined_call_operand.vmem [shape: f32[1,16], index: 7, kind: input, shape index: {}]   ;;  %s12217_s8 = inlined_call_operand.vmem [shape: f32[4,32,96], index: 8, kind: input, shape index: {}]   ;;  %s12218_s9 = inlined_call_operand.vmem [shape: f32[4,1,96], index: 9, kind: input, shape index: {}]   ;;  %s12219_s10 = inlined_call_operand.vmem [shape: f32[4,32,32], index: 10, kind: input, shape index: {}]   ;;  %s12220_s11 = inlined_call_operand.vmem [shape: f32[4,1,32], index: 11, kind: input, shape index: {}]   ;;  %s12221_s12 = inlined_call_operand.vmem [shape: f32[6,1,32], index: 12, kind: input, shape index: {}]   ;;  %s12222_s13 = inlined_call_operand.vmem [shape: f32[6,1,32], index: 13, kind: input, shape index: {}]   ;;  %s12223_s14 = inlined_call_operand.vmem [shape: f32[2,32,128], index: 14, kind: input, shape index: {}]   ;;  %s12224_s15 = inlined_call_operand.vmem [shape: f32[2,1,128], index: 15, kind: input, shape index: {}]   ;;  %s12225_s16 = inlined_call_operand.vmem [shape: f32[2,128,32], index: 16, kind: input, shape index: {}]   ;;  %s12226_s17 = inlined_call_operand.vmem [shape: f32[2,1,32], index: 17, kind: input, shape index: {}]   ;;  %s12227_s18 = inlined_call_operand.vmem [shape: f32[32,32], index: 18, kind: input, shape index: {}]   ;;  %s12228_s19 = inlined_call_operand.vmem [shape: f32[1,32], index: 19, kind: input, shape index: {}]   ;;  %s12229_s20 = inlined_call_operand.vmem [shape: f32[1,32], index: 20, kind: input, shape index: {}]   ;;  %s12230_s21 = inlined_call_operand.vmem [shape: f32[1,32], index: 21, kind: input, shape index: {}]   ;;  %s12231_s22 = inlined_call_operand.vmem [shape: f32[32,32], index: 22, kind: input, shape index: {}]   ;;  %s12232_s23 = inlined_call_operand.vmem [shape: f32[1,32], index: 23, kind: input, shape index: {}]   ;;  %s12233_s24 = inlined_call_operand.vmem [shape: f32[32,32], index: 24, kind: input, shape index: {}]   ;;  %s12234_s25 = inlined_call_operand.vmem [shape: f32[1,32], index: 25, kind: input, shape index: {}]   ;;  %s12235_s26 = inlined_call_operand.hbm [shape: f32[2,1,8], index: 26, kind: output, shape index: {}]   ;;  %s12236_s1 = inlined_call_operand.vmem [shape: s32[2], index: 1, kind: input, shape index: {}]  }
   0x1   :  { %12281 = sst [smem:[#allocation19_spill]] %s12210_s0 }
   0x2   :  { %12282 = sst [smem:[#allocation20_spill]] %s12211_s2 }
   0x3   :  { %12283 = sst [smem:[#allocation21_spill]] %s12212_s3 }
   0x4   :  { %12284 = sst [smem:[#allocation22_spill]] %s12213_s4 }
   0x5   :  { %12285 = sst [smem:[#allocation23_spill]] %s12214_s5  ;;  %s35_s5 = sshll.u32 %s12236_s1, 4  ;;  %s36_s5 = int_to_ptr.vmem [resolvable:$true] %s35_s5 }
   0x6   :  { %12286 = sst [smem:[#allocation24_spill]] %s12215_s6 }
   0x7   :  { %12287 = sst [smem:[#allocation25_spill]] %s12216_s7 }
   0x8   :  { %12288 = sst [smem:[#allocation26_spill]] %s12217_s8  ;;  %s12301_s8 = sld [smem:[#allocation19_spill]] }
   0x9   :  { %12289 = sst [smem:[#allocation27_spill]] %s12218_s9 }
   0xa   :  { %12290 = sst [smem:[#allocation28_spill]] %s12219_s10 }
   0xb   :  { %12291 = sst [smem:[#allocation29_spill]] %s12220_s11 }
   0xc   :  { %12292 = sst [smem:[#allocation30_spill]] %s12227_s18 }
   0xd   :  { %12293 = sst [smem:[#allocation31_spill]] %s12228_s19 }
   0xe   :  { %12294 = sst [smem:[#allocation32_spill]] %s12229_s20 }
   0xf   :  { %12295 = sst [smem:[#allocation33_spill]] %s12230_s21  ;;  %s31_s21 = sshll.u32 %s12301_s8, 4  ;;  %s32_s21 = int_to_ptr.vmem [resolvable:$true] %s31_s21 }
  0x10   :  { %12296 = sst [smem:[#allocation34_spill]] %s12231_s22  ;;  %s10260_s29 = scalar_lea.vmem %s32_s21, 16 }
  0x11   :  { %12297 = sst [smem:[#allocation35_spill]] %s12232_s23  ;;  %p10261_p0 = scmp.ne.s32.totalorder %s32_s21, %s10260_s29 }
  0x12   :  { %12298 = sst [smem:[#allocation36_spill]] %s12233_s24  ;;  %p10265_p1 = scmp.lt.s32.totalorder %s32_s21, %s32_s21 }
  0x13   :  { %12299 = sst [smem:[#allocation37_spill]] %s12234_s25  ;;  %p10266_p2 = scmp.lt.s32.totalorder %s10260_s29, %s10260_s29 }
  0x14   :  { %12300 = sst [smem:[#allocation38_spill]] %s12235_s26 }
  0x15   :  { %p10267_p3 = por %p10266_p2, %p10265_p1 }
  0x17   :  { %p10268_p4 = pnand %p10267_p3, %p10261_p0 }
  0x19   :  { %10271 = shalt.err (!%p10268_p4)  }
  0x1a   :  { %s10350_s0 = smov [#allocation3]   ;;  %s10272_s10 = scalar_lea.vmem %s36_s5, 16 }
  0x1b   :  { %34 = dma.vmem_to_smem %s32_s21, 16, %s10350_s0, [#allocation2] }
  0x1c   :  { %p10273_p5 = scmp.ne.s32.totalorder %s36_s5, %s10272_s10  ;;  %p10277_p6 = scmp.lt.s32.totalorder %s36_s5, %s36_s5 }
  0x1d   :  { %p10278_p7 = scmp.lt.s32.totalorder %s10272_s10, %s10272_s10 }
  0x1f   :  { %p10279_p8 = por %p10278_p7, %p10277_p6 }
  0x21   :  { %p10280_p9 = pnand %p10279_p8, %p10273_p5 }
  0x23   :  { %10283 = shalt.err (!%p10280_p9)  }
  0x24   :  { %s10351_s30 = smov [#allocation4]  }
  0x25   :  { %38 = dma.vmem_to_smem %s36_s5, 16, %s10351_s30, [#allocation2] }
  0x26   :  { %10328 = dma.done.wait [#allocation2], 32 }
  0x27   :  { %10329 = vsyncadd [#allocation2], 4294967264 }
  0x28   :  { %40 = sfence }
  0x29   :  { %41 = vsyncpa [#allocation6], 0 }
  0x2a   :  { %43 = vsyncpa [#allocation6 + $0x1], 0  ;;  %s10509_s1 = smov 0   ;;  %s10511_s3 = smov 0  }
  0x2b   :  { %s10513_s6 = smov 0   ;;  %s10515_s21 = smov 0  }
  0x2c LB: > { %12302 = sst [smem:[#allocation9_spill]] %s10336_s1  ;;  %s10530_s11 = sadd.s32 4294967295, %s10348_s21   ;;  %s10348_s21 = sphi %s10515_s21, %s12355_s21   ;;  %s10344_s6 = sphi %s10513_s6, %s12358_s6   ;;  %s10340_s3 = sphi %s10511_s3, %s12357_s3   ;;  %s10336_s1 = sphi %s10509_s1, %s12356_s1  }
  0x2d   : > { %12303 = sst [smem:[#allocation10_spill]] %s10340_s3  ;;  %s8005_s7 = sadd.s32 4294967294, %s10348_s21  }
  0x2e   : > { %12304 = sst [smem:[#allocation11_spill]] %s10344_s6  ;;  %s10534_s2 = sadd.s32 1, %s10348_s21  }
  0x2f   : > { %12305 = sst [smem:[#allocation12_spill]] %s10348_s21  ;;  %s570_s27 = sadd.s32 1, %s10344_s6 }
  0x30   : > { %12306 = sst [smem:[#allocation13_spill]] %s10530_s11  ;;  %s567_s4 = ssub.s32 %s10348_s21, %s10534_s2 }
  0x31   : > { %12307 = sst [smem:[#allocation14_spill]] %s10534_s2  ;;  %p580_p10 = scmp.ne.s32.totalorder %s10344_s6, %s10340_s3 }
  0x32   : > { %p568_p11 = scmp.eq.s32.totalorder %s567_s4, 0  ;;  %p581_p12 = scmp.eq.s32.totalorder %s10530_s11, 1 }
  0x33   : > { %p586_p13 = scmp.ne.s32.totalorder %s10340_s3, %s10336_s1  ;;  %p587_p0 = scmp.eq.s32.totalorder %s8005_s7, 1 }
  0x34   : > { %s10545_s8 = scalar_select %p568_p11, %s10344_s6, %s570_s27  }
  0x35   : > { %p10547_p1 = por %p581_p12, %p580_p10  ;;  %p10551_p2 = por %p587_p0, %p586_p13 }
  0x36   : > { %12308 = sst [smem:[#allocation15_spill]] %s10545_s8  ;;  %p8008_p3 = scmp.ge.s32.totalorder %s10348_s21, 1 }
  0x37   : > { %s12309_s28 = scalar_select %p10547_p1, 1, 0 }
  0x38   : > { %s12311_s9 = scalar_select %p10551_p2, 1, 0 }
  0x39   : > { %12310 = sst [smem:[#allocation16_spill]] %s12309_s28  ;;  %p684_p4 = scmp.lt.s32.totalorder %s10348_s21, 3 }
  0x3a   : > { %12312 = sst [smem:[#allocation17_spill]] %s12311_s9 }
  0x3b   : > { %p685_p5 = pnand %p8008_p3, %p684_p4 }
  0x3d   : > { %688 = sbr.rel (%p685_p5) target bundleno = 15088 (0x3af0), region = 116 }
  0x44   : > { %s12313_s0 = sld [smem:[#allocation22_spill]]  ;;  %v846_v2 = vlaneseq  ;;  %v10352_v3 = vmov 0.0|0.0   ;;  %vm10353_vm0 = vmmov 0   ;;  %v10354_v5 = vmov 0.0   ;;  %s12314_s5 = sld [smem:[#allocation24_spill]] }
  0x45   : > { %9588 = vmatprep.subr.bf16.mxu1 %v10352_v3  ;;  %8698 = vmatprep.mubr.msk.f32.mxu1 %vm10353_vm0, %v10354_v5  ;;  %s845_s7 = sld [smem:[#allocation3 + %s10530_s11]]  ;;  %vm771_vm1 = vcmask 1041408   ;;  %p751_p6 = scmp.lt.s32.totalorder %s10530_s11, 1  ;;  %vm767_vm2 = vcmask 15360   ;;  %vm855_vm3 = vcmask 195584   ;;  %vm937_vm5 = vcmask 130048  }
  0x46   : > { %8687 = vmatprep.subr.mxu0 %v10354_v5  ;;  %8689 = vmatprep.mubr.msk.f32.mxu0 %vm10353_vm0, %v10354_v5  ;;  %v10578_v8 = vand.u32 127, %v846_v2  ;;  %s12316_s8 = sld [smem:[#allocation20_spill]]  ;;  %s12317_s10 = sld [smem:[#allocation26_spill]]  ;;  %v10610_v18 = vshrl.u32 %v846_v2, 7  ;;  %vm957_vm6 = vcmask 261120   ;;  %vm1050_vm7 = vcmask 64512  }
  0x47   : > { %s10581_s30 = scalar_select %p751_p6, %s10530_s11, 1  ;;  %vm10664_vm8 = vmpackc.low %vm1050_vm7, %vm1050_vm7  ;;  %vm7926_vm11 = vcmask 57344  }
  0x48   : > { %v931_v19 = vsub.s32 0, %v10610_v18  ;;  %s12319_s4 = sld [smem:[#allocation23_spill]]  ;;  %s12320_s29 = sld [smem:[#allocation27_spill]] }
  0x49   : > { %12315 = sst [smem:[#allocation18_spill]] %s10581_s30  ;;  %s8009_s27 = sshll.u32 %s10581_s30, 3 }
  0x4a   : > { %v852_v0 = vld [vmem:[%s12313_s0] sm:$0xff]  ;;  %v853_v1 = vld [vmem:[%s12313_s0 + $0x8] sm:$0xff]  ;;  %v854_v7 = vld [vmem:[%s12313_s0 + $0x10] sm:$0xff]  ;;  %s12264_s0 = smov 96   ;;  %s12327_s2 = smov 120  }
  0x4b   : > { %v9589_v4 = vpack.c.bf16 %v853_v1, %v852_v0  ;;  %v759_v6 = vld [vmem:[%s12314_s5] sm:$0x3]  ;;  %v848_v9 = vstv %s845_s7  ;;  %s10355_s7 = smov 16   ;;  %s12246_s5 = smov 80  }
  0x4c   : > { %8688 = vmatpush3.msk.msra.mxu0 %vm771_vm1, %v759_v6  ;;  %s754_s6 = scalar_lea.vmem %s12316_s8, %s8009_s27  ;;  %vm849_vm4 = vcmp.eq.s32.totalorder %v10578_v8, %v848_v9  ;;  %v941_v12 = vld [vmem:[%s12317_s10] sm:$0xff]  ;;  %v942_v13 = vld [vmem:[%s12317_s10 + $0x8] sm:$0xff]  ;;  %v943_v15 = vld [vmem:[%s12317_s10 + $0x10] sm:$0xff]  ;;  %s12318_s8 = sld [smem:[#allocation25_spill]] }
  0x4d   : > { %9590 = vmatpush3.bf16.msra.mxu1 %v9589_v4  ;;  %9591 = vmatprep.subr.bf16.mxu0 %v10352_v3  ;;  %v758_v10 = vld [vmem:[%s754_s6] sm:$0xff]  ;;  %v8013_v11 = vsel %vm849_vm4, 1.0, %v10354_v5  ;;  %v9592_v14 = vpack.c.bf16 %v942_v13, %v941_v12  ;;  %v944_v16 = vld [vmem:[%s12317_s10 + $0x18] sm:$0xff]  ;;  %s12252_s27 = smov 120   ;;  %s12250_s6 = smov 64  }
  0x4e   : > { %8696 = vmatprep.subr.mxu1 %v10354_v5  ;;  %8690 = vmatmul.mubr.msk.f32.vlgmr.msra.gmra.mrb[0].mxu0 %vm767_vm2, %v758_v10  ;;  %v9595_v17 = vpack.c.bf16 %v944_v16, %v943_v15  ;;  %v939_v27 = vld [vmem:[%s12319_s4] sm:$0xff]  ;;  %s12248_s4 = smov 56   ;;  %s12328_s1 = smov 64  }
  0x4f   : > { %8709 = vmatprep.mubr.msk.f32.mxu0 %vm10353_vm0, %v10354_v5  ;;  %9593 = vmatpush3.bf16.msra.mxu0 %v9592_v14  ;;  %v8015_v33 = vld [vmem:[%s12320_s29] ss:$0 sm:$0xff]  ;;  %s12329_s9 = smov 56   ;;  %s12332_s26 = smov 48  }
  0x50   : > { %9594 = vmatprep.subr.bf16.mxu0 %v10352_v3  ;;  %s12333_s21 = smov 72   ;;  %s12334_s28 = smov 104  }
  0x51   : > { %8697 = vmatpush3.msra.mxu1 %v854_v7  ;;  %s12335_s23 = smov 40   ;;  %s12336_s11 = sld [smem:[#allocation13_spill]] }
  0x52   : > { %9597 = vmatprep.subr.bf16.mxu1 %v10352_v3  ;;  %8699 = vmatmul.mubr.msk.f32.vlgmr.msra.gmra.mrb[0].mxu1 %vm855_vm3, %v8013_v11  ;;  %v8010_v25 = vld [vmem:[%s12318_s8] ss:$0 sm:$0xff]  ;;  %s12262_s8 = smov 88   ;;  %s12339_s25 = sld [smem:[#allocation31_spill]] }
  0x53   : > { %8724 = vmatprep.mubr.msk.f32.mxu1 %vm10353_vm0, %v10354_v5  ;;  %9596 = vmatpush3.bf16.msra.mxu0 %v9595_v17 }
  0x54   : > { %9601 = vmatprep.subr.bf16.mxu0 %v10352_v3 }
  0x57   : > { %s7448_s3 = sld [smem:[#allocation4 + %s12336_s11]]  ;;  %s8321_s20 = sshll.u32 %s12336_s11, 4 }
 0x121   : > { %v841_v20 = vpop.f32.mrb[0].mxu0 }
 0x122   : > { %v8691_v22 = vpop.f32.mrb[1].mxu0  ;;  %v842_v26 = vadd.f32 %v8010_v25, %v841_v20 }
 0x125   : > { %v925_v21 = vpop.f32.mrb[0].mxu1 }
 0x126   : > { %v932_v23 = vrot.slane %v925_v21, %v931_v19  ;;  %v8700_v24 = vpop.f32.mrb[1].mxu1 }
 0x128   : > { %934 = vrot.lane.b32.xlu0 %v932_v23, %s10355_s7  ;;  %s12244_s7 = smov 112  }
 0x19a   : > { %v935_v28 = vpop.permute.xlu0 %934 }
 0x19b   : > { %v938_v29 = vsel %vm937_vm5, %v842_v26, %v935_v28 }
 0x19c   : > { %v10621_v30 = vadd.f32 %v939_v27, %v938_v29 }
 0x19e   : > { %8710 = vmatmul.mubr.msk.f32.vlgmr.msra.gmra.mrb[2].mxu0 %vm957_vm6, %v10621_v30 }
 0x19f   : > { %8712 = vmatprep.mubr.msk.f32.mxu0 %vm10353_vm0, %v10354_v5 }
 0x1a2   : > { %8713 = vmatmul.mubr.msk.f32.gmra.mrb[4].mxu0 %vm957_vm6, %v10621_v30 }
 0x1a3   : > { %8715 = vmatprep.mubr.msk.f32.mxu0 %vm10353_vm0, %v10354_v5 }
 0x1a6   : > { %8716 = vmatmul.mubr.msk.f32.gmra.mrb[6].mxu0 %vm957_vm6, %v10621_v30 }
 0x1a7   : > { %8739 = vmatprep.mubr.msk.f32.mxu0 %vm10353_vm0, %v10354_v5 }
 0x271   : > { %v1027_v31 = vpop.f32.mrb[2].mxu0 }
 0x272   : > { %v8711_v32 = vpop.f32.mrb[3].mxu0  ;;  %v10638_v35 = vadd.f32 %v8015_v33, %v1027_v31 }
 0x275   : > { %v1032_v34 = vpop.f32.mrb[4].mxu0 }
 0x276   : > { %v10640_v36 = vadd.f32 %v8015_v33, %v1032_v34  ;;  %v8714_v37 = vpop.f32.mrb[5].mxu0 }
 0x278   : > { %v10644_v38 = vpack.i.bf16 %v10640_v36, %v10638_v35 }
 0x279   : > { %v1037_v39 = vpop.f32.mrb[6].mxu0 }
 0x27a   : > { %v10646_v40 = vadd.f32 %v8015_v33, %v1037_v39  ;;  %9865 = vrot.lane.b32.xlu0 %v10644_v38, %s12264_s0  ;;  %v8717_v41 = vpop.f32.mrb[7].mxu0 }
 0x27c   : > { %1048 = vrot.lane.b32.xlu1 %v10646_v40, %s12264_s0  ;;  %s12330_s0 = smov 80  }
 0x27e   : > { %1287 = vrot.lane.b32.xlu0 %v10646_v40, %s12262_s8 }
 0x280   : > { %9870 = vrot.lane.b32.xlu1 %v10644_v38, %s12262_s8  ;;  %s12331_s8 = smov 112  }
 0x282   : > { %1279 = vrot.lane.b32.xlu0 %v10640_v36, %s12252_s27 }
 0x284   : > { %1277 = vrot.lane.b32.xlu1 %v10638_v35, %s12252_s27 }
 0x288   : > { %1281 = vrot.lane.b32.xlu1 %v10646_v40, %s12252_s27  ;;  %s12260_s27 = smov 48  }
 0x2ec   : > { %v9866_v42 = vpop.permute.xlu0 %9865 }
 0x2ed   : > { %v9868_v43 = vunpack.i.h.bf16 %v9866_v42  ;;  %v9867_v44 = vunpack.i.l.bf16 %v9866_v42 }
 0x2ee   : > { %v1049_v45 = vpop.permute.xlu1 %1048 }
 0x2ef   : > { %v9598_v47 = vpack.c.bf16 %v9868_v43, %v9867_v44 }
 0x2f0   : > { %v1288_v52 = vpop.permute.xlu0 %1287 }
 0x2f1   : > { %9600 = vmatpush3.bf16.xpose.msk.msra.mxu1 %vm10664_vm8, %v9598_v47 }
 0x2f2   : > { %8722 = vmatprep.subr.mxu1 %v10354_v5  ;;  %v9871_v48 = vpop.permute.xlu1 %9870 }
 0x2f3   : > { %v9873_v49 = vunpack.i.h.bf16 %v9871_v48  ;;  %v9872_v50 = vunpack.i.l.bf16 %v9871_v48 }
 0x2f4   : > { %v1280_v54 = vpop.permute.xlu0 %1279 }
 0x2f5   : > { %v9605_v51 = vpack.c.bf16 %v9873_v49, %v9872_v50 }
 0x2f6   : > { %v1278_v53 = vpop.permute.xlu1 %1277 }
 0x2f9   : > { %8723 = vmatpush3.xpose.msk.msra.mxu1 %vm1050_vm7, %v1049_v45 }
 0x2fa   : > { %9604 = vmatprep.subr.bf16.mxu1 %v10352_v3  ;;  %v1282_v55 = vpop.permute.xlu1 %1281 }
 0x2fc   : > { %8725 = vmatmul.mubr.msk.f32.vlgmr.msra.gmra.mrb[2].mxu1 %vm1050_vm7, %v10638_v35 }
 0x2fd   : > { %9607 = vmatpush3.bf16.xpose.msk.msra.mxu1 %vm10664_vm8, %v9605_v51  ;;  %8727 = vmatprep.mubr.msk.f32.mxu1 %vm10353_vm0, %v10354_v5 }
 0x2fe   : > { %8752 = vmatprep.subr.mxu1 %v10354_v5 }
 0x300   : > { %8728 = vmatmul.mubr.msk.f32.gmra.mrb[4].mxu1 %vm1050_vm7, %v10640_v36 }
 0x301   : > { %8730 = vmatprep.mubr.msk.f32.mxu1 %vm10353_vm0, %v10354_v5 }
 0x304   : > { %8731 = vmatmul.mubr.msk.f32.gmra.mrb[6].mxu1 %vm1050_vm7, %v10646_v40 }
 0x305   : > { %8753 = vmatpush3.xpose.msk.msra.mxu1 %vm1050_vm7, %v1288_v52  ;;  %8754 = vmatprep.mubr.msk.f32.mxu1 %vm10353_vm0, %v10354_v5 }
 0x306   : > { %8778 = vmatprep.subr.mxu1 %v10354_v5 }
 0x308   : > { %8755 = vmatmul.mubr.msk.f32.vlgmr.msra.gmra.mrb[8].mxu1 %vm1050_vm7, %v1278_v53 }
 0x309   : > { %8757 = vmatprep.mubr.msk.f32.mxu1 %vm10353_vm0, %v10354_v5 }
 0x30c   : > { %8758 = vmatmul.mubr.msk.f32.gmra.mrb[10].mxu1 %vm1050_vm7, %v1280_v54 }
 0x30d   : > { %8760 = vmatprep.mubr.msk.f32.mxu1 %vm10353_vm0, %v10354_v5 }
 0x310   : > { %8761 = vmatmul.mubr.msk.f32.gmra.mrb[12].mxu1 %vm1050_vm7, %v1282_v55 }
 0x311   : > { %8780 = vmatprep.mubr.msk.f32.mxu1 %vm10353_vm0, %v10354_v5 }
 0x3cf   : > { %v1129_v56 = vpop.f32.mrb[2].mxu1 }
 0x3d0   : > { %v1143_v57 = vmul.f32 0.35355338, %v1129_v56  ;;  %v8726_v58 = vpop.f32.mrb[3].mxu1 }
 0x3d2   : > { %v1146_v59 = vsel %vm855_vm3, %v1143_v57, -inf }
 0x3d3   : > { %1147 = vmax.xlane.f32.xlu0 %v1146_v59  ;;  %v1134_v60 = vpop.f32.mrb[4].mxu1 }
 0x3d4   : > { %v1144_v61 = vmul.f32 0.35355338, %v1134_v60  ;;  %v8729_v62 = vpop.f32.mrb[5].mxu1 }
 0x3d6   : > { %v1149_v63 = vsel %vm855_vm3, %v1144_v61, -inf }
 0x3d7   : > { %1150 = vmax.xlane.f32.xlu1 %v1149_v63  ;;  %v1139_v0 = vpop.f32.mrb[6].mxu1 }
 0x3d8   : > { %v1145_v1 = vmul.f32 0.35355338, %v1139_v0  ;;  %v8732_v2 = vpop.f32.mrb[7].mxu1 }
 0x3da   : > { %v1152_v4 = vsel %vm855_vm3, %v1145_v1, -inf }
 0x3db   : > { %1153 = vmax.xlane.f32.xlu0 %v1152_v4  ;;  %v1367_v6 = vpop.f32.mrb[8].mxu1 }
 0x3dc   : > { %v1381_v7 = vmul.f32 0.35355338, %v1367_v6  ;;  %v8756_v9 = vpop.f32.mrb[9].mxu1 }
 0x3de   : > { %v1384_v10 = vsel %vm855_vm3, %v1381_v7, -inf }
 0x3df   : > { %1385 = vmax.xlane.f32.xlu0 %v1384_v10  ;;  %v1372_v11 = vpop.f32.mrb[10].mxu1 }
 0x3e0   : > { %v1382_v12 = vmul.f32 0.35355338, %v1372_v11  ;;  %v8759_v13 = vpop.f32.mrb[11].mxu1 }
 0x3e2   : > { %v1387_v14 = vsel %vm855_vm3, %v1382_v12, -inf }
 0x3e3   : > { %1388 = vmax.xlane.f32.xlu1 %v1387_v14  ;;  %v1377_v15 = vpop.f32.mrb[12].mxu1 }
 0x3e4   : > { %v1383_v16 = vmul.f32 0.35355338, %v1377_v15  ;;  %v8762_v17 = vpop.f32.mrb[13].mxu1 }
 0x3e6   : > { %v1390_v20 = vsel %vm855_vm3, %v1383_v16, -inf }
 0x3e7   : > { %1391 = vmax.xlane.f32.xlu0 %v1390_v20 }
 0x3f4   : > { %1183 = vrot.lane.b32.xlu1 %v10646_v40, %s12250_s6 }
 0x3fd   : > { %9875 = vrot.lane.b32.xlu0 %v10644_v38, %s12250_s6  ;;  %s12256_s6 = smov 72  }
 0x460   : > { %v1148_v21 = vpop.xlane.xlu0 %1147 }
 0x461   : > { %v1155_v22 = vsub.f32 %v1143_v57, %v1148_v21 }
 0x463   : > { %v1158_v23 = vmul.f32 1.442695, %v1155_v22 }
 0x464   : > { %v1151_v24 = vpop.xlane.xlu1 %1150 }
 0x465   : > { %10024 = vpow2.f32 %v1158_v23  ;;  %v1156_v25 = vsub.f32 %v1144_v61, %v1151_v24 }
 0x467   : > { %v1160_v26 = vmul.f32 1.442695, %v1156_v25 }
 0x468   : > { %v1154_v27 = vpop.xlane.xlu0 %1153 }
 0x469   : > { %10026 = vpow2.f32 %v1160_v26  ;;  %v1157_v28 = vsub.f32 %v1145_v1, %v1154_v27 }
 0x46b   : > { %v1162_v29 = vmul.f32 1.442695, %v1157_v28 }
 0x46c   : > { %v1386_v31 = vpop.xlane.xlu0 %1385 }
 0x46d   : > { %10028 = vpow2.f32 %v1162_v29  ;;  %v1393_v32 = vsub.f32 %v1381_v7, %v1386_v31 }
 0x46f   : > { %v10025_v33 = vpop.eup %10024  ;;  %v1396_v34 = vmul.f32 1.442695, %v1393_v32 }
 0x470   : > { %v1389_v37 = vpop.xlane.xlu1 %1388  ;;  %v1164_v39 = vsel %vm855_vm3, %v10025_v33, 0.0 }
 0x471   : > { %10030 = vpow2.f32 %v1396_v34  ;;  %v1394_v41 = vsub.f32 %v1382_v12, %v1389_v37  ;;  %1165 = vadd.xlane.f32.xlu1 %v1164_v39 }
 0x473   : > { %v10027_v42 = vpop.eup %10026  ;;  %v1398_v43 = vmul.f32 1.442695, %v1394_v41 }
 0x474   : > { %v1392_v44 = vpop.xlane.xlu0 %1391  ;;  %v1167_v45 = vsel %vm855_vm3, %v10027_v42, 0.0  ;;  %v1184_v58 = vpop.permute.xlu1 %1183 }
 0x475   : > { %10032 = vpow2.f32 %v1398_v43  ;;  %v1395_v47 = vsub.f32 %v1383_v16, %v1392_v44  ;;  %1168 = vadd.xlane.f32.xlu0 %v1167_v45 }
 0x477   : > { %v10029_v48 = vpop.eup %10028  ;;  %v1400_v49 = vmul.f32 1.442695, %v1395_v47 }
 0x478   : > { %v9876_v50 = vpop.permute.xlu0 %9875  ;;  %v1170_v51 = vsel %vm855_vm3, %v10029_v48, 0.0 }
 0x479   : > { %10034 = vpow2.f32 %v1400_v49  ;;  %v9878_v52 = vunpack.i.h.bf16 %v9876_v50  ;;  %v9877_v53 = vunpack.i.l.bf16 %v9876_v50  ;;  %1171 = vadd.xlane.f32.xlu1 %v1170_v51 }
 0x47b   : > { %v10031_v54 = vpop.eup %10030  ;;  %v9602_v55 = vpack.c.bf16 %v9878_v52, %v9877_v53 }
 0x47c   : > { %v1402_v56 = vsel %vm855_vm3, %v10031_v54, 0.0 }
 0x47d   : > { %1403 = vadd.xlane.f32.xlu0 %v1402_v56  ;;  %9603 = vmatpush3.bf16.msra.mxu0 %v9602_v55 }
 0x47e   : > { %8737 = vmatprep.subr.mxu0 %v10354_v5 }
 0x47f   : > { %v10033_v57 = vpop.eup %10032 }
 0x480   : > { %v1405_v59 = vsel %vm855_vm3, %v10033_v57, 0.0 }
 0x481   : > { %1406 = vadd.xlane.f32.xlu1 %v1405_v59  ;;  %8738 = vmatpush3.msra.mxu0 %v1184_v58 }
 0x482   : > { %9608 = vmatprep.subr.bf16.mxu0 %v10352_v3 }
 0x483   : > { %v10035_v60 = vpop.eup %10034 }
 0x484   : > { %v1408_v61 = vsel %vm855_vm3, %v10035_v60, 0.0 }
 0x485   : > { %1409 = vadd.xlane.f32.xlu1 %v1408_v61 }
 0x493   : > { %9880 = vrot.lane.b32.xlu0 %v10644_v38, %s12248_s4 }
 0x496   : > { %1421 = vrot.lane.b32.xlu1 %v10646_v40, %s12248_s4  ;;  %s12323_s4 = sld [smem:[#allocation28_spill]] }
 0x497   : > { %9885 = vrot.lane.b32.xlu0 %v10644_v38, %s12246_s5 }
 0x49a   : > { %1703 = vrot.lane.b32.xlu1 %v10646_v40, %s12246_s5  ;;  %s12254_s5 = smov 104  }
 0x49b   : > { %1693 = vrot.lane.b32.xlu0 %v10638_v35, %s12244_s7 }
 0x49c   : > { %v946_v26 = vld [vmem:[%s12323_s4] sm:$0xff]  ;;  %v947_v27 = vld [vmem:[%s12323_s4 + $0x8] sm:$0xff] }
 0x49d   : > { %8779 = vmatpush3.msra.mxu1 %v947_v27 }
 0x49e   : > { %1695 = vrot.lane.b32.xlu1 %v10640_v36, %s12244_s7  ;;  %9611 = vmatprep.subr.bf16.mxu1 %v10352_v3 }
 0x49f   : > { %1697 = vrot.lane.b32.xlu0 %v10646_v40, %s12244_s7  ;;  %s12326_s7 = smov 88  }
 0x4fe   : > { %v1166_v62 = vpop.xlane.xlu1 %1165 }
 0x4ff   : > { %10036 = vrcp.f32 %v1166_v62 }
 0x502   : > { %v1169_v63 = vpop.xlane.xlu0 %1168 }
 0x503   : > { %10038 = vrcp.f32 %v1169_v63 }
 0x506   : > { %v1172_v0 = vpop.xlane.xlu1 %1171 }
 0x507   : > { %10040 = vrcp.f32 %v1172_v0 }
 0x509   : > { %v10037_v1 = vpop.eup %10036 }
 0x50a   : > { %v1176_v2 = vmul.f32 %v10037_v1, %v10025_v33  ;;  %v1404_v4 = vpop.xlane.xlu0 %1403 }
 0x50b   : > { %10042 = vrcp.f32 %v1404_v4 }
 0x50c   : > { %8740 = vmatmul.mubr.msk.f32.vlgmr.msra.gmra.mrb[8].mxu0 %vm855_vm3, %v1176_v2 }
 0x50d   : > { %v10039_v6 = vpop.eup %10038  ;;  %8742 = vmatprep.mubr.msk.f32.mxu0 %vm10353_vm0, %v10354_v5 }
 0x50e   : > { %v1407_v7 = vpop.xlane.xlu1 %1406  ;;  %v9881_v9 = vpop.permute.xlu0 %9880  ;;  %v1177_v10 = vmul.f32 %v10039_v6, %v10027_v42 }
 0x50f   : > { %10044 = vrcp.f32 %v1407_v7  ;;  %v9883_v11 = vunpack.i.h.bf16 %v9881_v9  ;;  %v9882_v12 = vunpack.i.l.bf16 %v9881_v9 }
 0x510   : > { %8743 = vmatmul.mubr.msk.f32.gmra.mrb[10].mxu0 %vm855_vm3, %v1177_v10 }
 0x511   : > { %v10041_v13 = vpop.eup %10040  ;;  %v9609_v14 = vpack.c.bf16 %v9883_v11, %v9882_v12  ;;  %8745 = vmatprep.mubr.msk.f32.mxu0 %vm10353_vm0, %v10354_v5 }
 0x512   : > { %v1410_v15 = vpop.xlane.xlu1 %1409  ;;  %v1178_v16 = vmul.f32 %v10041_v13, %v10029_v48  ;;  %v9886_v32 = vpop.permute.xlu0 %9885 }
 0x513   : > { %10046 = vrcp.f32 %v1410_v15  ;;  %9610 = vmatpush3.bf16.msra.mxu0 %v9609_v14  ;;  %v9888_v34 = vunpack.i.h.bf16 %v9886_v32  ;;  %v9887_v37 = vunpack.i.l.bf16 %v9886_v32 }
 0x514   : > { %8746 = vmatmul.mubr.msk.f32.gmra.mrb[12].mxu0 %vm855_vm3, %v1178_v16  ;;  %8767 = vmatprep.subr.mxu0 %v10354_v5 }
 0x515   : > { %v10043_v17 = vpop.eup %10042  ;;  %8769 = vmatprep.mubr.msk.f32.mxu0 %vm10353_vm0, %v10354_v5  ;;  %v9612_v42 = vpack.c.bf16 %v9888_v34, %v9887_v37 }
 0x516   : > { %v1414_v20 = vmul.f32 %v10043_v17, %v10031_v54  ;;  %v1422_v21 = vpop.permute.xlu1 %1421  ;;  %v1694_v51 = vpop.permute.xlu0 %1693 }
 0x517   : > { %8768 = vmatpush3.msra.mxu0 %v1422_v21 }
 0x518   : > { %8770 = vmatmul.mubr.msk.f32.vlgmr.msra.gmra.mrb[14].mxu0 %vm855_vm3, %v1414_v20  ;;  %8789 = vmatprep.subr.mxu0 %v10354_v5 }
 0x519   : > { %v10045_v22 = vpop.eup %10044  ;;  %8772 = vmatprep.mubr.msk.f32.mxu0 %vm10353_vm0, %v10354_v5  ;;  %8790 = vmatpush3.msra.mxu0 %v946_v26 }
 0x51a   : > { %v1415_v23 = vmul.f32 %v10045_v22, %v10033_v57  ;;  %9615 = vmatprep.subr.bf16.mxu0 %v10352_v3  ;;  %v1704_v49 = vpop.permute.xlu1 %1703  ;;  %v1698_v53 = vpop.permute.xlu0 %1697 }
 0x51c   : > { %8773 = vmatmul.mubr.msk.f32.gmra.mrb[16].mxu0 %vm855_vm3, %v1415_v23 }
 0x51d   : > { %v10047_v24 = vpop.eup %10046  ;;  %8775 = vmatprep.mubr.msk.f32.mxu0 %vm10353_vm0, %v10354_v5 }
 0x51e   : > { %v1416_v25 = vmul.f32 %v10047_v24, %v10035_v60  ;;  %v1696_v52 = vpop.permute.xlu1 %1695 }
 0x520   : > { %8776 = vmatmul.mubr.msk.f32.gmra.mrb[18].mxu0 %vm855_vm3, %v1416_v25 }
 0x521   : > { %8791 = vmatprep.mubr.msk.f32.mxu0 %vm10353_vm0, %v10354_v5 }
 0x5df   : > { %v1263_v28 = vpop.f32.mrb[8].mxu0 }
 0x5e0   : > { %v8741_v29 = vpop.f32.mrb[9].mxu0  ;;  %8792 = vmatmul.mubr.msk.f32.vlgmr.msra.gmra.mrb[20].mxu0 %vm1050_vm7, %v1263_v28 }
 0x5e1   : > { %8794 = vmatprep.mubr.msk.f32.mxu0 %vm10353_vm0, %v10354_v5 }
 0x5e3   : > { %v1268_v31 = vpop.f32.mrb[10].mxu0 }
 0x5e4   : > { %v8744_v33 = vpop.f32.mrb[11].mxu0  ;;  %8795 = vmatmul.mubr.msk.f32.gmra.mrb[22].mxu0 %vm1050_vm7, %v1268_v31 }
 0x5e5   : > { %8797 = vmatprep.mubr.msk.f32.mxu0 %vm10353_vm0, %v10354_v5 }
 0x5e7   : > { %v1273_v39 = vpop.f32.mrb[12].mxu0 }
 0x5e8   : > { %v8747_v41 = vpop.f32.mrb[13].mxu0  ;;  %8798 = vmatmul.mubr.msk.f32.gmra.mrb[24].mxu0 %vm1050_vm7, %v1273_v39 }
 0x5e9   : > { %8821 = vmatprep.mubr.msk.f32.mxu0 %vm10353_vm0, %v10354_v5 }
 0x5eb   : > { %v1501_v43 = vpop.f32.mrb[14].mxu0 }
 0x5ec   : > { %v8771_v44 = vpop.f32.mrb[15].mxu0  ;;  %8781 = vmatmul.mubr.msk.f32.vlgmr.msra.gmra.mrb[14].mxu1 %vm1050_vm7, %v1501_v43 }
 0x5ed   : > { %9614 = vmatpush3.bf16.xpose.msk.msra.mxu1 %vm10664_vm8, %v9612_v42  ;;  %8783 = vmatprep.mubr.msk.f32.mxu1 %vm10353_vm0, %v10354_v5 }
 0x5ee   : > { %8804 = vmatprep.subr.mxu1 %v10354_v5 }
 0x5ef   : > { %v1506_v45 = vpop.f32.mrb[16].mxu0 }
 0x5f0   : > { %v8774_v47 = vpop.f32.mrb[17].mxu0  ;;  %8784 = vmatmul.mubr.msk.f32.gmra.mrb[16].mxu1 %vm1050_vm7, %v1506_v45 }
 0x5f1   : > { %8786 = vmatprep.mubr.msk.f32.mxu1 %vm10353_vm0, %v10354_v5 }
 0x5f3   : > { %v1511_v48 = vpop.f32.mrb[18].mxu0 }
 0x5f4   : > { %v8777_v50 = vpop.f32.mrb[19].mxu0  ;;  %8787 = vmatmul.mubr.msk.f32.gmra.mrb[18].mxu1 %vm1050_vm7, %v1511_v48 }
 0x5f5   : > { %8805 = vmatpush3.xpose.msk.msra.mxu1 %vm1050_vm7, %v1704_v49  ;;  %8806 = vmatprep.mubr.msk.f32.mxu1 %vm10353_vm0, %v10354_v5 }
 0x5f6   : > { %8830 = vmatprep.subr.mxu1 %v10354_v5 }
 0x5f8   : > { %8807 = vmatmul.mubr.msk.f32.vlgmr.msra.gmra.mrb[20].mxu1 %vm1050_vm7, %v1694_v51 }
 0x5f9   : > { %8809 = vmatprep.mubr.msk.f32.mxu1 %vm10353_vm0, %v10354_v5 }
 0x5fc   : > { %8810 = vmatmul.mubr.msk.f32.gmra.mrb[22].mxu1 %vm1050_vm7, %v1696_v52 }
 0x5fd   : > { %8812 = vmatprep.mubr.msk.f32.mxu1 %vm10353_vm0, %v10354_v5 }
 0x600   : > { %8813 = vmatmul.mubr.msk.f32.gmra.mrb[24].mxu1 %vm1050_vm7, %v1698_v53 }
 0x601   : > { %8832 = vmatprep.mubr.msk.f32.mxu1 %vm10353_vm0, %v10354_v5 }
 0x6b3   : > { %v1679_v54 = vpop.f32.mrb[20].mxu0 }
 0x6b4   : > { %v8793_v55 = vpop.f32.mrb[21].mxu0 }
 0x6b7   : > { %v1684_v56 = vpop.f32.mrb[22].mxu0 }
 0x6b8   : > { %v8796_v57 = vpop.f32.mrb[23].mxu0 }
 0x6bb   : > { %v1689_v58 = vpop.f32.mrb[24].mxu0 }
 0x6bc   : > { %v8799_v59 = vpop.f32.mrb[25].mxu0 }
 0x6bf   : > { %v1590_v60 = vpop.f32.mrb[14].mxu1 }
 0x6c0   : > { %v10791_v61 = vadd.f32 %v1679_v54, %v1590_v60  ;;  %v8782_v62 = vpop.f32.mrb[15].mxu1 }
 0x6c3   : > { %v1595_v63 = vpop.f32.mrb[16].mxu1 }
 0x6c4   : > { %v10793_v0 = vadd.f32 %v1684_v56, %v1595_v63  ;;  %v8785_v1 = vpop.f32.mrb[17].mxu1 }
 0x6c5   : > { %v948_v1 = vld [vmem:[%s12323_s4 + $0x10] sm:$0xff] }
 0x6c6   : > { %8831 = vmatpush3.msra.mxu1 %v948_v1 }
 0x6c7   : > { %v1600_v2 = vpop.f32.mrb[18].mxu1  ;;  %9622 = vmatprep.subr.bf16.mxu1 %v10352_v3 }
 0x6c8   : > { %v10795_v4 = vadd.f32 %v1689_v58, %v1600_v2  ;;  %v8788_v6 = vpop.f32.mrb[19].mxu1 }
 0x6cb   : > { %v1783_v7 = vpop.f32.mrb[20].mxu1 }
 0x6cc   : > { %v1797_v9 = vmul.f32 0.35355338, %v1783_v7  ;;  %v8808_v10 = vpop.f32.mrb[21].mxu1 }
 0x6ce   : > { %v1800_v11 = vsel %vm855_vm3, %v1797_v9, -inf }
 0x6cf   : > { %1801 = vmax.xlane.f32.xlu1 %v1800_v11  ;;  %v1788_v12 = vpop.f32.mrb[22].mxu1 }
 0x6d0   : > { %v1798_v13 = vmul.f32 0.35355338, %v1788_v12  ;;  %v8811_v14 = vpop.f32.mrb[23].mxu1 }
 0x6d2   : > { %v1803_v15 = vsel %vm855_vm3, %v1798_v13, -inf }
 0x6d3   : > { %1804 = vmax.xlane.f32.xlu0 %v1803_v15  ;;  %v1793_v16 = vpop.f32.mrb[24].mxu1 }
 0x6d4   : > { %v1799_v17 = vmul.f32 0.35355338, %v1793_v16  ;;  %v8814_v20 = vpop.f32.mrb[25].mxu1 }
 0x6d6   : > { %v1806_v21 = vsel %vm855_vm3, %v1799_v17, -inf }
 0x6d7   : > { %1807 = vmax.xlane.f32.xlu0 %v1806_v21 }
 0x75c   : > { %v1802_v22 = vpop.xlane.xlu1 %1801 }
 0x75d   : > { %v1809_v23 = vsub.f32 %v1797_v9, %v1802_v22 }
 0x75f   : > { %v1812_v24 = vmul.f32 1.442695, %v1809_v23 }
 0x760   : > { %v1805_v25 = vpop.xlane.xlu0 %1804 }
 0x761   : > { %10048 = vpow2.f32 %v1812_v24  ;;  %v1810_v26 = vsub.f32 %v1798_v13, %v1805_v25 }
 0x763   : > { %v1814_v27 = vmul.f32 1.442695, %v1810_v26 }
 0x764   : > { %v1808_v33 = vpop.xlane.xlu0 %1807 }
 0x765   : > { %10050 = vpow2.f32 %v1814_v27  ;;  %v1811_v34 = vsub.f32 %v1799_v17, %v1808_v33 }
 0x767   : > { %v1816_v37 = vmul.f32 1.442695, %v1811_v34 }
 0x769   : > { %10052 = vpow2.f32 %v1816_v37 }
 0x76b   : > { %v10049_v28 = vpop.eup %10048 }
 0x76c   : > { %v1818_v29 = vsel %vm855_vm3, %v10049_v28, 0.0 }
 0x76d   : > { %1819 = vadd.xlane.f32.xlu1 %v1818_v29 }
 0x76f   : > { %v10051_v31 = vpop.eup %10050 }
 0x770   : > { %v1821_v32 = vsel %vm855_vm3, %v10051_v31, 0.0 }
 0x771   : > { %1822 = vadd.xlane.f32.xlu0 %v1821_v32 }
 0x773   : > { %v10053_v39 = vpop.eup %10052 }
 0x774   : > { %v1824_v41 = vsel %vm855_vm3, %v10053_v39, 0.0 }
 0x77e   : > { %1837 = vrot.lane.b32.xlu1 %v10646_v40, %s12260_s27 }
 0x782   : > { %9895 = vrot.lane.b32.xlu1 %v10644_v38, %s12256_s6 }
 0x787   : > { %9890 = vrot.lane.b32.xlu0 %v10644_v38, %s12260_s27  ;;  %s12349_s27 = sld [smem:[#allocation21_spill]] }
 0x78b   : > { %2033 = vrot.lane.b32.xlu0 %v10646_v40, %s12256_s6  ;;  %s12325_s6 = smov 96  }
 0x78f   : > { %2025 = vrot.lane.b32.xlu0 %v10640_v36, %s12254_s5 }
 0x7a6   : > { %1825 = vadd.xlane.f32.xlu1 %v1824_v41 }
 0x7b7   : > { %2023 = vrot.lane.b32.xlu1 %v10638_v35, %s12254_s5 }
 0x7bb   : > { %2027 = vrot.lane.b32.xlu1 %v10646_v40, %s12254_s5  ;;  %s12258_s5 = smov 40  }
 0x7fa   : > { %v1820_v42 = vpop.xlane.xlu1 %1819 }
 0x7fb   : > { %10054 = vrcp.f32 %v1820_v42 }
 0x7fe   : > { %v1823_v43 = vpop.xlane.xlu0 %1822  ;;  %v1838_v45 = vpop.permute.xlu1 %1837 }
 0x7ff   : > { %10056 = vrcp.f32 %v1823_v43 }
 0x802   : > { %v9891_v44 = vpop.permute.xlu0 %9890  ;;  %v9896_v50 = vpop.permute.xlu1 %9895 }
 0x803   : > { %v9893_v36 = vunpack.i.h.bf16 %v9891_v44  ;;  %v9892_v47 = vunpack.i.l.bf16 %v9891_v44  ;;  %v9898_v35 = vunpack.i.h.bf16 %v9896_v50  ;;  %v9897_v53 = vunpack.i.l.bf16 %v9896_v50 }
 0x805   : > { %v9616_v48 = vpack.c.bf16 %v9893_v36, %v9892_v47  ;;  %v10055_v49 = vpop.eup %10054  ;;  %v9619_v55 = vpack.c.bf16 %v9898_v35, %v9897_v53 }
 0x806   : > { %v1830_v51 = vmul.f32 %v10055_v49, %v10049_v28  ;;  %v2034_v56 = vpop.permute.xlu0 %2033 }
 0x807   : > { %9617 = vmatpush3.bf16.msra.mxu0 %v9616_v48 }
 0x808   : > { %8819 = vmatprep.subr.mxu0 %v10354_v5 }
 0x809   : > { %v10057_v52 = vpop.eup %10056 }
 0x80a   : > { %v1831_v54 = vmul.f32 %v10057_v52, %v10051_v31  ;;  %v2026_v62 = vpop.permute.xlu0 %2025 }
 0x80b   : > { %8820 = vmatpush3.msra.mxu0 %v1838_v45 }
 0x80c   : > { %8822 = vmatmul.mubr.msk.f32.vlgmr.msra.gmra.mrb[26].mxu0 %vm855_vm3, %v1830_v51  ;;  %9618 = vmatprep.subr.bf16.mxu0 %v10352_v3 }
 0x80d   : > { %8824 = vmatprep.mubr.msk.f32.mxu0 %vm10353_vm0, %v10354_v5 }
 0x810   : > { %8825 = vmatmul.mubr.msk.f32.gmra.mrb[28].mxu0 %vm855_vm3, %v1831_v54 }
 0x811   : > { %8827 = vmatprep.mubr.msk.f32.mxu0 %vm10353_vm0, %v10354_v5 }
 0x812   : > { %9621 = vmatpush3.bf16.xpose.msk.msra.mxu0 %vm10664_vm8, %v9619_v55 }
 0x813   : > { %8845 = vmatprep.subr.mxu0 %v10354_v5 }
 0x81a   : > { %8846 = vmatpush3.xpose.msk.msra.mxu0 %vm1050_vm7, %v2034_v56 }
 0x81b   : > { %8871 = vmatprep.subr.mxu0 %v10354_v5 }
 0x833   : > { %v1826_v57 = vpop.xlane.xlu1 %1825 }
 0x834   : > { %10058 = vrcp.f32 %v1826_v57 }
 0x837   : > { %v2024_v60 = vpop.permute.xlu1 %2023 }
 0x83b   : > { %v2028_v63 = vpop.permute.xlu1 %2027 }
 0x83e   : > { %v10059_v58 = vpop.eup %10058 }
 0x83f   : > { %v1832_v59 = vmul.f32 %v10059_v58, %v10053_v39 }
 0x841   : > { %8828 = vmatmul.mubr.msk.f32.gmra.mrb[30].mxu0 %vm855_vm3, %v1832_v59 }
 0x842   : > { %8847 = vmatprep.mubr.msk.f32.mxu0 %vm10353_vm0, %v10354_v5 }
 0x845   : > { %8848 = vmatmul.mubr.msk.f32.vlgmr.msra.gmra.mrb[32].mxu0 %vm1050_vm7, %v2024_v60 }
 0x846   : > { %8850 = vmatprep.mubr.msk.f32.mxu0 %vm10353_vm0, %v10354_v5 }
 0x849   : > { %8851 = vmatmul.mubr.msk.f32.gmra.mrb[34].mxu0 %vm1050_vm7, %v2026_v62 }
 0x84a   : > { %8853 = vmatprep.mubr.msk.f32.mxu0 %vm10353_vm0, %v10354_v5 }
 0x84d   : > { %8854 = vmatmul.mubr.msk.f32.gmra.mrb[36].mxu0 %vm1050_vm7, %v2028_v63 }
 0x84e   : > { %8873 = vmatprep.mubr.msk.f32.mxu0 %vm10353_vm0, %v10354_v5 }
 0x8df   : > { %v1917_v2 = vpop.f32.mrb[26].mxu0 }
 0x8e0   : > { %v8823_v6 = vpop.f32.mrb[27].mxu0  ;;  %8833 = vmatmul.mubr.msk.f32.vlgmr.msra.gmra.mrb[26].mxu1 %vm1050_vm7, %v1917_v2 }
 0x8e1   : > { %8835 = vmatprep.mubr.msk.f32.mxu1 %vm10353_vm0, %v10354_v5 }
 0x8e3   : > { %v1922_v7 = vpop.f32.mrb[28].mxu0 }
 0x8e4   : > { %v8826_v9 = vpop.f32.mrb[29].mxu0  ;;  %8836 = vmatmul.mubr.msk.f32.gmra.mrb[28].mxu1 %vm1050_vm7, %v1922_v7 }
 0x8e5   : > { %8838 = vmatprep.mubr.msk.f32.mxu1 %vm10353_vm0, %v10354_v5 }
 0x914   : > { %v1927_v10 = vpop.f32.mrb[30].mxu0 }
 0x915   : > { %v8829_v11 = vpop.f32.mrb[31].mxu0  ;;  %8839 = vmatmul.mubr.msk.f32.gmra.mrb[30].mxu1 %vm1050_vm7, %v1927_v10 }
 0x916   : > { %8862 = vmatprep.mubr.msk.f32.mxu1 %vm10353_vm0, %v10354_v5 }
 0x918   : > { %v2113_v12 = vpop.f32.mrb[32].mxu0 }
 0x919   : > { %v2127_v13 = vmul.f32 0.35355338, %v2113_v12  ;;  %v8849_v14 = vpop.f32.mrb[33].mxu0 }
 0x91b   : > { %v2130_v15 = vsel %vm855_vm3, %v2127_v13, -inf }
 0x91c   : > { %2131 = vmax.xlane.f32.xlu0 %v2130_v15  ;;  %v2118_v16 = vpop.f32.mrb[34].mxu0 }
 0x91d   : > { %v2128_v17 = vmul.f32 0.35355338, %v2118_v16  ;;  %v8852_v20 = vpop.f32.mrb[35].mxu0 }
 0x91f   : > { %v2133_v21 = vsel %vm855_vm3, %v2128_v17, -inf }
 0x920   : > { %2134 = vmax.xlane.f32.xlu1 %v2133_v21  ;;  %v2123_v22 = vpop.f32.mrb[36].mxu0 }
 0x921   : > { %v2129_v23 = vmul.f32 0.35355338, %v2123_v22  ;;  %v8855_v24 = vpop.f32.mrb[37].mxu0 }
 0x923   : > { %v2136_v25 = vsel %vm855_vm3, %v2129_v23, -inf }
 0x924   : > { %2137 = vmax.xlane.f32.xlu0 %v2136_v25 }
 0x9a9   : > { %v2132_v26 = vpop.xlane.xlu0 %2131 }
 0x9aa   : > { %v2139_v27 = vsub.f32 %v2127_v13, %v2132_v26 }
 0x9ac   : > { %v2142_v28 = vmul.f32 1.442695, %v2139_v27 }
 0x9ad   : > { %v2135_v29 = vpop.xlane.xlu1 %2134 }
 0x9ae   : > { %10060 = vpow2.f32 %v2142_v28  ;;  %v2140_v31 = vsub.f32 %v2128_v17, %v2135_v29 }
 0x9b0   : > { %v2144_v32 = vmul.f32 1.442695, %v2140_v31 }
 0x9b1   : > { %v2138_v33 = vpop.xlane.xlu0 %2137 }
 0x9b2   : > { %10062 = vpow2.f32 %v2144_v32  ;;  %v2141_v34 = vsub.f32 %v2129_v23, %v2138_v33 }
 0x9b3   : > { %v2006_v37 = vpop.f32.mrb[26].mxu1 }
 0x9b4   : > { %v2146_v39 = vmul.f32 1.442695, %v2141_v34  ;;  %v10859_v41 = vadd.f32 %v2006_v37, %v10791_v61  ;;  %v8834_v42 = vpop.f32.mrb[27].mxu1  ;;  %v949_v61 = vld [vmem:[%s12323_s4 + $0x18] sm:$0xff] }
 0x9b5   : > { %8872 = vmatpush3.msra.mxu0 %v949_v61  ;;  %v8070_v61 = vld [vmem:[%s12317_s10 + $0x20] sm:$0xff] }
 0x9b6   : > { %10064 = vpow2.f32 %v2146_v39  ;;  %9631 = vmatprep.subr.bf16.mxu0 %v10352_v3 }
 0x9b7   : > { %v2011_v43 = vpop.f32.mrb[28].mxu1 }
 0x9b8   : > { %v10061_v44 = vpop.eup %10060  ;;  %v10862_v45 = vadd.f32 %v2011_v43, %v10793_v0  ;;  %v8837_v36 = vpop.f32.mrb[29].mxu1 }
 0x9b9   : > { %v2148_v47 = vsel %vm855_vm3, %v10061_v44, 0.0 }
 0x9ba   : > { %2149 = vadd.xlane.f32.xlu0 %v2148_v47 }
 0x9bc   : > { %v10063_v48 = vpop.eup %10062 }
 0x9bd   : > { %v2151_v49 = vsel %vm855_vm3, %v10063_v48, 0.0 }
 0x9be   : > { %2152 = vadd.xlane.f32.xlu1 %v2151_v49 }
 0x9c0   : > { %v10065_v50 = vpop.eup %10064 }
 0x9c1   : > { %v2154_v51 = vsel %vm855_vm3, %v10065_v50, 0.0 }
 0x9c2   : > { %2155 = vadd.xlane.f32.xlu0 %v2154_v51 }
 0x9cf   : > { %9900 = vrot.lane.b32.xlu1 %v10644_v38, %s12258_s5 }
 0x9d8   : > { %2167 = vrot.lane.b32.xlu0 %v10646_v40, %s12258_s5  ;;  %s12324_s5 = sld [smem:[#allocation29_spill]] }
 0x9de   : > { %v8067_v12 = vld [vmem:[%s12324_s5] ss:$0 sm:$0xff] }
 0x9e8   : > { %v2016_v0 = vpop.f32.mrb[30].mxu1 }
 0x9e9   : > { %v2022_v52 = vadd.f32 %v2016_v0, %v10795_v4  ;;  %v8840_v35 = vpop.f32.mrb[31].mxu1  ;;  %v8071_v0 = vld [vmem:[%s12317_s10 + $0x28] sm:$0xff] }
 0x9ea   : > { %v8072_v35 = vld [vmem:[%s12317_s10 + $0x30] sm:$0xff] }
 0xa47   : > { %v2150_v53 = vpop.xlane.xlu0 %2149 }
 0xa48   : > { %10066 = vrcp.f32 %v2150_v53  ;;  %v8073_v53 = vld [vmem:[%s12317_s10 + $0x38] sm:$0xff] }
 0xa4b   : > { %v2153_v54 = vpop.xlane.xlu1 %2152 }
 0xa4c   : > { %10068 = vrcp.f32 %v2153_v54  ;;  %v9629_v54 = vpack.c.bf16 %v8073_v53, %v8072_v35 }
 0xa4f   : > { %v9901_v55 = vpop.permute.xlu1 %9900  ;;  %v2156_v38 = vpop.xlane.xlu0 %2155 }
 0xa50   : > { %v9903_v56 = vunpack.i.h.bf16 %v9901_v55  ;;  %v9902_v57 = vunpack.i.l.bf16 %v9901_v55  ;;  %10070 = vrcp.f32 %v2156_v38 }
 0xa52   : > { %v9623_v40 = vpack.c.bf16 %v9903_v56, %v9902_v57  ;;  %v10067_v58 = vpop.eup %10066 }
 0xa53   : > { %v2160_v59 = vmul.f32 %v10067_v58, %v10061_v44  ;;  %v2168_v60 = vpop.permute.xlu0 %2167 }
 0xa54   : > { %9624 = vmatpush3.bf16.msra.mxu1 %v9623_v40 }
 0xa55   : > { %8860 = vmatprep.subr.mxu1 %v10354_v5 }
 0xa56   : > { %v10069_v62 = vpop.eup %10068 }
 0xa57   : > { %v2161_v4 = vmul.f32 %v10069_v62, %v10063_v48 }
 0xa58   : > { %8861 = vmatpush3.msra.mxu1 %v2168_v60 }
 0xa59   : > { %8863 = vmatmul.mubr.msk.f32.vlgmr.msra.gmra.mrb[32].mxu1 %vm855_vm3, %v2160_v59  ;;  %9625 = vmatprep.subr.bf16.mxu1 %v10352_v3 }
 0xa5a   : > { %8865 = vmatprep.mubr.msk.f32.mxu1 %vm10353_vm0, %v10354_v5  ;;  %v10071_v63 = vpop.eup %10070 }
 0xa5b   : > { %v2162_v1 = vmul.f32 %v10071_v63, %v10065_v50  ;;  %v8068_v63 = vld [vmem:[%s12221_s12] ss:$0 sm:$0xff] }
 0xa5d   : > { %8866 = vmatmul.mubr.msk.f32.gmra.mrb[34].mxu1 %vm855_vm3, %v2161_v4 }
 0xa5e   : > { %8868 = vmatprep.mubr.msk.f32.mxu1 %vm10353_vm0, %v10354_v5 }
 0xa61   : > { %8869 = vmatmul.mubr.msk.f32.gmra.mrb[36].mxu1 %vm855_vm3, %v2162_v1 }
 0xa62   : > { %8890 = vmatprep.mubr.msk.f32.mxu1 %vm10353_vm0, %v10354_v5 }
 0xb2c   : > { %v2247_v2 = vpop.f32.mrb[32].mxu1 }
 0xb2d   : > { %v8864_v6 = vpop.f32.mrb[33].mxu1  ;;  %8874 = vmatmul.mubr.msk.f32.vlgmr.msra.gmra.mrb[38].mxu0 %vm1050_vm7, %v2247_v2  ;;  %v8069_v2 = vld [vmem:[%s12222_s13] ss:$0 sm:$0xff] }
 0xb2e   : > { %8876 = vmatprep.mubr.msk.f32.mxu0 %vm10353_vm0, %v10354_v5 }
 0xb30   : > { %v2252_v7 = vpop.f32.mrb[34].mxu1 }
 0xb31   : > { %v8867_v9 = vpop.f32.mrb[35].mxu1  ;;  %8877 = vmatmul.mubr.msk.f32.gmra.mrb[40].mxu0 %vm1050_vm7, %v2252_v7 }
 0xb32   : > { %8879 = vmatprep.mubr.msk.f32.mxu0 %vm10353_vm0, %v10354_v5 }
 0xb34   : > { %v2257_v10 = vpop.f32.mrb[36].mxu1 }
 0xb35   : > { %v8870_v11 = vpop.f32.mrb[37].mxu1  ;;  %8880 = vmatmul.mubr.msk.f32.gmra.mrb[42].mxu0 %vm1050_vm7, %v2257_v10 }
 0xb36   : > { %8905 = vmatprep.mubr.msk.f32.mxu0 %vm10353_vm0, %v10354_v5 }
 0xc00   : > { %v2336_v13 = vpop.f32.mrb[38].mxu0 }
 0xc01   : > { %v2350_v14 = vadd.f32 %v2336_v13, %v10859_v41  ;;  %v8875_v15 = vpop.f32.mrb[39].mxu0 }
 0xc03   : > { %v2359_v16 = vadd.f32 %v8067_v12, %v2350_v14 }
 0xc04   : > { %v2341_v17 = vpop.f32.mrb[40].mxu0 }
 0xc05   : > { %v2351_v20 = vadd.f32 %v2341_v17, %v10862_v45  ;;  %v8878_v21 = vpop.f32.mrb[41].mxu0  ;;  %v2362_v22 = vadd.f32 %v2359_v16, %v10621_v30 }
 0xc06   : > { %v8080_v21 = vld [vmem:[%s12320_s29 + $0x1] ss:$0 sm:$0xff] }
 0xc07   : > { %v2360_v23 = vadd.f32 %v8067_v12, %v2351_v20  ;;  %v2367_v24 = vsel %vm957_vm6, %v2362_v22, 0.0 }
 0xc08   : > { %2368 = vadd.xlane.f32.xlu1 %v2367_v24  ;;  %v2346_v25 = vpop.f32.mrb[42].mxu0 }
 0xc09   : > { %v2352_v26 = vadd.f32 %v2346_v25, %v2022_v52  ;;  %v8881_v27 = vpop.f32.mrb[43].mxu0  ;;  %v2363_v28 = vadd.f32 %v2360_v23, %v10621_v30  ;;  %v9626_v52 = vpack.c.bf16 %v8071_v0, %v8070_v61 }
 0xc0b   : > { %v2361_v29 = vadd.f32 %v8067_v12, %v2352_v26  ;;  %v2370_v31 = vsel %vm957_vm6, %v2363_v28, 0.0  ;;  %9627 = vmatpush3.bf16.msra.mxu1 %v9626_v52 }
 0xc0c   : > { %2371 = vadd.xlane.f32.xlu0 %v2370_v31  ;;  %9628 = vmatprep.subr.bf16.mxu1 %v10352_v3 }
 0xc0d   : > { %v2364_v32 = vadd.f32 %v2361_v29, %v10621_v30 }
 0xc0f   : > { %v2373_v33 = vsel %vm957_vm6, %v2364_v32, 0.0  ;;  %9630 = vmatpush3.bf16.msra.mxu1 %v9629_v54 }
 0xc10   : > { %2374 = vadd.xlane.f32.xlu1 %v2373_v33  ;;  %9635 = vmatprep.subr.bf16.mxu1 %v10352_v3 }
 0xc95   : > { %v2369_v34 = vpop.xlane.xlu1 %2368 }
 0xc96   : > { %v2377_v37 = vmul.f32 0.03125, %v2369_v34 }
 0xc98   : > { %v2380_v39 = vsub.f32 %v2362_v22, %v2377_v37 }
 0xc99   : > { %v2372_v41 = vpop.xlane.xlu0 %2371 }
 0xc9a   : > { %v2378_v42 = vmul.f32 0.03125, %v2372_v41  ;;  %v2383_v43 = vmul.f32 %v2380_v39, %v2380_v39 }
 0xc9c   : > { %v2381_v44 = vsub.f32 %v2363_v28, %v2378_v42  ;;  %v2386_v45 = vsel %vm957_vm6, %v2383_v43, 0.0 }
 0xc9d   : > { %2387 = vadd.xlane.f32.xlu0 %v2386_v45  ;;  %v2375_v36 = vpop.xlane.xlu1 %2374 }
 0xc9e   : > { %v2379_v47 = vmul.f32 0.03125, %v2375_v36  ;;  %v2384_v48 = vmul.f32 %v2381_v44, %v2381_v44 }
 0xca0   : > { %v2382_v49 = vsub.f32 %v2364_v32, %v2379_v47  ;;  %v2389_v50 = vsel %vm957_vm6, %v2384_v48, 0.0 }
 0xca1   : > { %2390 = vadd.xlane.f32.xlu1 %v2389_v50 }
 0xca2   : > { %v2385_v30 = vmul.f32 %v2382_v49, %v2382_v49 }
 0xca4   : > { %v2392_v51 = vsel %vm957_vm6, %v2385_v30, 0.0 }
 0xca5   : > { %2393 = vadd.xlane.f32.xlu0 %v2392_v51 }
 0xd2a   : > { %v2388_v55 = vpop.xlane.xlu0 %2387 }
 0xd2b   : > { %v2395_v38 = vmul.f32 0.03125, %v2388_v55 }
 0xd2d   : > { %v2398_v56 = vadd.f32 1e-05, %v2395_v38 }
 0xd2e   : > { %v2391_v57 = vpop.xlane.xlu1 %2390 }
 0xd2f   : > { %10072 = vrsqrt.f32 %v2398_v56  ;;  %v2396_v40 = vmul.f32 0.03125, %v2391_v57 }
 0xd31   : > { %v2399_v58 = vadd.f32 1e-05, %v2396_v40 }
 0xd32   : > { %v2394_v59 = vpop.xlane.xlu0 %2393 }
 0xd33   : > { %10074 = vrsqrt.f32 %v2399_v58  ;;  %v2397_v60 = vmul.f32 0.03125, %v2394_v59 }
 0xd35   : > { %v2400_v62 = vadd.f32 1e-05, %v2397_v60 }
 0xd37   : > { %10076 = vrsqrt.f32 %v2400_v62 }
 0xd39   : > { %v10073_v4 = vpop.eup %10072 }
 0xd3a   : > { %v2404_v1 = vmul.f32 %v10073_v4, %v2380_v39 }
 0xd3c   : > { %v2413_v6 = vmul.f32 %v8068_v63, %v2404_v1 }
 0xd3d   : > { %v10075_v7 = vpop.eup %10074 }
 0xd3e   : > { %v10930_v9 = vadd.f32 %v8069_v2, %v2413_v6  ;;  %v2405_v10 = vmul.f32 %v10075_v7, %v2381_v44 }
 0xd40   : > { %8891 = vmatmul.mubr.msk.f32.vlgmr.msra.gmra.mrb[38].mxu1 %vm957_vm6, %v10930_v9  ;;  %v2414_v11 = vmul.f32 %v8068_v63, %v2405_v10 }
 0xd41   : > { %v10077_v12 = vpop.eup %10076  ;;  %8893 = vmatprep.mubr.msk.f32.mxu1 %vm10353_vm0, %v10354_v5 }
 0xd42   : > { %v10936_v13 = vadd.f32 %v8069_v2, %v2414_v11  ;;  %v2406_v14 = vmul.f32 %v10077_v12, %v2382_v49 }
 0xd44   : > { %8894 = vmatmul.mubr.msk.f32.gmra.mrb[40].mxu1 %vm957_vm6, %v10936_v13  ;;  %v2415_v15 = vmul.f32 %v8068_v63, %v2406_v14 }
 0xd45   : > { %8896 = vmatprep.mubr.msk.f32.mxu1 %vm10353_vm0, %v10354_v5 }
 0xd46   : > { %v10942_v16 = vadd.f32 %v8069_v2, %v2415_v15 }
 0xd48   : > { %8897 = vmatmul.mubr.msk.f32.gmra.mrb[42].mxu1 %vm957_vm6, %v10942_v16 }
 0xd49   : > { %8920 = vmatprep.mubr.msk.f32.mxu1 %vm10353_vm0, %v10354_v5 }
 0xe13   : > { %v2520_v17 = vpop.f32.mrb[38].mxu1 }
 0xe14   : > { %v8892_v20 = vpop.f32.mrb[39].mxu1  ;;  %v10951_v23 = vadd.f32 %v8080_v21, %v2520_v17 }
 0xe17   : > { %v2525_v22 = vpop.f32.mrb[40].mxu1 }
 0xe18   : > { %v10953_v24 = vadd.f32 %v8080_v21, %v2525_v22  ;;  %v8895_v25 = vpop.f32.mrb[41].mxu1 }
 0xe1a   : > { %v10957_v26 = vpack.i.bf16 %v10953_v24, %v10951_v23 }
 0xe1b   : > { %v2530_v27 = vpop.f32.mrb[42].mxu1 }
 0xe1c   : > { %v10959_v28 = vadd.f32 %v8080_v21, %v2530_v27  ;;  %9905 = vrot.lane.b32.xlu1 %v10957_v26, %s12325_s6  ;;  %v8898_v29 = vpop.f32.mrb[43].mxu1 }
 0xe1e   : > { %2541 = vrot.lane.b32.xlu0 %v10959_v28, %s12325_s6 }
 0xe20   : > { %9910 = vrot.lane.b32.xlu1 %v10957_v26, %s12326_s7 }
 0xe22   : > { %2769 = vrot.lane.b32.xlu0 %v10951_v23, %s12327_s2 }
 0xe24   : > { %2779 = vrot.lane.b32.xlu1 %v10959_v28, %s12326_s7 }
 0xe26   : > { %2773 = vrot.lane.b32.xlu0 %v10959_v28, %s12327_s2 }
 0xe28   : > { %2771 = vrot.lane.b32.xlu1 %v10953_v24, %s12327_s2 }
 0xe8e   : > { %v9906_v31 = vpop.permute.xlu1 %9905 }
 0xe8f   : > { %v9908_v32 = vunpack.i.h.bf16 %v9906_v31  ;;  %v9907_v33 = vunpack.i.l.bf16 %v9906_v31 }
 0xe90   : > { %v2542_v42 = vpop.permute.xlu0 %2541 }
 0xe91   : > { %v9632_v34 = vpack.c.bf16 %v9908_v32, %v9907_v33 }
 0xe92   : > { %v9911_v37 = vpop.permute.xlu1 %9910 }
 0xe93   : > { %9634 = vmatpush3.bf16.xpose.msk.msra.mxu0 %vm10664_vm8, %v9632_v34  ;;  %v9913_v39 = vunpack.i.h.bf16 %v9911_v37  ;;  %v9912_v41 = vunpack.i.l.bf16 %v9911_v37 }
 0xe94   : > { %8903 = vmatprep.subr.mxu0 %v10354_v5  ;;  %v2770_v45 = vpop.permute.xlu0 %2769 }
 0xe95   : > { %v9639_v43 = vpack.c.bf16 %v9913_v39, %v9912_v41 }
 0xe96   : > { %v2780_v44 = vpop.permute.xlu1 %2779 }
 0xe98   : > { %v2774_v47 = vpop.permute.xlu0 %2773 }
 0xe9a   : > { %v2772_v36 = vpop.permute.xlu1 %2771 }
 0xe9b   : > { %8904 = vmatpush3.xpose.msk.msra.mxu0 %vm1050_vm7, %v2542_v42 }
 0xe9c   : > { %9638 = vmatprep.subr.bf16.mxu0 %v10352_v3 }
 0xe9e   : > { %8906 = vmatmul.mubr.msk.f32.vlgmr.msra.gmra.mrb[44].mxu0 %vm1050_vm7, %v10951_v23 }
 0xe9f   : > { %9641 = vmatpush3.bf16.xpose.msk.msra.mxu0 %vm10664_vm8, %v9639_v43  ;;  %8908 = vmatprep.mubr.msk.f32.mxu0 %vm10353_vm0, %v10354_v5 }
 0xea0   : > { %8933 = vmatprep.subr.mxu0 %v10354_v5 }
 0xea2   : > { %8909 = vmatmul.mubr.msk.f32.gmra.mrb[46].mxu0 %vm1050_vm7, %v10953_v24 }
 0xea3   : > { %8911 = vmatprep.mubr.msk.f32.mxu0 %vm10353_vm0, %v10354_v5 }
 0xea6   : > { %8912 = vmatmul.mubr.msk.f32.gmra.mrb[48].mxu0 %vm1050_vm7, %v10959_v28 }
 0xea7   : > { %8934 = vmatpush3.xpose.msk.msra.mxu0 %vm1050_vm7, %v2780_v44  ;;  %8935 = vmatprep.mubr.msk.f32.mxu0 %vm10353_vm0, %v10354_v5 }
 0xea8   : > { %8959 = vmatprep.subr.mxu0 %v10354_v5 }
 0xeaa   : > { %8936 = vmatmul.mubr.msk.f32.vlgmr.msra.gmra.mrb[50].mxu0 %vm1050_vm7, %v2770_v45 }
 0xeab   : > { %8938 = vmatprep.mubr.msk.f32.mxu0 %vm10353_vm0, %v10354_v5 }
 0xeae   : > { %8939 = vmatmul.mubr.msk.f32.gmra.mrb[52].mxu0 %vm1050_vm7, %v2772_v36 }
 0xeaf   : > { %8941 = vmatprep.mubr.msk.f32.mxu0 %vm10353_vm0, %v10354_v5 }
 0xeb2   : > { %8942 = vmatmul.mubr.msk.f32.gmra.mrb[54].mxu0 %vm1050_vm7, %v2774_v47 }
 0xeb3   : > { %8961 = vmatprep.mubr.msk.f32.mxu0 %vm10353_vm0, %v10354_v5 }
 0xf71   : > { %v2621_v48 = vpop.f32.mrb[44].mxu0 }
 0xf72   : > { %v2635_v49 = vmul.f32 0.35355338, %v2621_v48  ;;  %v8907_v50 = vpop.f32.mrb[45].mxu0 }
 0xf74   : > { %v2638_v30 = vsel %vm855_vm3, %v2635_v49, -inf }
 0xf75   : > { %2639 = vmax.xlane.f32.xlu1 %v2638_v30  ;;  %v2626_v51 = vpop.f32.mrb[46].mxu0 }
 0xf76   : > { %v2636_v61 = vmul.f32 0.35355338, %v2626_v51  ;;  %v8910_v0 = vpop.f32.mrb[47].mxu0 }
 0xf78   : > { %v2641_v52 = vsel %vm855_vm3, %v2636_v61, -inf }
 0xf79   : > { %2642 = vmax.xlane.f32.xlu0 %v2641_v52  ;;  %v2631_v35 = vpop.f32.mrb[48].mxu0 }
 0xf7a   : > { %v2637_v53 = vmul.f32 0.35355338, %v2631_v35  ;;  %v8913_v54 = vpop.f32.mrb[49].mxu0 }
 0xf7c   : > { %v2644_v55 = vsel %vm855_vm3, %v2637_v53, -inf }
 0xf7d   : > { %2645 = vmax.xlane.f32.xlu0 %v2644_v55  ;;  %v2859_v38 = vpop.f32.mrb[50].mxu0 }
 0xf7e   : > { %v2873_v56 = vmul.f32 0.35355338, %v2859_v38  ;;  %v8937_v57 = vpop.f32.mrb[51].mxu0 }
 0xf80   : > { %v2876_v40 = vsel %vm855_vm3, %v2873_v56, -inf }
 0xf81   : > { %2877 = vmax.xlane.f32.xlu1 %v2876_v40  ;;  %v2864_v58 = vpop.f32.mrb[52].mxu0 }
 0xf82   : > { %v2874_v59 = vmul.f32 0.35355338, %v2864_v58  ;;  %v8940_v60 = vpop.f32.mrb[53].mxu0 }
 0xf84   : > { %v2879_v62 = vsel %vm855_vm3, %v2874_v59, -inf }
 0xf85   : > { %2880 = vmax.xlane.f32.xlu0 %v2879_v62  ;;  %v2869_v4 = vpop.f32.mrb[54].mxu0 }
 0xf86   : > { %v2875_v63 = vmul.f32 0.35355338, %v2869_v4  ;;  %v8943_v1 = vpop.f32.mrb[55].mxu0 }
 0xf88   : > { %v2882_v2 = vsel %vm855_vm3, %v2875_v63, -inf }
 0xf89   : > { %2883 = vmax.xlane.f32.xlu1 %v2882_v2 }
 0xf9a   : > { %9915 = vrot.lane.b32.xlu1 %v10957_v26, %s12328_s1 }
0x1002   : > { %v2640_v6 = vpop.xlane.xlu1 %2639 }
0x1003   : > { %v2647_v7 = vsub.f32 %v2635_v49, %v2640_v6 }
0x1005   : > { %v2650_v10 = vmul.f32 1.442695, %v2647_v7 }
0x1006   : > { %v2643_v11 = vpop.xlane.xlu0 %2642 }
0x1007   : > { %10078 = vpow2.f32 %v2650_v10  ;;  %v2648_v12 = vsub.f32 %v2636_v61, %v2643_v11 }
0x1009   : > { %v2652_v14 = vmul.f32 1.442695, %v2648_v12 }
0x100a   : > { %v2646_v15 = vpop.xlane.xlu0 %2645 }
0x100b   : > { %10080 = vpow2.f32 %v2652_v14  ;;  %v2649_v17 = vsub.f32 %v2637_v53, %v2646_v15 }
0x100d   : > { %v2654_v20 = vmul.f32 1.442695, %v2649_v17  ;;  %v8075_v17 = vld [vmem:[%s12323_s4 + $0x20] sm:$0xff] }
0x100e   : > { %v2878_v21 = vpop.xlane.xlu1 %2877 }
0x100f   : > { %10082 = vpow2.f32 %v2654_v20  ;;  %v2885_v22 = vsub.f32 %v2873_v56, %v2878_v21  ;;  %v8076_v20 = vld [vmem:[%s12323_s4 + $0x28] sm:$0xff] }
0x1010   : > { %8960 = vmatpush3.msra.mxu0 %v8076_v20 }
0x1011   : > { %v10079_v25 = vpop.eup %10078  ;;  %v2888_v27 = vmul.f32 1.442695, %v2885_v22  ;;  %9645 = vmatprep.subr.bf16.mxu0 %v10352_v3 }
0x1012   : > { %v2881_v29 = vpop.xlane.xlu0 %2880  ;;  %v2656_v31 = vsel %vm855_vm3, %v10079_v25, 0.0 }
0x1013   : > { %10084 = vpow2.f32 %v2888_v27  ;;  %v2886_v32 = vsub.f32 %v2874_v59, %v2881_v29  ;;  %2657 = vadd.xlane.f32.xlu0 %v2656_v31 }
0x1015   : > { %v10081_v33 = vpop.eup %10080  ;;  %v2890_v34 = vmul.f32 1.442695, %v2886_v32 }
0x1016   : > { %v2884_v37 = vpop.xlane.xlu1 %2883  ;;  %v2659_v39 = vsel %vm855_vm3, %v10081_v33, 0.0 }
0x1017   : > { %10086 = vpow2.f32 %v2890_v34  ;;  %v2887_v41 = vsub.f32 %v2875_v63, %v2884_v37  ;;  %2660 = vadd.xlane.f32.xlu1 %v2659_v39 }
0x1019   : > { %v10083_v42 = vpop.eup %10082  ;;  %v2892_v43 = vmul.f32 1.442695, %v2887_v41 }
0x101a   : > { %v9916_v44 = vpop.permute.xlu1 %9915  ;;  %v2662_v45 = vsel %vm855_vm3, %v10083_v42, 0.0 }
0x101b   : > { %10088 = vpow2.f32 %v2892_v43  ;;  %v9918_v36 = vunpack.i.h.bf16 %v9916_v44  ;;  %v9917_v47 = vunpack.i.l.bf16 %v9916_v44  ;;  %2663 = vadd.xlane.f32.xlu0 %v2662_v45 }
0x101d   : > { %v10085_v48 = vpop.eup %10084  ;;  %v9636_v49 = vpack.c.bf16 %v9918_v36, %v9917_v47 }
0x101e   : > { %v2894_v50 = vsel %vm855_vm3, %v10085_v48, 0.0 }
0x101f   : > { %2895 = vadd.xlane.f32.xlu1 %v2894_v50  ;;  %9637 = vmatpush3.bf16.msra.mxu1 %v9636_v49 }
0x1020   : > { %8918 = vmatprep.subr.mxu1 %v10354_v5 }
0x1021   : > { %v10087_v30 = vpop.eup %10086 }
0x1022   : > { %v2897_v51 = vsel %vm855_vm3, %v10087_v30, 0.0 }
0x1023   : > { %2898 = vadd.xlane.f32.xlu0 %v2897_v51 }
0x1025   : > { %v10089_v61 = vpop.eup %10088 }
0x1026   : > { %v2900_v0 = vsel %vm855_vm3, %v10089_v61, 0.0 }
0x1027   : > { %2901 = vadd.xlane.f32.xlu0 %v2900_v0 }
0x1030   : > { %9920 = vrot.lane.b32.xlu1 %v10957_v26, %s12329_s9 }
0x1034   : > { %2913 = vrot.lane.b32.xlu1 %v10959_v28, %s12329_s9 }
0x1038   : > { %9925 = vrot.lane.b32.xlu1 %v10957_v26, %s12330_s0 }
0x103c   : > { %3185 = vrot.lane.b32.xlu1 %v10951_v23, %s12331_s8 }
0x103d   : > { %2675 = vrot.lane.b32.xlu0 %v10959_v28, %s12328_s1 }
0x1040   : > { %3189 = vrot.lane.b32.xlu1 %v10959_v28, %s12331_s8 }
0x1041   : > { %3195 = vrot.lane.b32.xlu0 %v10959_v28, %s12330_s0 }
0x1045   : > { %3187 = vrot.lane.b32.xlu0 %v10953_v24, %s12331_s8 }
0x10a0   : > { %v2658_v52 = vpop.xlane.xlu0 %2657 }
0x10a1   : > { %10090 = vrcp.f32 %v2658_v52 }
0x10a4   : > { %v2661_v35 = vpop.xlane.xlu1 %2660 }
0x10a5   : > { %10092 = vrcp.f32 %v2661_v35 }
0x10a8   : > { %v2664_v53 = vpop.xlane.xlu0 %2663 }
0x10a9   : > { %10094 = vrcp.f32 %v2664_v53 }
0x10ab   : > { %v10091_v57 = vpop.eup %10090 }
0x10ac   : > { %v2896_v54 = vpop.xlane.xlu1 %2895  ;;  %v2668_v59 = vmul.f32 %v10091_v57, %v10079_v25 }
0x10ad   : > { %10096 = vrcp.f32 %v2896_v54 }
0x10af   : > { %v10093_v62 = vpop.eup %10092 }
0x10b0   : > { %v2899_v55 = vpop.xlane.xlu0 %2898  ;;  %v9921_v38 = vpop.permute.xlu1 %9920  ;;  %v2669_v63 = vmul.f32 %v10093_v62, %v10081_v33 }
0x10b1   : > { %v9923_v40 = vunpack.i.h.bf16 %v9921_v38  ;;  %v9922_v58 = vunpack.i.l.bf16 %v9921_v38  ;;  %10098 = vrcp.f32 %v2899_v55 }
0x10b3   : > { %v9643_v4 = vpack.c.bf16 %v9923_v40, %v9922_v58  ;;  %v10095_v1 = vpop.eup %10094 }
0x10b4   : > { %v2902_v56 = vpop.xlane.xlu0 %2901  ;;  %v2914_v2 = vpop.permute.xlu1 %2913  ;;  %v2670_v6 = vmul.f32 %v10095_v1, %v10083_v42 }
0x10b5   : > { %10100 = vrcp.f32 %v2902_v56 }
0x10b7   : > { %v10097_v7 = vpop.eup %10096 }
0x10b8   : > { %v2676_v60 = vpop.permute.xlu0 %2675  ;;  %v2906_v10 = vmul.f32 %v10097_v7, %v10085_v48  ;;  %v9926_v27 = vpop.permute.xlu1 %9925 }
0x10b9   : > { %8919 = vmatpush3.msra.mxu1 %v2676_v60  ;;  %v9928_v31 = vunpack.i.h.bf16 %v9926_v27  ;;  %v9927_v32 = vunpack.i.l.bf16 %v9926_v27 }
0x10ba   : > { %8921 = vmatmul.mubr.msk.f32.vlgmr.msra.gmra.mrb[44].mxu1 %vm855_vm3, %v2668_v59  ;;  %9642 = vmatprep.subr.bf16.mxu1 %v10352_v3 }
0x10bb   : > { %9644 = vmatpush3.bf16.msra.mxu1 %v9643_v4  ;;  %8923 = vmatprep.mubr.msk.f32.mxu1 %vm10353_vm0, %v10354_v5  ;;  %v10099_v11 = vpop.eup %10098  ;;  %v9646_v37 = vpack.c.bf16 %v9928_v31, %v9927_v32 }
0x10bc   : > { %8948 = vmatprep.subr.mxu1 %v10354_v5  ;;  %v2907_v12 = vmul.f32 %v10099_v11, %v10087_v30  ;;  %v3196_v45 = vpop.permute.xlu0 %3195  ;;  %v3186_v47 = vpop.permute.xlu1 %3185 }
0x10be   : > { %8924 = vmatmul.mubr.msk.f32.gmra.mrb[46].mxu1 %vm855_vm3, %v2669_v63 }
0x10bf   : > { %8949 = vmatpush3.msra.mxu1 %v2914_v2  ;;  %8926 = vmatprep.mubr.msk.f32.mxu1 %vm10353_vm0, %v10354_v5  ;;  %v10101_v14 = vpop.eup %10100 }
0x10c0   : > { %8970 = vmatprep.subr.mxu1 %v10354_v5  ;;  %v2908_v15 = vmul.f32 %v10101_v14, %v10089_v61  ;;  %v3188_v48 = vpop.permute.xlu0 %3187  ;;  %v3190_v49 = vpop.permute.xlu1 %3189 }
0x10c2   : > { %8927 = vmatmul.mubr.msk.f32.gmra.mrb[48].mxu1 %vm855_vm3, %v2670_v6 }
0x10c3   : > { %8950 = vmatprep.mubr.msk.f32.mxu1 %vm10353_vm0, %v10354_v5 }
0x10c6   : > { %8951 = vmatmul.mubr.msk.f32.vlgmr.msra.gmra.mrb[50].mxu1 %vm855_vm3, %v2906_v10 }
0x10c7   : > { %8953 = vmatprep.mubr.msk.f32.mxu1 %vm10353_vm0, %v10354_v5  ;;  %8971 = vmatpush3.msra.mxu1 %v8075_v17 }
0x10c8   : > { %9649 = vmatprep.subr.bf16.mxu1 %v10352_v3 }
0x10ca   : > { %8954 = vmatmul.mubr.msk.f32.gmra.mrb[52].mxu1 %vm855_vm3, %v2907_v12 }
0x10cb   : > { %8956 = vmatprep.mubr.msk.f32.mxu1 %vm10353_vm0, %v10354_v5 }
0x10ce   : > { %8957 = vmatmul.mubr.msk.f32.gmra.mrb[54].mxu1 %vm855_vm3, %v2908_v15 }
0x10cf   : > { %8972 = vmatprep.mubr.msk.f32.mxu1 %vm10353_vm0, %v10354_v5 }
0x118d   : > { %v2755_v21 = vpop.f32.mrb[44].mxu1 }
0x118e   : > { %v8922_v22 = vpop.f32.mrb[45].mxu1  ;;  %8973 = vmatmul.mubr.msk.f32.vlgmr.msra.gmra.mrb[56].mxu1 %vm1050_vm7, %v2755_v21 }
0x118f   : > { %8975 = vmatprep.mubr.msk.f32.mxu1 %vm10353_vm0, %v10354_v5 }
0x1191   : > { %v2760_v25 = vpop.f32.mrb[46].mxu1 }
0x1192   : > { %v8925_v29 = vpop.f32.mrb[47].mxu1  ;;  %8976 = vmatmul.mubr.msk.f32.gmra.mrb[58].mxu1 %vm1050_vm7, %v2760_v25 }
0x1193   : > { %8978 = vmatprep.mubr.msk.f32.mxu1 %vm10353_vm0, %v10354_v5 }
0x1195   : > { %v2765_v33 = vpop.f32.mrb[48].mxu1 }
0x1196   : > { %v8928_v34 = vpop.f32.mrb[49].mxu1  ;;  %8979 = vmatmul.mubr.msk.f32.gmra.mrb[60].mxu1 %vm1050_vm7, %v2765_v33 }
0x1197   : > { %9002 = vmatprep.mubr.msk.f32.mxu1 %vm10353_vm0, %v10354_v5 }
0x1199   : > { %v2993_v39 = vpop.f32.mrb[50].mxu1 }
0x119a   : > { %v8952_v41 = vpop.f32.mrb[51].mxu1  ;;  %8962 = vmatmul.mubr.msk.f32.vlgmr.msra.gmra.mrb[56].mxu0 %vm1050_vm7, %v2993_v39 }
0x119b   : > { %9648 = vmatpush3.bf16.xpose.msk.msra.mxu0 %vm10664_vm8, %v9646_v37  ;;  %8964 = vmatprep.mubr.msk.f32.mxu0 %vm10353_vm0, %v10354_v5 }
0x119c   : > { %8985 = vmatprep.subr.mxu0 %v10354_v5 }
0x119d   : > { %v2998_v42 = vpop.f32.mrb[52].mxu1 }
0x119e   : > { %v8955_v43 = vpop.f32.mrb[53].mxu1  ;;  %8965 = vmatmul.mubr.msk.f32.gmra.mrb[58].mxu0 %vm1050_vm7, %v2998_v42 }
0x119f   : > { %8967 = vmatprep.mubr.msk.f32.mxu0 %vm10353_vm0, %v10354_v5 }
0x11a1   : > { %v3003_v44 = vpop.f32.mrb[54].mxu1 }
0x11a2   : > { %v8958_v36 = vpop.f32.mrb[55].mxu1  ;;  %8968 = vmatmul.mubr.msk.f32.gmra.mrb[60].mxu0 %vm1050_vm7, %v3003_v44 }
0x11a3   : > { %8986 = vmatpush3.xpose.msk.msra.mxu0 %vm1050_vm7, %v3196_v45  ;;  %8987 = vmatprep.mubr.msk.f32.mxu0 %vm10353_vm0, %v10354_v5 }
0x11a4   : > { %9011 = vmatprep.subr.mxu0 %v10354_v5 }
0x11a6   : > { %8988 = vmatmul.mubr.msk.f32.vlgmr.msra.gmra.mrb[62].mxu0 %vm1050_vm7, %v3186_v47 }
0x11a7   : > { %8990 = vmatprep.mubr.msk.f32.mxu0 %vm10353_vm0, %v10354_v5 }
0x11aa   : > { %8991 = vmatmul.mubr.msk.f32.gmra.mrb[64].mxu0 %vm1050_vm7, %v3188_v48 }
0x11ab   : > { %8993 = vmatprep.mubr.msk.f32.mxu0 %vm10353_vm0, %v10354_v5 }
0x11ae   : > { %8994 = vmatmul.mubr.msk.f32.gmra.mrb[66].mxu0 %vm1050_vm7, %v3190_v49 }
0x11af   : > { %9013 = vmatprep.mubr.msk.f32.mxu0 %vm10353_vm0, %v10354_v5 }
0x1261   : > { %v3171_v50 = vpop.f32.mrb[56].mxu1 }
0x1262   : > { %v8974_v30 = vpop.f32.mrb[57].mxu1 }
0x1265   : > { %v3176_v51 = vpop.f32.mrb[58].mxu1 }
0x1266   : > { %v8977_v61 = vpop.f32.mrb[59].mxu1 }
0x1269   : > { %v3181_v0 = vpop.f32.mrb[60].mxu1 }
0x126a   : > { %v8980_v52 = vpop.f32.mrb[61].mxu1 }
0x126d   : > { %v3082_v35 = vpop.f32.mrb[56].mxu0 }
0x126e   : > { %v11098_v53 = vadd.f32 %v3171_v50, %v3082_v35  ;;  %v8963_v54 = vpop.f32.mrb[57].mxu0 }
0x1271   : > { %v3087_v55 = vpop.f32.mrb[58].mxu0 }
0x1272   : > { %v11100_v38 = vadd.f32 %v3176_v51, %v3087_v55  ;;  %v8966_v56 = vpop.f32.mrb[59].mxu0 }
0x1275   : > { %v3092_v57 = vpop.f32.mrb[60].mxu0 }
0x1276   : > { %v11102_v40 = vadd.f32 %v3181_v0, %v3092_v57  ;;  %v8969_v58 = vpop.f32.mrb[61].mxu0 }
0x1277   : > { %v8077_v58 = vld [vmem:[%s12323_s4 + $0x30] sm:$0xff] }
0x1278   : > { %9012 = vmatpush3.msra.mxu0 %v8077_v58 }
0x1279   : > { %v3275_v59 = vpop.f32.mrb[62].mxu0  ;;  %9656 = vmatprep.subr.bf16.mxu0 %v10352_v3 }
0x127a   : > { %v3289_v60 = vmul.f32 0.35355338, %v3275_v59  ;;  %v8989_v62 = vpop.f32.mrb[63].mxu0 }
0x127c   : > { %v3292_v4 = vsel %vm855_vm3, %v3289_v60, -inf }
0x127d   : > { %3293 = vmax.xlane.f32.xlu0 %v3292_v4  ;;  %v3280_v63 = vpop.f32.mrb[64].mxu0 }
0x127e   : > { %v3290_v1 = vmul.f32 0.35355338, %v3280_v63  ;;  %v8992_v2 = vpop.f32.mrb[65].mxu0 }
0x1280   : > { %v3295_v6 = vsel %vm855_vm3, %v3290_v1, -inf }
0x1281   : > { %3296 = vmax.xlane.f32.xlu1 %v3295_v6  ;;  %v3285_v7 = vpop.f32.mrb[66].mxu0 }
0x1282   : > { %v3291_v10 = vmul.f32 0.35355338, %v3285_v7  ;;  %v8995_v11 = vpop.f32.mrb[67].mxu0 }
0x1284   : > { %v3298_v12 = vsel %vm855_vm3, %v3291_v10, -inf }
0x1285   : > { %3299 = vmax.xlane.f32.xlu0 %v3298_v12 }
0x1292   : > { %9930 = vrot.lane.b32.xlu1 %v10957_v26, %s12332_s26 }
0x1296   : > { %9935 = vrot.lane.b32.xlu1 %v10957_v26, %s12333_s21 }
0x130a   : > { %v3294_v14 = vpop.xlane.xlu0 %3293 }
0x130b   : > { %v3301_v15 = vsub.f32 %v3289_v60, %v3294_v14 }
0x130d   : > { %v3304_v17 = vmul.f32 1.442695, %v3301_v15 }
0x130e   : > { %v3297_v20 = vpop.xlane.xlu1 %3296 }
0x130f   : > { %10102 = vpow2.f32 %v3304_v17  ;;  %v3302_v21 = vsub.f32 %v3290_v1, %v3297_v20 }
0x1311   : > { %v3306_v22 = vmul.f32 1.442695, %v3302_v21 }
0x1312   : > { %v9931_v25 = vpop.permute.xlu1 %9930  ;;  %v3300_v39 = vpop.xlane.xlu0 %3299 }
0x1313   : > { %10104 = vpow2.f32 %v3306_v22  ;;  %v9933_v27 = vunpack.i.h.bf16 %v9931_v25  ;;  %v9932_v29 = vunpack.i.l.bf16 %v9931_v25  ;;  %v3303_v41 = vsub.f32 %v3291_v10, %v3300_v39 }
0x1315   : > { %v9650_v31 = vpack.c.bf16 %v9933_v27, %v9932_v29  ;;  %v3308_v42 = vmul.f32 1.442695, %v3303_v41 }
0x1316   : > { %v9936_v45 = vpop.permute.xlu1 %9935 }
0x1317   : > { %9651 = vmatpush3.bf16.msra.mxu1 %v9650_v31  ;;  %10106 = vpow2.f32 %v3308_v42  ;;  %v9937_v49 = vunpack.i.l.bf16 %v9936_v45 }
0x1318   : > { %9000 = vmatprep.subr.mxu1 %v10354_v5 }
0x1319   : > { %v10103_v32 = vpop.eup %10102 }
0x131a   : > { %v3310_v33 = vsel %vm855_vm3, %v10103_v32, 0.0 }
0x131b   : > { %3311 = vadd.xlane.f32.xlu0 %v3310_v33 }
0x131d   : > { %v10105_v34 = vpop.eup %10104 }
0x131e   : > { %v3313_v37 = vsel %vm855_vm3, %v10105_v34, 0.0 }
0x131f   : > { %3314 = vadd.xlane.f32.xlu1 %v3313_v37 }
0x1321   : > { %v10107_v43 = vpop.eup %10106 }
0x1322   : > { %v3316_v44 = vsel %vm855_vm3, %v10107_v43, 0.0 }
0x1330   : > { %3525 = vrot.lane.b32.xlu1 %v10959_v28, %s12333_s21 }
0x1331   : > { %3329 = vrot.lane.b32.xlu0 %v10959_v28, %s12332_s26 }
0x1334   : > { %3517 = vrot.lane.b32.xlu1 %v10953_v24, %s12334_s28  ;;  %v9938_v24 = vunpack.i.h.bf16 %v9936_v45 }
0x1336   : > { %v9653_v51 = vpack.c.bf16 %v9938_v24, %v9937_v49 }
0x1350   : > { %3317 = vadd.xlane.f32.xlu0 %v3316_v44 }
0x1366   : > { %3515 = vrot.lane.b32.xlu0 %v10951_v23, %s12334_s28 }
0x136a   : > { %3519 = vrot.lane.b32.xlu0 %v10959_v28, %s12334_s28 }
0x13a8   : > { %v3312_v36 = vpop.xlane.xlu0 %3311 }
0x13a9   : > { %10108 = vrcp.f32 %v3312_v36 }
0x13ac   : > { %v3315_v47 = vpop.xlane.xlu1 %3314  ;;  %v3330_v48 = vpop.permute.xlu0 %3329 }
0x13ad   : > { %10110 = vrcp.f32 %v3315_v47  ;;  %9001 = vmatpush3.msra.mxu1 %v3330_v48 }
0x13ae   : > { %9652 = vmatprep.subr.bf16.mxu1 %v10352_v3 }
0x13b0   : > { %v3526_v0 = vpop.permute.xlu1 %3525 }
0x13b3   : > { %v10109_v50 = vpop.eup %10108 }
0x13b4   : > { %v3322_v30 = vmul.f32 %v10109_v50, %v10103_v32  ;;  %v3518_v56 = vpop.permute.xlu1 %3517 }
0x13b6   : > { %9003 = vmatmul.mubr.msk.f32.vlgmr.msra.gmra.mrb[62].mxu1 %vm855_vm3, %v3322_v30 }
0x13b7   : > { %v10111_v23 = vpop.eup %10110  ;;  %9655 = vmatpush3.bf16.xpose.msk.msra.mxu1 %vm10664_vm8, %v9653_v51  ;;  %9005 = vmatprep.mubr.msk.f32.mxu1 %vm10353_vm0, %v10354_v5 }
0x13b8   : > { %v3323_v61 = vmul.f32 %v10111_v23, %v10105_v34  ;;  %9026 = vmatprep.subr.mxu1 %v10354_v5 }
0x13ba   : > { %9006 = vmatmul.mubr.msk.f32.gmra.mrb[64].mxu1 %vm855_vm3, %v3323_v61 }
0x13bb   : > { %9008 = vmatprep.mubr.msk.f32.mxu1 %vm10353_vm0, %v10354_v5 }
0x13bf   : > { %9027 = vmatpush3.xpose.msk.msra.mxu1 %vm1050_vm7, %v3526_v0 }
0x13c0   : > { %9052 = vmatprep.subr.mxu1 %v10354_v5 }
0x13dd   : > { %v3318_v52 = vpop.xlane.xlu0 %3317 }
0x13de   : > { %10112 = vrcp.f32 %v3318_v52 }
0x13e1   : > { %v3516_v55 = vpop.permute.xlu0 %3515 }
0x13e5   : > { %v3520_v57 = vpop.permute.xlu0 %3519 }
0x13e8   : > { %v10113_v35 = vpop.eup %10112 }
0x13e9   : > { %v3324_v54 = vmul.f32 %v10113_v35, %v10107_v43 }
0x13eb   : > { %9009 = vmatmul.mubr.msk.f32.gmra.mrb[66].mxu1 %vm855_vm3, %v3324_v54 }
0x13ec   : > { %9028 = vmatprep.mubr.msk.f32.mxu1 %vm10353_vm0, %v10354_v5 }
0x13ef   : > { %9029 = vmatmul.mubr.msk.f32.vlgmr.msra.gmra.mrb[68].mxu1 %vm1050_vm7, %v3516_v55 }
0x13f0   : > { %9031 = vmatprep.mubr.msk.f32.mxu1 %vm10353_vm0, %v10354_v5 }
0x13f3   : > { %9032 = vmatmul.mubr.msk.f32.gmra.mrb[70].mxu1 %vm1050_vm7, %v3518_v56 }
0x13f4   : > { %9034 = vmatprep.mubr.msk.f32.mxu1 %vm10353_vm0, %v10354_v5 }
0x13f7   : > { %9035 = vmatmul.mubr.msk.f32.gmra.mrb[72].mxu1 %vm1050_vm7, %v3520_v57 }
0x13f8   : > { %9054 = vmatprep.mubr.msk.f32.mxu1 %vm10353_vm0, %v10354_v5 }
0x1489   : > { %v3409_v59 = vpop.f32.mrb[62].mxu1 }
0x148a   : > { %v9004_v60 = vpop.f32.mrb[63].mxu1  ;;  %9014 = vmatmul.mubr.msk.f32.vlgmr.msra.gmra.mrb[68].mxu0 %vm1050_vm7, %v3409_v59 }
0x148b   : > { %9016 = vmatprep.mubr.msk.f32.mxu0 %vm10353_vm0, %v10354_v5 }
0x148d   : > { %v3414_v62 = vpop.f32.mrb[64].mxu1 }
0x148e   : > { %v9007_v4 = vpop.f32.mrb[65].mxu1  ;;  %9017 = vmatmul.mubr.msk.f32.gmra.mrb[70].mxu0 %vm1050_vm7, %v3414_v62 }
0x148f   : > { %9019 = vmatprep.mubr.msk.f32.mxu0 %vm10353_vm0, %v10354_v5 }
0x14be   : > { %v3419_v63 = vpop.f32.mrb[66].mxu1 }
0x14bf   : > { %v9010_v1 = vpop.f32.mrb[67].mxu1  ;;  %9020 = vmatmul.mubr.msk.f32.gmra.mrb[72].mxu0 %vm1050_vm7, %v3419_v63 }
0x14c0   : > { %9043 = vmatprep.mubr.msk.f32.mxu0 %vm10353_vm0, %v10354_v5 }
0x14c2   : > { %v3605_v2 = vpop.f32.mrb[68].mxu1 }
0x14c3   : > { %v3619_v6 = vmul.f32 0.35355338, %v3605_v2  ;;  %v9030_v7 = vpop.f32.mrb[69].mxu1 }
0x14c4   : > { %v8132_v7 = vld [vmem:[%s12324_s5 + $0x1] ss:$0 sm:$0xff] }
0x14c5   : > { %v3622_v10 = vsel %vm855_vm3, %v3619_v6, -inf }
0x14c6   : > { %3623 = vmax.xlane.f32.xlu1 %v3622_v10  ;;  %v3610_v11 = vpop.f32.mrb[70].mxu1 }
0x14c7   : > { %v3620_v12 = vmul.f32 0.35355338, %v3610_v11  ;;  %v9033_v14 = vpop.f32.mrb[71].mxu1 }
0x14c9   : > { %v3625_v15 = vsel %vm855_vm3, %v3620_v12, -inf }
0x14ca   : > { %3626 = vmax.xlane.f32.xlu0 %v3625_v15  ;;  %v3615_v17 = vpop.f32.mrb[72].mxu1 }
0x14cb   : > { %v3621_v20 = vmul.f32 0.35355338, %v3615_v17  ;;  %v9036_v21 = vpop.f32.mrb[73].mxu1 }
0x14cd   : > { %v3628_v22 = vsel %vm855_vm3, %v3621_v20, -inf }
0x14ce   : > { %3629 = vmax.xlane.f32.xlu0 %v3628_v22 }
0x1553   : > { %v3624_v25 = vpop.xlane.xlu1 %3623 }
0x1554   : > { %v3631_v27 = vsub.f32 %v3619_v6, %v3624_v25 }
0x1556   : > { %v3634_v29 = vmul.f32 1.442695, %v3631_v27 }
0x1557   : > { %v3627_v31 = vpop.xlane.xlu0 %3626 }
0x1558   : > { %10114 = vpow2.f32 %v3634_v29  ;;  %v3632_v32 = vsub.f32 %v3620_v12, %v3627_v31 }
0x155a   : > { %v3636_v33 = vmul.f32 1.442695, %v3632_v32 }
0x155b   : > { %v3630_v34 = vpop.xlane.xlu0 %3629 }
0x155c   : > { %10116 = vpow2.f32 %v3636_v33  ;;  %v3633_v37 = vsub.f32 %v3621_v20, %v3630_v34 }
0x155d   : > { %v3498_v39 = vpop.f32.mrb[68].mxu0 }
0x155e   : > { %v3638_v41 = vmul.f32 1.442695, %v3633_v37  ;;  %v11166_v42 = vadd.f32 %v3498_v39, %v11098_v53  ;;  %v9015_v43 = vpop.f32.mrb[69].mxu0  ;;  %v8078_v53 = vld [vmem:[%s12323_s4 + $0x38] sm:$0xff] }
0x155f   : > { %9053 = vmatpush3.msra.mxu1 %v8078_v53  ;;  %v3918_v53 = vld [vmem:[%s12223_s14] sm:$0xff] }
0x1560   : > { %10118 = vpow2.f32 %v3638_v41  ;;  %9665 = vmatprep.subr.bf16.mxu1 %v10352_v3 }
0x1561   : > { %v3503_v44 = vpop.f32.mrb[70].mxu0 }
0x1562   : > { %v10115_v45 = vpop.eup %10114  ;;  %v11169_v36 = vadd.f32 %v3503_v44, %v11100_v38  ;;  %v9018_v47 = vpop.f32.mrb[71].mxu0 }
0x1563   : > { %v3640_v48 = vsel %vm855_vm3, %v10115_v45, 0.0 }
0x1564   : > { %3641 = vadd.xlane.f32.xlu1 %v3640_v48 }
0x1566   : > { %v10117_v24 = vpop.eup %10116 }
0x1567   : > { %v3643_v49 = vsel %vm855_vm3, %v10117_v24, 0.0 }
0x1568   : > { %3644 = vadd.xlane.f32.xlu0 %v3643_v49 }
0x156a   : > { %v10119_v50 = vpop.eup %10118 }
0x156b   : > { %v3646_v30 = vsel %vm855_vm3, %v10119_v50, 0.0 }
0x156c   : > { %3647 = vadd.xlane.f32.xlu1 %v3646_v30 }
0x157d   : > { %3659 = vrot.lane.b32.xlu1 %v10959_v28, %s12335_s23 }
0x157e   : > { %9940 = vrot.lane.b32.xlu0 %v10957_v26, %s12335_s23 }
0x1592   : > { %v3508_v38 = vpop.f32.mrb[72].mxu0 }
0x1593   : > { %v3514_v51 = vadd.f32 %v3508_v38, %v11102_v40  ;;  %v9021_v23 = vpop.f32.mrb[73].mxu0  ;;  %v3919_v38 = vld [vmem:[%s12223_s14 + $0x8] sm:$0xff] }
0x1594   : > { %v3920_v23 = vld [vmem:[%s12223_s14 + $0x10] sm:$0xff] }
0x15f1   : > { %v3642_v61 = vpop.xlane.xlu1 %3641 }
0x15f2   : > { %10120 = vrcp.f32 %v3642_v61  ;;  %v3921_v61 = vld [vmem:[%s12223_s14 + $0x18] sm:$0xff] }
0x15f5   : > { %v3645_v0 = vpop.xlane.xlu0 %3644 }
0x15f6   : > { %10122 = vrcp.f32 %v3645_v0  ;;  %v9663_v0 = vpack.c.bf16 %v3921_v61, %v3920_v23 }
0x15f9   : > { %v3648_v52 = vpop.xlane.xlu1 %3647  ;;  %v9941_v28 = vpop.permute.xlu0 %9940 }
0x15fa   : > { %v9943_v35 = vunpack.i.h.bf16 %v9941_v28  ;;  %v9942_v54 = vunpack.i.l.bf16 %v9941_v28  ;;  %10124 = vrcp.f32 %v3648_v52  ;;  %v4021_v52 = vld [vmem:[%s12225_s16] sm:$0xff]  ;;  %v4022_v28 = vld [vmem:[%s12225_s16 + $0x8] sm:$0xff] }
0x15fc   : > { %v9657_v26 = vpack.c.bf16 %v9943_v35, %v9942_v54  ;;  %v10121_v55 = vpop.eup %10120  ;;  %v4023_v35 = vld [vmem:[%s12225_s16 + $0x10] sm:$0xff]  ;;  %v9666_v54 = vpack.c.bf16 %v4022_v28, %v4021_v52 }
0x15fd   : > { %v3652_v56 = vmul.f32 %v10121_v55, %v10115_v45  ;;  %v3660_v57 = vpop.permute.xlu1 %3659 }
0x15fe   : > { %9658 = vmatpush3.bf16.msra.mxu0 %v9657_v26  ;;  %v4024_v26 = vld [vmem:[%s12225_s16 + $0x18] sm:$0xff] }
0x15ff   : > { %9041 = vmatprep.subr.mxu0 %v10354_v5  ;;  %v9669_v55 = vpack.c.bf16 %v4024_v26, %v4023_v35  ;;  %v8141_v35 = vld [vmem:[%s12226_s17] ss:$0 sm:$0xff] }
0x1600   : > { %v10123_v58 = vpop.eup %10122 }
0x1601   : > { %v3653_v40 = vmul.f32 %v10123_v58, %v10117_v24 }
0x1602   : > { %9042 = vmatpush3.msra.mxu0 %v3660_v57  ;;  %v4026_v57 = vld [vmem:[%s12225_s16 + $0x28] sm:$0xff] }
0x1603   : > { %9044 = vmatmul.mubr.msk.f32.vlgmr.msra.gmra.mrb[74].mxu0 %vm855_vm3, %v3652_v56  ;;  %9659 = vmatprep.subr.bf16.mxu0 %v10352_v3  ;;  %v4025_v56 = vld [vmem:[%s12225_s16 + $0x20] sm:$0xff] }
0x1604   : > { %9046 = vmatprep.mubr.msk.f32.mxu0 %vm10353_vm0, %v10354_v5  ;;  %v10125_v59 = vpop.eup %10124  ;;  %v9672_v58 = vpack.c.bf16 %v4026_v57, %v4025_v56 }
0x1605   : > { %v3654_v60 = vmul.f32 %v10125_v59, %v10119_v50  ;;  %v4028_v59 = vld [vmem:[%s12225_s16 + $0x38] sm:$0xff] }
0x1607   : > { %9047 = vmatmul.mubr.msk.f32.gmra.mrb[76].mxu0 %vm855_vm3, %v3653_v40  ;;  %v4027_v40 = vld [vmem:[%s12225_s16 + $0x30] sm:$0xff] }
0x1608   : > { %9049 = vmatprep.mubr.msk.f32.mxu0 %vm10353_vm0, %v10354_v5 }
0x160b   : > { %9050 = vmatmul.mubr.msk.f32.gmra.mrb[78].mxu0 %vm855_vm3, %v3654_v60  ;;  %v9675_v60 = vpack.c.bf16 %v4028_v59, %v4027_v40 }
0x160c   : > { %9071 = vmatprep.mubr.msk.f32.mxu0 %vm10353_vm0, %v10354_v5 }
0x16d6   : > { %v3739_v62 = vpop.f32.mrb[74].mxu0 }
0x16d7   : > { %v9045_v4 = vpop.f32.mrb[75].mxu0  ;;  %9055 = vmatmul.mubr.msk.f32.vlgmr.msra.gmra.mrb[74].mxu1 %vm1050_vm7, %v3739_v62  ;;  %v4029_v62 = vld [vmem:[%s12225_s16 + $0x40] sm:$0xff] }
0x16d8   : > { %9057 = vmatprep.mubr.msk.f32.mxu1 %vm10353_vm0, %v10354_v5  ;;  %9667 = vmatpush3.bf16.msra.mxu1 %v9666_v54  ;;  %v4030_v4 = vld [vmem:[%s12225_s16 + $0x48] sm:$0xff] }
0x16d9   : > { %9668 = vmatprep.subr.bf16.mxu1 %v10352_v3 }
0x16da   : > { %v3744_v63 = vpop.f32.mrb[76].mxu0 }
0x16db   : > { %v9048_v1 = vpop.f32.mrb[77].mxu0  ;;  %9058 = vmatmul.mubr.msk.f32.gmra.mrb[76].mxu1 %vm1050_vm7, %v3744_v63  ;;  %v9678_v63 = vpack.c.bf16 %v4030_v4, %v4029_v62 }
0x16dc   : > { %9060 = vmatprep.mubr.msk.f32.mxu1 %vm10353_vm0, %v10354_v5  ;;  %9670 = vmatpush3.bf16.msra.mxu1 %v9669_v55  ;;  %v4031_v1 = vld [vmem:[%s12225_s16 + $0x50] sm:$0xff] }
0x16dd   : > { %9671 = vmatprep.subr.bf16.mxu1 %v10352_v3 }
0x16de   : > { %v3749_v2 = vpop.f32.mrb[78].mxu0 }
0x16df   : > { %v9051_v6 = vpop.f32.mrb[79].mxu0  ;;  %9061 = vmatmul.mubr.msk.f32.gmra.mrb[78].mxu1 %vm1050_vm7, %v3749_v2  ;;  %v4032_v2 = vld [vmem:[%s12225_s16 + $0x58] sm:$0xff] }
0x16e0   : > { %9112 = vmatprep.mubr.msk.f32.mxu1 %vm10353_vm0, %v10354_v5  ;;  %9673 = vmatpush3.bf16.msra.mxu1 %v9672_v58  ;;  %v9681_v6 = vpack.c.bf16 %v4032_v2, %v4031_v1 }
0x16e1   : > { %9674 = vmatprep.subr.bf16.mxu1 %v10352_v3 }
0x16e4   : > { %9676 = vmatpush3.bf16.msra.mxu1 %v9675_v60 }
0x16e5   : > { %9677 = vmatprep.subr.bf16.mxu1 %v10352_v3 }
0x16e8   : > { %9679 = vmatpush3.bf16.msra.mxu1 %v9678_v63 }
0x16e9   : > { %9680 = vmatprep.subr.bf16.mxu1 %v10352_v3 }
0x16ec   : > { %9682 = vmatpush3.bf16.msra.mxu1 %v9681_v6 }
0x16ed   : > { %9683 = vmatprep.subr.bf16.mxu1 %v10352_v3 }
0x17aa   : > { %v3828_v10 = vpop.f32.mrb[74].mxu1 }
0x17ab   : > { %v3842_v11 = vadd.f32 %v3828_v10, %v11166_v42  ;;  %v9056_v12 = vpop.f32.mrb[75].mxu1  ;;  %v4034_v10 = vld [vmem:[%s12225_s16 + $0x68] sm:$0xff] }
0x17ad   : > { %v3851_v14 = vadd.f32 %v8132_v7, %v3842_v11 }
0x17ae   : > { %v3833_v15 = vpop.f32.mrb[76].mxu1 }
0x17af   : > { %v3843_v17 = vadd.f32 %v3833_v15, %v11169_v36  ;;  %v9059_v20 = vpop.f32.mrb[77].mxu1  ;;  %v3854_v21 = vadd.f32 %v3851_v14, %v10930_v9 }
0x17b1   : > { %v3852_v22 = vadd.f32 %v8132_v7, %v3843_v17  ;;  %v3861_v25 = vsel %vm957_vm6, %v3854_v21, 0.0 }
0x17b2   : > { %3862 = vadd.xlane.f32.xlu1 %v3861_v25  ;;  %v3838_v27 = vpop.f32.mrb[78].mxu1 }
0x17b3   : > { %v3844_v29 = vadd.f32 %v3838_v27, %v3514_v51  ;;  %v9062_v31 = vpop.f32.mrb[79].mxu1  ;;  %v3855_v32 = vadd.f32 %v3852_v22, %v10936_v13  ;;  %v9660_v51 = vpack.c.bf16 %v3919_v38, %v3918_v53 }
0x17b4   : > { %v8135_v31 = vld [vmem:[%s12221_s12 + $0x1] ss:$0 sm:$0xff] }
0x17b5   : > { %v3853_v33 = vadd.f32 %v8132_v7, %v3844_v29  ;;  %v3864_v34 = vsel %vm957_vm6, %v3855_v32, 0.0  ;;  %9661 = vmatpush3.bf16.msra.mxu0 %v9660_v51  ;;  %v4033_v7 = vld [vmem:[%s12225_s16 + $0x60] sm:$0xff] }
0x17b6   : > { %3865 = vadd.xlane.f32.xlu0 %v3864_v34  ;;  %9662 = vmatprep.subr.bf16.mxu0 %v10352_v3  ;;  %v9684_v11 = vpack.c.bf16 %v4034_v10, %v4033_v7 }
0x17b7   : > { %v3856_v37 = vadd.f32 %v3853_v33, %v10942_v16  ;;  %v8136_v33 = vld [vmem:[%s12222_s13 + $0x1] ss:$0 sm:$0xff] }
0x17b8   : > { %9685 = vmatpush3.bf16.msra.mxu1 %v9684_v11 }
0x17b9   : > { %v3867_v39 = vsel %vm957_vm6, %v3856_v37, 0.0  ;;  %9664 = vmatpush3.bf16.msra.mxu0 %v9663_v0  ;;  %9686 = vmatprep.subr.bf16.mxu1 %v10352_v3 }
0x17ba   : > { %3868 = vadd.xlane.f32.xlu0 %v3867_v39  ;;  %9689 = vmatprep.subr.bf16.mxu0 %v10352_v3 }
0x183f   : > { %v3863_v41 = vpop.xlane.xlu1 %3862 }
0x1840   : > { %v3870_v9 = vmul.f32 0.03125, %v3863_v41 }
0x1842   : > { %v11214_v42 = vsub.f32 %v3854_v21, %v3870_v9 }
0x1843   : > { %v3866_v43 = vpop.xlane.xlu0 %3865 }
0x1844   : > { %v3871_v44 = vmul.f32 0.03125, %v3866_v43  ;;  %v3876_v45 = vmul.f32 %v11214_v42, %v11214_v42 }
0x1846   : > { %v11218_v36 = vsub.f32 %v3855_v32, %v3871_v44  ;;  %v3879_v13 = vsel %vm957_vm6, %v3876_v45, 0.0 }
0x1847   : > { %3880 = vadd.xlane.f32.xlu1 %v3879_v13  ;;  %v3869_v47 = vpop.xlane.xlu0 %3868 }
0x1848   : > { %v3872_v48 = vmul.f32 0.03125, %v3869_v47  ;;  %v3877_v16 = vmul.f32 %v11218_v36, %v11218_v36  ;;  %v4036_v47 = vld [vmem:[%s12225_s16 + $0x78] sm:$0xff] }
0x184a   : > { %v11223_v24 = vsub.f32 %v3856_v37, %v3872_v48  ;;  %v3882_v49 = vsel %vm957_vm6, %v3877_v16, 0.0  ;;  %v8137_v16 = vld [vmem:[%s12224_s15] ss:$0 sm:$0xff] }
0x184b   : > { %3883 = vadd.xlane.f32.xlu0 %v3882_v49 }
0x184c   : > { %v3878_v50 = vmul.f32 %v11223_v24, %v11223_v24 }
0x184e   : > { %v3885_v30 = vsel %vm957_vm6, %v3878_v50, 0.0 }
0x184f   : > { %3886 = vadd.xlane.f32.xlu1 %v3885_v30 }
0x18d4   : > { %v3881_v12 = vpop.xlane.xlu1 %3880 }
0x18d5   : > { %v3888_v14 = vmul.f32 0.03125, %v3881_v12 }
0x18d7   : > { %v3891_v15 = vadd.f32 1e-05, %v3888_v14 }
0x18d8   : > { %v3884_v17 = vpop.xlane.xlu0 %3883 }
0x18d9   : > { %10126 = vrsqrt.f32 %v3891_v15  ;;  %v3889_v20 = vmul.f32 0.03125, %v3884_v17 }
0x18db   : > { %v3892_v21 = vadd.f32 1e-05, %v3889_v20 }
0x18dc   : > { %v3887_v22 = vpop.xlane.xlu1 %3886 }
0x18dd   : > { %10128 = vrsqrt.f32 %v3892_v21  ;;  %v3890_v25 = vmul.f32 0.03125, %v3887_v22 }
0x18df   : > { %v3893_v27 = vadd.f32 1e-05, %v3890_v25 }
0x18e1   : > { %10130 = vrsqrt.f32 %v3893_v27 }
0x18e3   : > { %v10127_v29 = vpop.eup %10126 }
0x18e4   : > { %v3897_v32 = vmul.f32 %v10127_v29, %v11214_v42 }
0x18e6   : > { %v3906_v34 = vmul.f32 %v8135_v31, %v3897_v32 }
0x18e7   : > { %v10129_v37 = vpop.eup %10128 }
0x18e8   : > { %v3915_v39 = vadd.f32 %v8136_v33, %v3906_v34  ;;  %v3898_v41 = vmul.f32 %v10129_v37, %v11218_v36  ;;  %v4035_v36 = vld [vmem:[%s12225_s16 + $0x70] sm:$0xff]  ;;  %v8147_v34 = vld [vmem:[%s12317_s10 + $0x48] sm:$0xff] }
0x18e9   : > { %v9687_v48 = vpack.c.bf16 %v4036_v47, %v4035_v36 }
0x18ea   : > { %9072 = vmatmul.mubr.msk.f32.vlgmr.msra.gmra.mrb[80].mxu0 %vm957_vm6, %v3915_v39  ;;  %v3907_v9 = vmul.f32 %v8135_v31, %v3898_v41  ;;  %v8149_v41 = vld [vmem:[%s12317_s10 + $0x58] sm:$0xff] }
0x18eb   : > { %v10131_v43 = vpop.eup %10130  ;;  %9074 = vmatprep.mubr.msk.f32.mxu0 %vm10353_vm0, %v10354_v5  ;;  %9688 = vmatpush3.bf16.msra.mxu1 %v9687_v48 }
0x18ec   : > { %v3916_v44 = vadd.f32 %v8136_v33, %v3907_v9  ;;  %v3899_v45 = vmul.f32 %v10131_v43, %v11223_v24  ;;  %9702 = vmatprep.subr.bf16.mxu1 %v10352_v3 }
0x18ee   : > { %9075 = vmatmul.mubr.msk.f32.gmra.mrb[82].mxu0 %vm957_vm6, %v3916_v44  ;;  %v3908_v42 = vmul.f32 %v8135_v31, %v3899_v45 }
0x18ef   : > { %9077 = vmatprep.mubr.msk.f32.mxu0 %vm10353_vm0, %v10354_v5 }
0x18f0   : > { %v3917_v13 = vadd.f32 %v8136_v33, %v3908_v42  ;;  %v8146_v33 = vld [vmem:[%s12317_s10 + $0x40] sm:$0xff] }
0x18f1   : > { %v9690_v37 = vpack.c.bf16 %v8147_v34, %v8146_v33 }
0x18f2   : > { %9078 = vmatmul.mubr.msk.f32.gmra.mrb[84].mxu0 %vm957_vm6, %v3917_v13 }
0x18f3   : > { %9129 = vmatprep.mubr.msk.f32.mxu0 %vm10353_vm0, %v10354_v5  ;;  %9691 = vmatpush3.bf16.msra.mxu0 %v9690_v37 }
0x18f4   : > { %9692 = vmatprep.subr.bf16.mxu0 %v10352_v3 }
0x19bd   : > { %v4004_v24 = vpop.f32.mrb[80].mxu0 }
0x19be   : > { %v4005_v49 = vadd.f32 %v8137_v16, %v4004_v24  ;;  %v9073_v50 = vpop.f32.mrb[81].mxu0 }
0x19c0   : > { %v4018_v30 = vmax.f32 %v4005_v49, 0.0  ;;  %v8144_v49 = vld [vmem:[%s12221_s12 + $0x2] ss:$0 sm:$0xff] }
0x19c1   : > { %v4009_v53 = vpop.f32.mrb[82].mxu0 }
0x19c2   : > { %v4010_v38 = vadd.f32 %v8137_v16, %v4009_v53  ;;  %v9076_v51 = vpop.f32.mrb[83].mxu0  ;;  %9113 = vmatmul.mubr.f32.vlgmr.msra.gmra.mrb[80].mxu1 %v4018_v30  ;;  %v8145_v30 = vld [vmem:[%s12222_s13 + $0x2] ss:$0 sm:$0xff] }
0x19c3   : > { %9115 = vmatprep.mubr.msk.f32.mxu1 %vm10353_vm0, %v10354_v5 }
0x19c4   : > { %v4019_v23 = vmax.f32 %v4010_v38, 0.0 }
0x19c5   : > { %v4014_v61 = vpop.f32.mrb[84].mxu0 }
0x19c6   : > { %v4015_v0 = vadd.f32 %v8137_v16, %v4014_v61  ;;  %v9079_v52 = vpop.f32.mrb[85].mxu0  ;;  %9116 = vmatmul.mubr.f32.gmra.mrb[82].mxu1 %v4019_v23 }
0x19c7   : > { %9118 = vmatprep.mubr.msk.f32.mxu1 %vm10353_vm0, %v10354_v5 }
0x19c8   : > { %v4020_v28 = vmax.f32 %v4015_v0, 0.0 }
0x19ca   : > { %9119 = vmatmul.mubr.f32.gmra.mrb[84].mxu1 %v4020_v28 }
0x19cb   : > { %9174 = vmatprep.mubr.msk.f32.mxu1 %vm10353_vm0, %v10354_v5 }
0x1a95   : > { %v4110_v54 = vpop.f32.mrb[80].mxu1 }
0x1a96   : > { %v4111_v26 = vadd.f32 %v8141_v35, %v4110_v54  ;;  %v9114_v55 = vpop.f32.mrb[81].mxu1 }
0x1a98   : > { %v4124_v56 = vadd.f32 %v4111_v26, %v3915_v39  ;;  %v8148_v39 = vld [vmem:[%s12317_s10 + $0x50] sm:$0xff] }
0x1a99   : > { %v4115_v57 = vpop.f32.mrb[82].mxu1  ;;  %v9693_v9 = vpack.c.bf16 %v8149_v41, %v8148_v39 }
0x1a9a   : > { %v4116_v58 = vadd.f32 %v8141_v35, %v4115_v57  ;;  %v9117_v40 = vpop.f32.mrb[83].mxu1  ;;  %v4131_v59 = vsel %vm957_vm6, %v4124_v56, 0.0 }
0x1a9b   : > { %4132 = vadd.xlane.f32.xlu0 %v4131_v59  ;;  %9694 = vmatpush3.bf16.msra.mxu0 %v9693_v9 }
0x1a9c   : > { %v4125_v60 = vadd.f32 %v4116_v58, %v3916_v44  ;;  %9695 = vmatprep.subr.bf16.mxu0 %v10352_v3 }
0x1a9d   : > { %v4120_v62 = vpop.f32.mrb[84].mxu1 }
0x1a9e   : > { %v4121_v4 = vadd.f32 %v8141_v35, %v4120_v62  ;;  %v9120_v63 = vpop.f32.mrb[85].mxu1  ;;  %v4134_v1 = vsel %vm957_vm6, %v4125_v60, 0.0 }
0x1a9f   : > { %4135 = vadd.xlane.f32.xlu1 %v4134_v1 }
0x1aa0   : > { %v4126_v2 = vadd.f32 %v4121_v4, %v3917_v13 }
0x1aa2   : > { %v4137_v6 = vsel %vm957_vm6, %v4126_v2, 0.0 }
0x1aa3   : > { %4138 = vadd.xlane.f32.xlu0 %v4137_v6 }
0x1b28   : > { %v4133_v7 = vpop.xlane.xlu0 %4132 }
0x1b29   : > { %v4140_v10 = vmul.f32 0.03125, %v4133_v7 }
0x1b2b   : > { %v4143_v11 = vsub.f32 %v4124_v56, %v4140_v10  ;;  %v8156_v56 = vld [vmem:[%s12320_s29 + $0x2] ss:$0 sm:$0xff] }
0x1b2c   : > { %v4136_v12 = vpop.xlane.xlu1 %4135 }
0x1b2d   : > { %v4141_v14 = vmul.f32 0.03125, %v4136_v12  ;;  %v4146_v15 = vmul.f32 %v4143_v11, %v4143_v11 }
0x1b2f   : > { %v4144_v17 = vsub.f32 %v4125_v60, %v4141_v14  ;;  %v4149_v20 = vsel %vm957_vm6, %v4146_v15, 0.0 }
0x1b30   : > { %4150 = vadd.xlane.f32.xlu1 %v4149_v20  ;;  %v4139_v21 = vpop.xlane.xlu0 %4138 }
0x1b31   : > { %v4142_v22 = vmul.f32 0.03125, %v4139_v21  ;;  %v4147_v25 = vmul.f32 %v4144_v17, %v4144_v17 }
0x1b33   : > { %v4145_v27 = vsub.f32 %v4126_v2, %v4142_v22  ;;  %v4152_v29 = vsel %vm957_vm6, %v4147_v25, 0.0 }
0x1b34   : > { %4153 = vadd.xlane.f32.xlu0 %v4152_v29 }
0x1b35   : > { %v4148_v31 = vmul.f32 %v4145_v27, %v4145_v27 }
0x1b37   : > { %v4155_v32 = vsel %vm957_vm6, %v4148_v31, 0.0 }
0x1b38   : > { %4156 = vadd.xlane.f32.xlu1 %v4155_v32 }
0x1bbd   : > { %v4151_v43 = vpop.xlane.xlu1 %4150 }
0x1bbe   : > { %v4158_v44 = vmul.f32 0.03125, %v4151_v43 }
0x1bc0   : > { %v4161_v45 = vadd.f32 1e-05, %v4158_v44 }
0x1bc1   : > { %v4154_v42 = vpop.xlane.xlu0 %4153 }
0x1bc2   : > { %10132 = vrsqrt.f32 %v4161_v45  ;;  %v4159_v13 = vmul.f32 0.03125, %v4154_v42 }
0x1bc4   : > { %v4162_v36 = vadd.f32 1e-05, %v4159_v13 }
0x1bc5   : > { %v4157_v47 = vpop.xlane.xlu1 %4156 }
0x1bc6   : > { %10134 = vrsqrt.f32 %v4162_v36  ;;  %v4160_v48 = vmul.f32 0.03125, %v4157_v47 }
0x1bc8   : > { %v4163_v16 = vadd.f32 1e-05, %v4160_v48 }
0x1bca   : > { %10136 = vrsqrt.f32 %v4163_v16 }
0x1bcc   : > { %v10133_v24 = vpop.eup %10132 }
0x1bcd   : > { %v4167_v50 = vmul.f32 %v10133_v24, %v4143_v11 }
0x1bcf   : > { %v4176_v53 = vmul.f32 %v8144_v49, %v4167_v50 }
0x1bd0   : > { %v10135_v38 = vpop.eup %10134 }
0x1bd1   : > { %v11355_v51 = vadd.f32 %v8145_v30, %v4176_v53  ;;  %v4168_v23 = vmul.f32 %v10135_v38, %v4144_v17 }
0x1bd3   : > { %9130 = vmatmul.mubr.msk.f32.vlgmr.msra.gmra.mrb[86].mxu0 %vm957_vm6, %v11355_v51  ;;  %v4177_v61 = vmul.f32 %v8144_v49, %v4168_v23 }
0x1bd4   : > { %v10137_v0 = vpop.eup %10136  ;;  %9132 = vmatprep.mubr.msk.f32.mxu0 %vm10353_vm0, %v10354_v5 }
0x1bd5   : > { %v11361_v52 = vadd.f32 %v8145_v30, %v4177_v61  ;;  %v4169_v28 = vmul.f32 %v10137_v0, %v4145_v27 }
0x1bd7   : > { %9133 = vmatmul.mubr.msk.f32.gmra.mrb[88].mxu0 %vm957_vm6, %v11361_v52  ;;  %v4178_v35 = vmul.f32 %v8144_v49, %v4169_v28 }
0x1bd8   : > { %9135 = vmatprep.mubr.msk.f32.mxu0 %vm10353_vm0, %v10354_v5 }
0x1bd9   : > { %v11367_v54 = vadd.f32 %v8145_v30, %v4178_v35 }
0x1bdb   : > { %9136 = vmatmul.mubr.msk.f32.gmra.mrb[90].mxu0 %vm957_vm6, %v11367_v54 }
0x1bdc   : > { %9144 = vmatprep.mubr.msk.f32.mxu0 %vm10353_vm0, %v10354_v5 }
0x1ca6   : > { %v4283_v26 = vpop.f32.mrb[86].mxu0 }
0x1ca7   : > { %v9131_v55 = vpop.f32.mrb[87].mxu0  ;;  %v11376_v58 = vadd.f32 %v8156_v56, %v4283_v26 }
0x1caa   : > { %v4288_v57 = vpop.f32.mrb[88].mxu0 }
0x1cab   : > { %v11378_v40 = vadd.f32 %v8156_v56, %v4288_v57  ;;  %v9134_v59 = vpop.f32.mrb[89].mxu0 }
0x1cad   : > { %v11382_v60 = vpack.i.bf16 %v11378_v40, %v11376_v58 }
0x1cae   : > { %v4293_v62 = vpop.f32.mrb[90].mxu0 }
0x1caf   : > { %v11384_v4 = vadd.f32 %v8156_v56, %v4293_v62  ;;  %9945 = vrot.lane.b32.xlu0 %v11382_v60, %s12325_s6  ;;  %v9137_v63 = vpop.f32.mrb[91].mxu0 }
0x1cb1   : > { %4304 = vrot.lane.b32.xlu1 %v11384_v4, %s12325_s6 }
0x1cb3   : > { %4542 = vrot.lane.b32.xlu0 %v11384_v4, %s12326_s7 }
0x1cb5   : > { %9950 = vrot.lane.b32.xlu1 %v11382_v60, %s12326_s7 }
0x1cb7   : > { %4534 = vrot.lane.b32.xlu0 %v11378_v40, %s12327_s2 }
0x1cb9   : > { %4532 = vrot.lane.b32.xlu1 %v11376_v58, %s12327_s2 }
0x1cbd   : > { %4536 = vrot.lane.b32.xlu1 %v11384_v4, %s12327_s2 }
0x1d21   : > { %v9946_v1 = vpop.permute.xlu0 %9945 }
0x1d22   : > { %v9948_v2 = vunpack.i.h.bf16 %v9946_v1  ;;  %v9947_v6 = vunpack.i.l.bf16 %v9946_v1 }
0x1d23   : > { %v4305_v7 = vpop.permute.xlu1 %4304 }
0x1d24   : > { %v9696_v10 = vpack.c.bf16 %v9948_v2, %v9947_v6 }
0x1d25   : > { %v4543_v17 = vpop.permute.xlu0 %4542 }
0x1d26   : > { %9698 = vmatpush3.bf16.xpose.msk.msra.mxu0 %vm10664_vm8, %v9696_v10 }
0x1d27   : > { %v9951_v11 = vpop.permute.xlu1 %9950  ;;  %9142 = vmatprep.subr.mxu0 %v10354_v5 }
0x1d28   : > { %v9953_v12 = vunpack.i.h.bf16 %v9951_v11  ;;  %v9952_v14 = vunpack.i.l.bf16 %v9951_v11 }
0x1d29   : > { %v4535_v21 = vpop.permute.xlu0 %4534 }
0x1d2a   : > { %v9703_v15 = vpack.c.bf16 %v9953_v12, %v9952_v14 }
0x1d2b   : > { %v4533_v20 = vpop.permute.xlu1 %4532 }
0x1d2c   : > { %9705 = vmatpush3.bf16.xpose.msk.msra.mxu1 %vm10664_vm8, %v9703_v15 }
0x1d2d   : > { %9172 = vmatprep.subr.mxu1 %v10354_v5 }
0x1d2e   : > { %9143 = vmatpush3.xpose.msk.msra.mxu0 %vm1050_vm7, %v4305_v7 }
0x1d2f   : > { %9699 = vmatprep.subr.bf16.mxu0 %v10352_v3  ;;  %v4537_v22 = vpop.permute.xlu1 %4536 }
0x1d31   : > { %9145 = vmatmul.mubr.msk.f32.vlgmr.msra.gmra.mrb[92].mxu0 %vm1050_vm7, %v11376_v58 }
0x1d32   : > { %9147 = vmatprep.mubr.msk.f32.mxu0 %vm10353_vm0, %v10354_v5 }
0x1d34   : > { %9173 = vmatpush3.xpose.msk.msra.mxu1 %vm1050_vm7, %v4543_v17 }
0x1d35   : > { %9148 = vmatmul.mubr.msk.f32.gmra.mrb[94].mxu0 %vm1050_vm7, %v11378_v40  ;;  %9198 = vmatprep.subr.mxu1 %v10354_v5 }
0x1d36   : > { %9150 = vmatprep.mubr.msk.f32.mxu0 %vm10353_vm0, %v10354_v5 }
0x1d37   : > { %9175 = vmatmul.mubr.msk.f32.vlgmr.msra.gmra.mrb[86].mxu1 %vm1050_vm7, %v4533_v20 }
0x1d38   : > { %9177 = vmatprep.mubr.msk.f32.mxu1 %vm10353_vm0, %v10354_v5 }
0x1d39   : > { %9151 = vmatmul.mubr.msk.f32.gmra.mrb[96].mxu0 %vm1050_vm7, %v11384_v4 }
0x1d3a   : > { %9159 = vmatprep.mubr.msk.f32.mxu0 %vm10353_vm0, %v10354_v5 }
0x1d3b   : > { %9178 = vmatmul.mubr.msk.f32.gmra.mrb[88].mxu1 %vm1050_vm7, %v4535_v21 }
0x1d3c   : > { %9180 = vmatprep.mubr.msk.f32.mxu1 %vm10353_vm0, %v10354_v5 }
0x1d3f   : > { %9181 = vmatmul.mubr.msk.f32.gmra.mrb[90].mxu1 %vm1050_vm7, %v4537_v22 }
0x1d40   : > { %9200 = vmatprep.mubr.msk.f32.mxu1 %vm10353_vm0, %v10354_v5 }
0x1e04   : > { %v4384_v25 = vpop.f32.mrb[92].mxu0 }
0x1e05   : > { %v4398_v27 = vmul.f32 0.35355338, %v4384_v25  ;;  %v9146_v29 = vpop.f32.mrb[93].mxu0 }
0x1e07   : > { %v4401_v31 = vsel %vm855_vm3, %v4398_v27, -inf }
0x1e08   : > { %4402 = vmax.xlane.f32.xlu0 %v4401_v31  ;;  %v4389_v32 = vpop.f32.mrb[94].mxu0 }
0x1e09   : > { %v4399_v33 = vmul.f32 0.35355338, %v4389_v32  ;;  %v9149_v34 = vpop.f32.mrb[95].mxu0 }
0x1e0a   : > { %v4622_v37 = vpop.f32.mrb[86].mxu1 }
0x1e0b   : > { %v9176_v39 = vpop.f32.mrb[87].mxu1  ;;  %v4404_v41 = vsel %vm855_vm3, %v4399_v33, -inf  ;;  %v4636_v42 = vmul.f32 0.35355338, %v4622_v37 }
0x1e0c   : > { %4405 = vmax.xlane.f32.xlu1 %v4404_v41  ;;  %v4394_v9 = vpop.f32.mrb[96].mxu0 }
0x1e0d   : > { %v4400_v43 = vmul.f32 0.35355338, %v4394_v9  ;;  %v9152_v44 = vpop.f32.mrb[97].mxu0  ;;  %v4639_v50 = vsel %vm855_vm3, %v4636_v42, -inf }
0x1e0e   : > { %v4627_v45 = vpop.f32.mrb[88].mxu1 }
0x1e0f   : > { %v4637_v13 = vmul.f32 0.35355338, %v4627_v45  ;;  %v9179_v36 = vpop.f32.mrb[89].mxu1  ;;  %v4407_v47 = vsel %vm855_vm3, %v4400_v43, -inf }
0x1e10   : > { %4408 = vmax.xlane.f32.xlu0 %v4407_v47 }
0x1e11   : > { %v4642_v48 = vsel %vm855_vm3, %v4637_v13, -inf }
0x1e12   : > { %v4632_v16 = vpop.f32.mrb[90].mxu1  ;;  %4643 = vmax.xlane.f32.xlu1 %v4642_v48 }
0x1e13   : > { %v4638_v24 = vmul.f32 0.35355338, %v4632_v16  ;;  %v9182_v49 = vpop.f32.mrb[91].mxu1 }
0x1e14   : > { %4640 = vmax.xlane.f32.xlu0 %v4639_v50 }
0x1e15   : > { %v4645_v30 = vsel %vm855_vm3, %v4638_v24, -inf }
0x1e18   : > { %4646 = vmax.xlane.f32.xlu0 %v4645_v30 }
0x1e23   : > { %4438 = vrot.lane.b32.xlu1 %v11384_v4, %s12328_s1 }
0x1e2e   : > { %9955 = vrot.lane.b32.xlu0 %v11382_v60, %s12328_s1 }
0x1e95   : > { %v4403_v53 = vpop.xlane.xlu0 %4402 }
0x1e96   : > { %v4410_v38 = vsub.f32 %v4398_v27, %v4403_v53 }
0x1e98   : > { %v4413_v23 = vmul.f32 1.442695, %v4410_v38 }
0x1e99   : > { %v4406_v61 = vpop.xlane.xlu1 %4405 }
0x1e9a   : > { %10138 = vpow2.f32 %v4413_v23  ;;  %v4411_v26 = vsub.f32 %v4399_v33, %v4406_v61 }
0x1e9c   : > { %v4415_v1 = vmul.f32 1.442695, %v4411_v26  ;;  %v8151_v26 = vld [vmem:[%s12323_s4 + $0x40] sm:$0xff] }
0x1e9d   : > { %v4409_v0 = vpop.xlane.xlu0 %4408 }
0x1e9e   : > { %v4412_v28 = vsub.f32 %v4400_v43, %v4409_v0 }
0x1e9f   : > { %v4644_v35 = vpop.xlane.xlu1 %4643 }
0x1ea0   : > { %v4649_v55 = vsub.f32 %v4637_v13, %v4644_v35  ;;  %v4417_v56 = vmul.f32 1.442695, %v4412_v28 }
0x1ea1   : > { %v4641_v57 = vpop.xlane.xlu0 %4640 }
0x1ea2   : > { %v4653_v59 = vmul.f32 1.442695, %v4649_v55  ;;  %v4648_v62 = vsub.f32 %v4636_v42, %v4641_v57  ;;  %v8152_v55 = vld [vmem:[%s12323_s4 + $0x48] sm:$0xff] }
0x1ea3   : > { %v4439_v27 = vpop.permute.xlu1 %4438  ;;  %9199 = vmatpush3.msra.mxu1 %v8152_v55 }
0x1ea4   : > { %v10139_v63 = vpop.eup %10138  ;;  %10140 = vpow2.f32 %v4653_v59  ;;  %v4651_v2 = vmul.f32 1.442695, %v4648_v62  ;;  %9709 = vmatprep.subr.bf16.mxu1 %v10352_v3 }
0x1ea5   : > { %10142 = vpow2.f32 %v4417_v56  ;;  %v4647_v6 = vpop.xlane.xlu0 %4646  ;;  %v4419_v7 = vsel %vm855_vm3, %v10139_v63, 0.0 }
0x1ea6   : > { %10144 = vpow2.f32 %v4651_v2  ;;  %v4650_v10 = vsub.f32 %v4638_v24, %v4647_v6  ;;  %4420 = vadd.xlane.f32.xlu1 %v4419_v7 }
0x1ea7   : > { %10146 = vpow2.f32 %v4415_v1 }
0x1ea8   : > { %v4655_v11 = vmul.f32 1.442695, %v4650_v10 }
0x1ea9   : > { %v9956_v12 = vpop.permute.xlu0 %9955 }
0x1eaa   : > { %10148 = vpow2.f32 %v4655_v11  ;;  %v9958_v14 = vunpack.i.h.bf16 %v9956_v12  ;;  %v9957_v15 = vunpack.i.l.bf16 %v9956_v12 }
0x1eac   : > { %v9700_v17 = vpack.c.bf16 %v9958_v14, %v9957_v15 }
0x1eae   : > { %v11442_v20 = vpop.eup %10140  ;;  %9701 = vmatpush3.bf16.msra.mxu0 %v9700_v17 }
0x1eaf   : > { %v10143_v21 = vpop.eup %10142  ;;  %v4660_v22 = vsel %vm855_vm3, %v11442_v20, 0.0  ;;  %9157 = vmatprep.subr.mxu0 %v10354_v5 }
0x1eb0   : > { %v10145_v25 = vpop.eup %10144  ;;  %4661 = vadd.xlane.f32.xlu1 %v4660_v22  ;;  %v4425_v32 = vsel %vm855_vm3, %v10143_v21, 0.0 }
0x1eb1   : > { %v4657_v29 = vsel %vm855_vm3, %v10145_v25, 0.0  ;;  %v10147_v31 = vpop.eup %10146 }
0x1eb2   : > { %4658 = vadd.xlane.f32.xlu0 %v4657_v29  ;;  %9158 = vmatpush3.msra.mxu0 %v4439_v27  ;;  %v4422_v34 = vsel %vm855_vm3, %v10147_v31, 0.0 }
0x1eb3   : > { %9706 = vmatprep.subr.bf16.mxu0 %v10352_v3 }
0x1eb4   : > { %v10149_v33 = vpop.eup %10148  ;;  %4426 = vadd.xlane.f32.xlu1 %v4425_v32 }
0x1eb5   : > { %v4663_v37 = vsel %vm855_vm3, %v10149_v33, 0.0 }
0x1eb6   : > { %4423 = vadd.xlane.f32.xlu0 %v4422_v34 }
0x1eb8   : > { %4664 = vadd.xlane.f32.xlu1 %v4663_v37 }
0x1ec9   : > { %4676 = vrot.lane.b32.xlu1 %v11384_v4, %s12329_s9 }
0x1ecc   : > { %9960 = vrot.lane.b32.xlu0 %v11382_v60, %s12329_s9 }
0x1ecd   : > { %4958 = vrot.lane.b32.xlu1 %v11384_v4, %s12330_s0 }
0x1ed0   : > { %9965 = vrot.lane.b32.xlu0 %v11382_v60, %s12330_s0 }
0x1ed1   : > { %4950 = vrot.lane.b32.xlu1 %v11378_v40, %s12331_s8 }
0x1ed4   : > { %4948 = vrot.lane.b32.xlu0 %v11376_v58, %s12331_s8 }
0x1ed8   : > { %4952 = vrot.lane.b32.xlu0 %v11384_v4, %s12331_s8 }
0x1f33   : > { %v4421_v39 = vpop.xlane.xlu1 %4420 }
0x1f34   : > { %10150 = vrcp.f32 %v4421_v39 }
0x1f3d   : > { %v4662_v41 = vpop.xlane.xlu1 %4661 }
0x1f3e   : > { %v10151_v9 = vpop.eup %10150 }
0x1f3f   : > { %v4431_v43 = vmul.f32 %v10151_v9, %v10139_v63  ;;  %v4659_v44 = vpop.xlane.xlu0 %4658 }
0x1f41   : > { %9160 = vmatmul.mubr.msk.f32.vlgmr.msra.gmra.mrb[98].mxu0 %vm855_vm3, %v4431_v43  ;;  %v4427_v45 = vpop.xlane.xlu1 %4426 }
0x1f42   : > { %9162 = vmatprep.mubr.msk.f32.mxu0 %vm10353_vm0, %v10354_v5 }
0x1f43   : > { %v4424_v42 = vpop.xlane.xlu0 %4423 }
0x1f44   : > { %10152 = vrcp.f32 %v4424_v42 }
0x1f45   : > { %10154 = vrcp.f32 %v4427_v45  ;;  %v4665_v48 = vpop.xlane.xlu1 %4664 }
0x1f46   : > { %10156 = vrcp.f32 %v4659_v44 }
0x1f47   : > { %v9961_v13 = vpop.permute.xlu0 %9960  ;;  %10158 = vrcp.f32 %v4662_v41 }
0x1f48   : > { %v9963_v36 = vunpack.i.h.bf16 %v9961_v13  ;;  %v9962_v47 = vunpack.i.l.bf16 %v9961_v13  ;;  %10160 = vrcp.f32 %v4665_v48 }
0x1f49   : > { %v4677_v49 = vpop.permute.xlu1 %4676 }
0x1f4a   : > { %v9707_v16 = vpack.c.bf16 %v9963_v36, %v9962_v47 }
0x1f4b   : > { %v9966_v62 = vpop.permute.xlu0 %9965 }
0x1f4c   : > { %9708 = vmatpush3.bf16.msra.mxu0 %v9707_v16  ;;  %v9968_v1 = vunpack.i.h.bf16 %v9966_v62  ;;  %v9967_v2 = vunpack.i.l.bf16 %v9966_v62 }
0x1f4d   : > { %9187 = vmatprep.subr.mxu0 %v10354_v5 }
0x1f4e   : > { %v10153_v24 = vpop.eup %10152  ;;  %v9710_v10 = vpack.c.bf16 %v9968_v1, %v9967_v2 }
0x1f4f   : > { %v4432_v50 = vmul.f32 %v10153_v24, %v10147_v31  ;;  %v10155_v30 = vpop.eup %10154  ;;  %v4949_v22 = vpop.permute.xlu0 %4948 }
0x1f50   : > { %9188 = vmatpush3.msra.mxu0 %v4677_v49  ;;  %v4433_v53 = vmul.f32 %v10155_v30, %v10143_v21  ;;  %v10157_v38 = vpop.eup %10156 }
0x1f51   : > { %9163 = vmatmul.mubr.msk.f32.gmra.mrb[100].mxu0 %vm855_vm3, %v4432_v50  ;;  %9209 = vmatprep.subr.mxu0 %v10354_v5  ;;  %v4669_v23 = vmul.f32 %v10157_v38, %v10145_v25  ;;  %v10159_v61 = vpop.eup %10158 }
0x1f52   : > { %9165 = vmatprep.mubr.msk.f32.mxu0 %vm10353_vm0, %v10354_v5  ;;  %v4670_v0 = vmul.f32 %v10159_v61, %v11442_v20  ;;  %v10161_v28 = vpop.eup %10160  ;;  %v4959_v20 = vpop.permute.xlu1 %4958 }
0x1f53   : > { %v4671_v35 = vmul.f32 %v10161_v28, %v10149_v33  ;;  %v4953_v27 = vpop.permute.xlu0 %4952 }
0x1f55   : > { %9166 = vmatmul.mubr.msk.f32.gmra.mrb[102].mxu0 %vm855_vm3, %v4433_v53 }
0x1f56   : > { %9189 = vmatprep.mubr.msk.f32.mxu0 %vm10353_vm0, %v10354_v5  ;;  %v4951_v25 = vpop.permute.xlu1 %4950 }
0x1f59   : > { %9190 = vmatmul.mubr.msk.f32.vlgmr.msra.gmra.mrb[104].mxu0 %vm855_vm3, %v4669_v23 }
0x1f5a   : > { %9192 = vmatprep.mubr.msk.f32.mxu0 %vm10353_vm0, %v10354_v5  ;;  %9210 = vmatpush3.msra.mxu0 %v8151_v26 }
0x1f5b   : > { %9713 = vmatprep.subr.bf16.mxu0 %v10352_v3 }
0x1f5d   : > { %9193 = vmatmul.mubr.msk.f32.gmra.mrb[106].mxu0 %vm855_vm3, %v4670_v0 }
0x1f5e   : > { %9195 = vmatprep.mubr.msk.f32.mxu0 %vm10353_vm0, %v10354_v5 }
0x1f61   : > { %9196 = vmatmul.mubr.msk.f32.gmra.mrb[108].mxu0 %vm855_vm3, %v4671_v35 }
0x1f62   : > { %9211 = vmatprep.mubr.msk.f32.mxu0 %vm10353_vm0, %v10354_v5 }
0x2014   : > { %v4518_v56 = vpop.f32.mrb[98].mxu0 }
0x2015   : > { %v9161_v57 = vpop.f32.mrb[99].mxu0  ;;  %9212 = vmatmul.mubr.msk.f32.vlgmr.msra.gmra.mrb[110].mxu0 %vm1050_vm7, %v4518_v56 }
0x2016   : > { %9214 = vmatprep.mubr.msk.f32.mxu0 %vm10353_vm0, %v10354_v5 }
0x2024   : > { %v4523_v59 = vpop.f32.mrb[100].mxu0 }
0x2025   : > { %v9164_v63 = vpop.f32.mrb[101].mxu0  ;;  %9215 = vmatmul.mubr.msk.f32.gmra.mrb[112].mxu0 %vm1050_vm7, %v4523_v59 }
0x2026   : > { %9217 = vmatprep.mubr.msk.f32.mxu0 %vm10353_vm0, %v10354_v5 }
0x2028   : > { %v4528_v6 = vpop.f32.mrb[102].mxu0 }
0x2029   : > { %v9167_v7 = vpop.f32.mrb[103].mxu0  ;;  %9218 = vmatmul.mubr.msk.f32.gmra.mrb[114].mxu0 %vm1050_vm7, %v4528_v6 }
0x202a   : > { %9241 = vmatprep.mubr.msk.f32.mxu0 %vm10353_vm0, %v10354_v5 }
0x202c   : > { %v4756_v11 = vpop.f32.mrb[104].mxu0 }
0x202d   : > { %v9191_v12 = vpop.f32.mrb[105].mxu0  ;;  %9201 = vmatmul.mubr.msk.f32.vlgmr.msra.gmra.mrb[92].mxu1 %vm1050_vm7, %v4756_v11 }
0x202e   : > { %9712 = vmatpush3.bf16.xpose.msk.msra.mxu1 %vm10664_vm8, %v9710_v10  ;;  %9203 = vmatprep.mubr.msk.f32.mxu1 %vm10353_vm0, %v10354_v5 }
0x202f   : > { %9224 = vmatprep.subr.mxu1 %v10354_v5 }
0x2030   : > { %v4761_v14 = vpop.f32.mrb[106].mxu0 }
0x2031   : > { %v9194_v15 = vpop.f32.mrb[107].mxu0  ;;  %9204 = vmatmul.mubr.msk.f32.gmra.mrb[94].mxu1 %vm1050_vm7, %v4761_v14 }
0x2032   : > { %9206 = vmatprep.mubr.msk.f32.mxu1 %vm10353_vm0, %v10354_v5 }
0x2034   : > { %v4766_v17 = vpop.f32.mrb[108].mxu0 }
0x2035   : > { %v9197_v21 = vpop.f32.mrb[109].mxu0  ;;  %9207 = vmatmul.mubr.msk.f32.gmra.mrb[96].mxu1 %vm1050_vm7, %v4766_v17 }
0x2036   : > { %9225 = vmatpush3.xpose.msk.msra.mxu1 %vm1050_vm7, %v4959_v20  ;;  %9226 = vmatprep.mubr.msk.f32.mxu1 %vm10353_vm0, %v10354_v5 }
0x2037   : > { %9250 = vmatprep.subr.mxu1 %v10354_v5 }
0x2039   : > { %9227 = vmatmul.mubr.msk.f32.vlgmr.msra.gmra.mrb[98].mxu1 %vm1050_vm7, %v4949_v22 }
0x203a   : > { %9229 = vmatprep.mubr.msk.f32.mxu1 %vm10353_vm0, %v10354_v5 }
0x203d   : > { %9230 = vmatmul.mubr.msk.f32.gmra.mrb[100].mxu1 %vm1050_vm7, %v4951_v25 }
0x203e   : > { %9232 = vmatprep.mubr.msk.f32.mxu1 %vm10353_vm0, %v10354_v5 }
0x2041   : > { %9233 = vmatmul.mubr.msk.f32.gmra.mrb[102].mxu1 %vm1050_vm7, %v4953_v27 }
0x2042   : > { %9252 = vmatprep.mubr.msk.f32.mxu1 %vm10353_vm0, %v10354_v5 }
0x20e8   : > { %v4934_v29 = vpop.f32.mrb[110].mxu0 }
0x20e9   : > { %v9213_v31 = vpop.f32.mrb[111].mxu0 }
0x20f8   : > { %v4939_v32 = vpop.f32.mrb[112].mxu0 }
0x20f9   : > { %v9216_v33 = vpop.f32.mrb[113].mxu0 }
0x20fc   : > { %v4944_v34 = vpop.f32.mrb[114].mxu0 }
0x20fd   : > { %v9219_v37 = vpop.f32.mrb[115].mxu0 }
0x2100   : > { %v4845_v39 = vpop.f32.mrb[92].mxu1 }
0x2101   : > { %v11527_v41 = vadd.f32 %v4934_v29, %v4845_v39  ;;  %v9202_v9 = vpop.f32.mrb[93].mxu1 }
0x2104   : > { %v4850_v43 = vpop.f32.mrb[94].mxu1 }
0x2105   : > { %v11529_v44 = vadd.f32 %v4939_v32, %v4850_v43  ;;  %v9205_v45 = vpop.f32.mrb[95].mxu1 }
0x2108   : > { %v4855_v42 = vpop.f32.mrb[96].mxu1 }
0x2109   : > { %v11531_v13 = vadd.f32 %v4944_v34, %v4855_v42  ;;  %v9208_v36 = vpop.f32.mrb[97].mxu1 }
0x210a   : > { %v8153_v36 = vld [vmem:[%s12323_s4 + $0x50] sm:$0xff] }
0x210b   : > { %9251 = vmatpush3.msra.mxu1 %v8153_v36 }
0x210c   : > { %v5038_v47 = vpop.f32.mrb[98].mxu1  ;;  %9720 = vmatprep.subr.bf16.mxu1 %v10352_v3 }
0x210d   : > { %v5052_v48 = vmul.f32 0.35355338, %v5038_v47  ;;  %v9228_v16 = vpop.f32.mrb[99].mxu1 }
0x210f   : > { %v5055_v24 = vsel %vm855_vm3, %v5052_v48, -inf }
0x2110   : > { %5056 = vmax.xlane.f32.xlu1 %v5055_v24  ;;  %v5043_v49 = vpop.f32.mrb[100].mxu1 }
0x2111   : > { %v5053_v50 = vmul.f32 0.35355338, %v5043_v49  ;;  %v9231_v30 = vpop.f32.mrb[101].mxu1 }
0x2113   : > { %v5058_v53 = vsel %vm855_vm3, %v5053_v50, -inf }
0x2114   : > { %5059 = vmax.xlane.f32.xlu0 %v5058_v53  ;;  %v5048_v38 = vpop.f32.mrb[102].mxu1 }
0x2115   : > { %v5054_v23 = vmul.f32 0.35355338, %v5048_v38  ;;  %v9234_v61 = vpop.f32.mrb[103].mxu1 }
0x2117   : > { %v5061_v0 = vsel %vm855_vm3, %v5054_v23, -inf }
0x2118   : > { %5062 = vmax.xlane.f32.xlu0 %v5061_v0 }
0x219d   : > { %v5057_v28 = vpop.xlane.xlu1 %5056 }
0x219e   : > { %v5064_v35 = vsub.f32 %v5052_v48, %v5057_v28 }
0x21a0   : > { %v5067_v26 = vmul.f32 1.442695, %v5064_v35 }
0x21a1   : > { %v5060_v55 = vpop.xlane.xlu0 %5059 }
0x21a2   : > { %10162 = vpow2.f32 %v5067_v26  ;;  %v5065_v56 = vsub.f32 %v5053_v50, %v5060_v55 }
0x21a4   : > { %v5069_v57 = vmul.f32 1.442695, %v5065_v56 }
0x21a5   : > { %v5063_v2 = vpop.xlane.xlu0 %5062 }
0x21a6   : > { %10164 = vpow2.f32 %v5069_v57  ;;  %v5066_v6 = vsub.f32 %v5054_v23, %v5063_v2 }
0x21a8   : > { %v5071_v7 = vmul.f32 1.442695, %v5066_v6 }
0x21aa   : > { %10166 = vpow2.f32 %v5071_v7 }
0x21ac   : > { %v10163_v59 = vpop.eup %10162 }
0x21ad   : > { %v5073_v62 = vsel %vm855_vm3, %v10163_v59, 0.0 }
0x21ae   : > { %5074 = vadd.xlane.f32.xlu1 %v5073_v62 }
0x21b0   : > { %v10165_v63 = vpop.eup %10164 }
0x21b1   : > { %v5076_v1 = vsel %vm855_vm3, %v10165_v63, 0.0 }
0x21b2   : > { %5077 = vadd.xlane.f32.xlu0 %v5076_v1 }
0x21b4   : > { %v10167_v10 = vpop.eup %10166 }
0x21b5   : > { %v5079_v11 = vsel %vm855_vm3, %v10167_v10, 0.0 }
0x21bf   : > { %5092 = vrot.lane.b32.xlu1 %v11384_v4, %s12332_s26 }
0x21c3   : > { %9975 = vrot.lane.b32.xlu1 %v11382_v60, %s12333_s21 }
0x21c8   : > { %9970 = vrot.lane.b32.xlu0 %v11382_v60, %s12332_s26 }
0x21cc   : > { %5288 = vrot.lane.b32.xlu0 %v11384_v4, %s12333_s21 }
0x21d0   : > { %5280 = vrot.lane.b32.xlu0 %v11378_v40, %s12334_s28 }
0x21e7   : > { %5080 = vadd.xlane.f32.xlu1 %v5079_v11 }
0x21f8   : > { %5278 = vrot.lane.b32.xlu1 %v11376_v58, %s12334_s28 }
0x21fc   : > { %5282 = vrot.lane.b32.xlu1 %v11384_v4, %s12334_s28 }
0x223b   : > { %v5075_v12 = vpop.xlane.xlu1 %5074 }
0x223c   : > { %10168 = vrcp.f32 %v5075_v12 }
0x223f   : > { %v5078_v14 = vpop.xlane.xlu0 %5077  ;;  %v5093_v17 = vpop.permute.xlu1 %5092 }
0x2240   : > { %10170 = vrcp.f32 %v5078_v14 }
0x2243   : > { %v9971_v15 = vpop.permute.xlu0 %9970  ;;  %v9976_v25 = vpop.permute.xlu1 %9975 }
0x2244   : > { %v9973_v40 = vunpack.i.h.bf16 %v9971_v15  ;;  %v9972_v20 = vunpack.i.l.bf16 %v9971_v15  ;;  %v9978_v58 = vunpack.i.h.bf16 %v9976_v25  ;;  %v9977_v31 = vunpack.i.l.bf16 %v9976_v25 }
0x2246   : > { %v9714_v21 = vpack.c.bf16 %v9973_v40, %v9972_v20  ;;  %v10169_v22 = vpop.eup %10168  ;;  %v9717_v33 = vpack.c.bf16 %v9978_v58, %v9977_v31 }
0x2247   : > { %v5085_v27 = vmul.f32 %v10169_v22, %v10163_v59  ;;  %v5289_v34 = vpop.permute.xlu0 %5288 }
0x2248   : > { %9715 = vmatpush3.bf16.msra.mxu0 %v9714_v21 }
0x2249   : > { %9239 = vmatprep.subr.mxu0 %v10354_v5 }
0x224a   : > { %v10171_v29 = vpop.eup %10170 }
0x224b   : > { %v5086_v32 = vmul.f32 %v10171_v29, %v10165_v63  ;;  %v5281_v45 = vpop.permute.xlu0 %5280 }
0x224c   : > { %9240 = vmatpush3.msra.mxu0 %v5093_v17 }
0x224d   : > { %9242 = vmatmul.mubr.msk.f32.vlgmr.msra.gmra.mrb[116].mxu0 %vm855_vm3, %v5085_v27  ;;  %9716 = vmatprep.subr.bf16.mxu0 %v10352_v3 }
0x224e   : > { %9244 = vmatprep.mubr.msk.f32.mxu0 %vm10353_vm0, %v10354_v5 }
0x2251   : > { %9245 = vmatmul.mubr.msk.f32.gmra.mrb[118].mxu0 %vm855_vm3, %v5086_v32 }
0x2252   : > { %9247 = vmatprep.mubr.msk.f32.mxu0 %vm10353_vm0, %v10354_v5 }
0x2253   : > { %9719 = vmatpush3.bf16.xpose.msk.msra.mxu0 %vm10664_vm8, %v9717_v33 }
0x2254   : > { %9265 = vmatprep.subr.mxu0 %v10354_v5 }
0x225b   : > { %9266 = vmatpush3.xpose.msk.msra.mxu0 %vm1050_vm7, %v5289_v34 }
0x225c   : > { %9291 = vmatprep.subr.mxu0 %v10354_v5 }
0x2274   : > { %v5081_v37 = vpop.xlane.xlu1 %5080 }
0x2275   : > { %10172 = vrcp.f32 %v5081_v37 }
0x2278   : > { %v5279_v43 = vpop.permute.xlu1 %5278 }
0x227c   : > { %v5283_v42 = vpop.permute.xlu1 %5282 }
0x227f   : > { %v10173_v39 = vpop.eup %10172 }
0x2280   : > { %v5087_v9 = vmul.f32 %v10173_v39, %v10167_v10 }
0x2282   : > { %9248 = vmatmul.mubr.msk.f32.gmra.mrb[120].mxu0 %vm855_vm3, %v5087_v9 }
0x2283   : > { %9267 = vmatprep.mubr.msk.f32.mxu0 %vm10353_vm0, %v10354_v5 }
0x2286   : > { %9268 = vmatmul.mubr.msk.f32.vlgmr.msra.gmra.mrb[122].mxu0 %vm1050_vm7, %v5279_v43 }
0x2287   : > { %9270 = vmatprep.mubr.msk.f32.mxu0 %vm10353_vm0, %v10354_v5 }
0x228a   : > { %9271 = vmatmul.mubr.msk.f32.gmra.mrb[124].mxu0 %vm1050_vm7, %v5281_v45 }
0x228b   : > { %9273 = vmatprep.mubr.msk.f32.mxu0 %vm10353_vm0, %v10354_v5 }
0x228e   : > { %9274 = vmatmul.mubr.msk.f32.gmra.mrb[126].mxu0 %vm1050_vm7, %v5283_v42 }
0x228f   : > { %9293 = vmatprep.mubr.msk.f32.mxu0 %vm10353_vm0, %v10354_v5 }
0x2320   : > { %v5172_v47 = vpop.f32.mrb[116].mxu0 }
0x2321   : > { %v9243_v48 = vpop.f32.mrb[117].mxu0  ;;  %9253 = vmatmul.mubr.msk.f32.vlgmr.msra.gmra.mrb[104].mxu1 %vm1050_vm7, %v5172_v47 }
0x2322   : > { %9255 = vmatprep.mubr.msk.f32.mxu1 %vm10353_vm0, %v10354_v5 }
0x2324   : > { %v5177_v16 = vpop.f32.mrb[118].mxu0 }
0x2325   : > { %v9246_v24 = vpop.f32.mrb[119].mxu0  ;;  %9256 = vmatmul.mubr.msk.f32.gmra.mrb[106].mxu1 %vm1050_vm7, %v5177_v16 }
0x2326   : > { %9258 = vmatprep.mubr.msk.f32.mxu1 %vm10353_vm0, %v10354_v5 }
0x2355   : > { %v5182_v49 = vpop.f32.mrb[120].mxu0 }
0x2356   : > { %v9249_v50 = vpop.f32.mrb[121].mxu0  ;;  %9259 = vmatmul.mubr.msk.f32.gmra.mrb[108].mxu1 %vm1050_vm7, %v5182_v49 }
0x2357   : > { %9282 = vmatprep.mubr.msk.f32.mxu1 %vm10353_vm0, %v10354_v5 }
0x2359   : > { %v5368_v30 = vpop.f32.mrb[122].mxu0 }
0x235a   : > { %v5382_v53 = vmul.f32 0.35355338, %v5368_v30  ;;  %v9269_v38 = vpop.f32.mrb[123].mxu0 }
0x235b   : > { %v8208_v38 = vld [vmem:[%s12324_s5 + $0x2] ss:$0 sm:$0xff] }
0x235c   : > { %v5385_v23 = vsel %vm855_vm3, %v5382_v53, -inf }
0x235d   : > { %5386 = vmax.xlane.f32.xlu0 %v5385_v23  ;;  %v5373_v61 = vpop.f32.mrb[124].mxu0 }
0x235e   : > { %v5383_v0 = vmul.f32 0.35355338, %v5373_v61  ;;  %v9272_v28 = vpop.f32.mrb[125].mxu0 }
0x2360   : > { %v5388_v35 = vsel %vm855_vm3, %v5383_v0, -inf }
0x2361   : > { %5389 = vmax.xlane.f32.xlu1 %v5388_v35  ;;  %v5378_v26 = vpop.f32.mrb[126].mxu0 }
0x2362   : > { %v5384_v55 = vmul.f32 0.35355338, %v5378_v26  ;;  %v9275_v56 = vpop.f32.mrb[127].mxu0 }
0x2364   : > { %v5391_v57 = vsel %vm855_vm3, %v5384_v55, -inf }
0x2365   : > { %5392 = vmax.xlane.f32.xlu0 %v5391_v57 }
0x23ea   : > { %v5387_v59 = vpop.xlane.xlu0 %5386 }
0x23eb   : > { %v5394_v62 = vsub.f32 %v5382_v53, %v5387_v59 }
0x23ed   : > { %v5397_v63 = vmul.f32 1.442695, %v5394_v62 }
0x23ee   : > { %v5390_v1 = vpop.xlane.xlu1 %5389 }
0x23ef   : > { %10174 = vpow2.f32 %v5397_v63  ;;  %v5395_v2 = vsub.f32 %v5383_v0, %v5390_v1 }
0x23f1   : > { %v5399_v6 = vmul.f32 1.442695, %v5395_v2 }
0x23f2   : > { %v5393_v7 = vpop.xlane.xlu0 %5392 }
0x23f3   : > { %10176 = vpow2.f32 %v5399_v6  ;;  %v5396_v10 = vsub.f32 %v5384_v55, %v5393_v7 }
0x23f4   : > { %v5261_v11 = vpop.f32.mrb[104].mxu1 }
0x23f5   : > { %v5401_v12 = vmul.f32 1.442695, %v5396_v10  ;;  %v11595_v14 = vadd.f32 %v5261_v11, %v11527_v41  ;;  %v9254_v15 = vpop.f32.mrb[105].mxu1  ;;  %v8154_v41 = vld [vmem:[%s12323_s4 + $0x58] sm:$0xff] }
0x23f6   : > { %9292 = vmatpush3.msra.mxu0 %v8154_v41  ;;  %v8213_v41 = vld [vmem:[%s12317_s10 + $0x60] sm:$0xff] }
0x23f7   : > { %10178 = vpow2.f32 %v5401_v12  ;;  %9729 = vmatprep.subr.bf16.mxu0 %v10352_v3 }
0x23f8   : > { %v5266_v17 = vpop.f32.mrb[106].mxu1 }
0x23f9   : > { %v10175_v40 = vpop.eup %10174  ;;  %v11598_v20 = vadd.f32 %v5266_v17, %v11529_v44  ;;  %v9257_v21 = vpop.f32.mrb[107].mxu1 }
0x23fa   : > { %v5403_v22 = vsel %vm855_vm3, %v10175_v40, 0.0 }
0x23fb   : > { %5404 = vadd.xlane.f32.xlu0 %v5403_v22 }
0x23fd   : > { %v10177_v25 = vpop.eup %10176 }
0x23fe   : > { %v5406_v27 = vsel %vm855_vm3, %v10177_v25, 0.0 }
0x23ff   : > { %5407 = vadd.xlane.f32.xlu1 %v5406_v27 }
0x2401   : > { %v10179_v29 = vpop.eup %10178 }
0x2402   : > { %v5409_v58 = vsel %vm855_vm3, %v10179_v29, 0.0 }
0x2403   : > { %5410 = vadd.xlane.f32.xlu0 %v5409_v58 }
0x2410   : > { %9980 = vrot.lane.b32.xlu1 %v11382_v60, %s12335_s23 }
0x2419   : > { %5422 = vrot.lane.b32.xlu0 %v11384_v4, %s12335_s23 }
0x2429   : > { %v5271_v44 = vpop.f32.mrb[108].mxu1 }
0x242a   : > { %v5277_v31 = vadd.f32 %v5271_v44, %v11531_v13  ;;  %v9260_v32 = vpop.f32.mrb[109].mxu1  ;;  %v8214_v44 = vld [vmem:[%s12317_s10 + $0x68] sm:$0xff] }
0x242b   : > { %v8215_v32 = vld [vmem:[%s12317_s10 + $0x70] sm:$0xff] }
0x2488   : > { %v5405_v33 = vpop.xlane.xlu0 %5404 }
0x2489   : > { %10180 = vrcp.f32 %v5405_v33  ;;  %v8216_v33 = vld [vmem:[%s12317_s10 + $0x78] sm:$0xff] }
0x248c   : > { %v5408_v34 = vpop.xlane.xlu1 %5407 }
0x248d   : > { %10182 = vrcp.f32 %v5408_v34  ;;  %v9727_v34 = vpack.c.bf16 %v8216_v33, %v8215_v32 }
0x2490   : > { %v9981_v37 = vpop.permute.xlu1 %9980  ;;  %v5411_v60 = vpop.xlane.xlu0 %5410 }
0x2491   : > { %v9983_v39 = vunpack.i.h.bf16 %v9981_v37  ;;  %v9982_v9 = vunpack.i.l.bf16 %v9981_v37  ;;  %10184 = vrcp.f32 %v5411_v60 }
0x2493   : > { %v9721_v4 = vpack.c.bf16 %v9983_v39, %v9982_v9  ;;  %v10181_v43 = vpop.eup %10180 }
0x2494   : > { %v5415_v45 = vmul.f32 %v10181_v43, %v10175_v40  ;;  %v5423_v42 = vpop.permute.xlu0 %5422 }
0x2495   : > { %9722 = vmatpush3.bf16.msra.mxu1 %v9721_v4 }
0x2496   : > { %9280 = vmatprep.subr.mxu1 %v10354_v5 }
0x2497   : > { %v10183_v36 = vpop.eup %10182 }
0x2498   : > { %v5416_v13 = vmul.f32 %v10183_v36, %v10177_v25 }
0x2499   : > { %9281 = vmatpush3.msra.mxu1 %v5423_v42 }
0x249a   : > { %9283 = vmatmul.mubr.msk.f32.vlgmr.msra.gmra.mrb[110].mxu1 %vm855_vm3, %v5415_v45  ;;  %9723 = vmatprep.subr.bf16.mxu1 %v10352_v3 }
0x249b   : > { %9285 = vmatprep.mubr.msk.f32.mxu1 %vm10353_vm0, %v10354_v5  ;;  %v10185_v47 = vpop.eup %10184 }
0x249c   : > { %v5417_v48 = vmul.f32 %v10185_v47, %v10179_v29  ;;  %v8211_v47 = vld [vmem:[%s12221_s12 + $0x3] ss:$0 sm:$0xff] }
0x249e   : > { %9286 = vmatmul.mubr.msk.f32.gmra.mrb[112].mxu1 %vm855_vm3, %v5416_v13 }
0x249f   : > { %9288 = vmatprep.mubr.msk.f32.mxu1 %vm10353_vm0, %v10354_v5 }
0x24a2   : > { %9289 = vmatmul.mubr.msk.f32.gmra.mrb[114].mxu1 %vm855_vm3, %v5417_v48 }
0x24a3   : > { %9310 = vmatprep.mubr.msk.f32.mxu1 %vm10353_vm0, %v10354_v5 }
0x256d   : > { %v5502_v16 = vpop.f32.mrb[110].mxu1 }
0x256e   : > { %v9284_v24 = vpop.f32.mrb[111].mxu1  ;;  %9294 = vmatmul.mubr.msk.f32.vlgmr.msra.gmra.mrb[128].mxu0 %vm1050_vm7, %v5502_v16  ;;  %v8212_v16 = vld [vmem:[%s12222_s13 + $0x3] ss:$0 sm:$0xff] }
0x256f   : > { %9296 = vmatprep.mubr.msk.f32.mxu0 %vm10353_vm0, %v10354_v5 }
0x2571   : > { %v5507_v49 = vpop.f32.mrb[112].mxu1 }
0x2572   : > { %v9287_v50 = vpop.f32.mrb[113].mxu1  ;;  %9297 = vmatmul.mubr.msk.f32.gmra.mrb[130].mxu0 %vm1050_vm7, %v5507_v49 }
0x2573   : > { %9299 = vmatprep.mubr.msk.f32.mxu0 %vm10353_vm0, %v10354_v5 }
0x2575   : > { %v5512_v30 = vpop.f32.mrb[114].mxu1 }
0x2576   : > { %v9290_v53 = vpop.f32.mrb[115].mxu1  ;;  %9300 = vmatmul.mubr.msk.f32.gmra.mrb[132].mxu0 %vm1050_vm7, %v5512_v30 }
0x2577   : > { %9325 = vmatprep.mubr.msk.f32.mxu0 %vm10353_vm0, %v10354_v5 }
0x2641   : > { %v5591_v23 = vpop.f32.mrb[128].mxu0 }
0x2642   : > { %v5605_v61 = vadd.f32 %v5591_v23, %v11595_v14  ;;  %v9295_v0 = vpop.f32.mrb[129].mxu0 }
0x2644   : > { %v5614_v28 = vadd.f32 %v8208_v38, %v5605_v61 }
0x2645   : > { %v5596_v35 = vpop.f32.mrb[130].mxu0 }
0x2646   : > { %v5606_v26 = vadd.f32 %v5596_v35, %v11598_v20  ;;  %v9298_v55 = vpop.f32.mrb[131].mxu0  ;;  %v5617_v56 = vadd.f32 %v5614_v28, %v11355_v51 }
0x2647   : > { %v8223_v55 = vld [vmem:[%s12320_s29 + $0x3] ss:$0 sm:$0xff] }
0x2648   : > { %v5615_v57 = vadd.f32 %v8208_v38, %v5606_v26  ;;  %v5624_v59 = vsel %vm957_vm6, %v5617_v56, 0.0 }
0x2649   : > { %5625 = vadd.xlane.f32.xlu1 %v5624_v59  ;;  %v5601_v62 = vpop.f32.mrb[132].mxu0 }
0x264a   : > { %v5607_v63 = vadd.f32 %v5601_v62, %v5277_v31  ;;  %v9301_v1 = vpop.f32.mrb[133].mxu0  ;;  %v5618_v2 = vadd.f32 %v5615_v57, %v11361_v52  ;;  %v9724_v31 = vpack.c.bf16 %v8214_v44, %v8213_v41 }
0x264c   : > { %v5616_v6 = vadd.f32 %v8208_v38, %v5607_v63  ;;  %v5627_v7 = vsel %vm957_vm6, %v5618_v2, 0.0  ;;  %9725 = vmatpush3.bf16.msra.mxu1 %v9724_v31 }
0x264d   : > { %5628 = vadd.xlane.f32.xlu0 %v5627_v7  ;;  %9726 = vmatprep.subr.bf16.mxu1 %v10352_v3 }
0x264e   : > { %v5619_v10 = vadd.f32 %v5616_v6, %v11367_v54 }
0x2650   : > { %v5630_v11 = vsel %vm957_vm6, %v5619_v10, 0.0  ;;  %9728 = vmatpush3.bf16.msra.mxu1 %v9727_v34 }
0x2651   : > { %5631 = vadd.xlane.f32.xlu1 %v5630_v11  ;;  %9733 = vmatprep.subr.bf16.mxu1 %v10352_v3 }
0x26d6   : > { %v5626_v12 = vpop.xlane.xlu1 %5625 }
0x26d7   : > { %v5633_v51 = vmul.f32 0.03125, %v5626_v12 }
0x26d9   : > { %v5636_v14 = vsub.f32 %v5617_v56, %v5633_v51 }
0x26da   : > { %v5629_v15 = vpop.xlane.xlu0 %5628 }
0x26db   : > { %v5634_v17 = vmul.f32 0.03125, %v5629_v15  ;;  %v5639_v40 = vmul.f32 %v5636_v14, %v5636_v14 }
0x26dd   : > { %v5637_v20 = vsub.f32 %v5618_v2, %v5634_v17  ;;  %v5642_v21 = vsel %vm957_vm6, %v5639_v40, 0.0 }
0x26de   : > { %5643 = vadd.xlane.f32.xlu0 %v5642_v21  ;;  %v5632_v52 = vpop.xlane.xlu1 %5631 }
0x26df   : > { %v5635_v22 = vmul.f32 0.03125, %v5632_v52  ;;  %v5640_v25 = vmul.f32 %v5637_v20, %v5637_v20 }
0x26e1   : > { %v5638_v27 = vsub.f32 %v5619_v10, %v5635_v22  ;;  %v5645_v29 = vsel %vm957_vm6, %v5640_v25, 0.0 }
0x26e2   : > { %5646 = vadd.xlane.f32.xlu1 %v5645_v29 }
0x26e3   : > { %v5641_v54 = vmul.f32 %v5638_v27, %v5638_v27 }
0x26e5   : > { %v5648_v58 = vsel %vm957_vm6, %v5641_v54, 0.0 }
0x26e6   : > { %5649 = vadd.xlane.f32.xlu0 %v5648_v58 }
0x276b   : > { %v5644_v37 = vpop.xlane.xlu0 %5643 }
0x276c   : > { %v5651_v60 = vmul.f32 0.03125, %v5644_v37 }
0x276e   : > { %v5654_v39 = vadd.f32 1e-05, %v5651_v60 }
0x276f   : > { %v5647_v9 = vpop.xlane.xlu1 %5646 }
0x2770   : > { %10186 = vrsqrt.f32 %v5654_v39  ;;  %v5652_v4 = vmul.f32 0.03125, %v5647_v9 }
0x2772   : > { %v5655_v43 = vadd.f32 1e-05, %v5652_v4 }
0x2773   : > { %v5650_v45 = vpop.xlane.xlu0 %5649 }
0x2774   : > { %10188 = vrsqrt.f32 %v5655_v43  ;;  %v5653_v42 = vmul.f32 0.03125, %v5650_v45 }
0x2776   : > { %v5656_v36 = vadd.f32 1e-05, %v5653_v42 }
0x2778   : > { %10190 = vrsqrt.f32 %v5656_v36 }
0x277a   : > { %v10187_v13 = vpop.eup %10186 }
0x277b   : > { %v5660_v48 = vmul.f32 %v10187_v13, %v5636_v14 }
0x277d   : > { %v5669_v24 = vmul.f32 %v8211_v47, %v5660_v48 }
0x277e   : > { %v10189_v49 = vpop.eup %10188 }
0x277f   : > { %v11666_v50 = vadd.f32 %v8212_v16, %v5669_v24  ;;  %v5661_v30 = vmul.f32 %v10189_v49, %v5637_v20 }
0x2781   : > { %9311 = vmatmul.mubr.msk.f32.vlgmr.msra.gmra.mrb[116].mxu1 %vm957_vm6, %v11666_v50  ;;  %v5670_v53 = vmul.f32 %v8211_v47, %v5661_v30 }
0x2782   : > { %v10191_v38 = vpop.eup %10190  ;;  %9313 = vmatprep.mubr.msk.f32.mxu1 %vm10353_vm0, %v10354_v5 }
0x2783   : > { %v11672_v23 = vadd.f32 %v8212_v16, %v5670_v53  ;;  %v5662_v61 = vmul.f32 %v10191_v38, %v5638_v27 }
0x2785   : > { %9314 = vmatmul.mubr.msk.f32.gmra.mrb[118].mxu1 %vm957_vm6, %v11672_v23  ;;  %v5671_v0 = vmul.f32 %v8211_v47, %v5662_v61 }
0x2786   : > { %9316 = vmatprep.mubr.msk.f32.mxu1 %vm10353_vm0, %v10354_v5 }
0x2787   : > { %v11678_v28 = vadd.f32 %v8212_v16, %v5671_v0 }
0x2789   : > { %9317 = vmatmul.mubr.msk.f32.gmra.mrb[120].mxu1 %vm957_vm6, %v11678_v28 }
0x278a   : > { %9340 = vmatprep.mubr.msk.f32.mxu1 %vm10353_vm0, %v10354_v5 }
0x2854   : > { %v5776_v35 = vpop.f32.mrb[116].mxu1 }
0x2855   : > { %v9312_v26 = vpop.f32.mrb[117].mxu1  ;;  %v11687_v57 = vadd.f32 %v8223_v55, %v5776_v35 }
0x2858   : > { %v5781_v56 = vpop.f32.mrb[118].mxu1 }
0x2859   : > { %v11689_v59 = vadd.f32 %v8223_v55, %v5781_v56  ;;  %v9315_v62 = vpop.f32.mrb[119].mxu1 }
0x285b   : > { %v11693_v63 = vpack.i.bf16 %v11689_v59, %v11687_v57 }
0x285c   : > { %v5786_v1 = vpop.f32.mrb[120].mxu1 }
0x285d   : > { %v11695_v2 = vadd.f32 %v8223_v55, %v5786_v1  ;;  %9985 = vrot.lane.b32.xlu1 %v11693_v63, %s12325_s6  ;;  %v9318_v6 = vpop.f32.mrb[121].mxu1 }
0x285f   : > { %5797 = vrot.lane.b32.xlu0 %v11695_v2, %s12325_s6 }
0x2861   : > { %9990 = vrot.lane.b32.xlu1 %v11693_v63, %s12326_s7 }
0x2863   : > { %6025 = vrot.lane.b32.xlu0 %v11687_v57, %s12327_s2 }
0x2865   : > { %6035 = vrot.lane.b32.xlu1 %v11695_v2, %s12326_s7  ;;  %s12345_s7 = sld [smem:[#allocation10_spill]] }
0x2867   : > { %6029 = vrot.lane.b32.xlu0 %v11695_v2, %s12327_s2 }
0x2869   : > { %6027 = vrot.lane.b32.xlu1 %v11689_v59, %s12327_s2  ;;  %s12346_s2 = sld [smem:[#allocation18_spill]] }
0x286f   : > { %s757_s18 = scalar_lea.vmem %s12349_s27, %s12346_s2  ;;  %s10367_s2 = smov [#allocation5]  }
0x28cf   : > { %v9986_v7 = vpop.permute.xlu1 %9985 }
0x28d0   : > { %v9988_v10 = vunpack.i.h.bf16 %v9986_v7  ;;  %v9987_v11 = vunpack.i.l.bf16 %v9986_v7 }
0x28d1   : > { %v5798_v17 = vpop.permute.xlu0 %5797 }
0x28d2   : > { %v9730_v12 = vpack.c.bf16 %v9988_v10, %v9987_v11 }
0x28d3   : > { %v9991_v51 = vpop.permute.xlu1 %9990 }
0x28d4   : > { %9732 = vmatpush3.bf16.xpose.msk.msra.mxu0 %vm10664_vm8, %v9730_v12  ;;  %v9993_v14 = vunpack.i.h.bf16 %v9991_v51  ;;  %v9992_v15 = vunpack.i.l.bf16 %v9991_v51 }
0x28d5   : > { %9323 = vmatprep.subr.mxu0 %v10354_v5  ;;  %v6026_v21 = vpop.permute.xlu0 %6025 }
0x28d6   : > { %v9737_v40 = vpack.c.bf16 %v9993_v14, %v9992_v15 }
0x28d7   : > { %v6036_v20 = vpop.permute.xlu1 %6035 }
0x28d9   : > { %v6030_v22 = vpop.permute.xlu0 %6029 }
0x28db   : > { %v6028_v52 = vpop.permute.xlu1 %6027 }
0x28dc   : > { %9324 = vmatpush3.xpose.msk.msra.mxu0 %vm1050_vm7, %v5798_v17 }
0x28dd   : > { %9736 = vmatprep.subr.bf16.mxu0 %v10352_v3 }
0x28df   : > { %9326 = vmatmul.mubr.msk.f32.vlgmr.msra.gmra.mrb[134].mxu0 %vm1050_vm7, %v11687_v57 }
0x28e0   : > { %9739 = vmatpush3.bf16.xpose.msk.msra.mxu0 %vm10664_vm8, %v9737_v40  ;;  %9328 = vmatprep.mubr.msk.f32.mxu0 %vm10353_vm0, %v10354_v5 }
0x28e1   : > { %9353 = vmatprep.subr.mxu0 %v10354_v5 }
0x28e3   : > { %9329 = vmatmul.mubr.msk.f32.gmra.mrb[136].mxu0 %vm1050_vm7, %v11689_v59 }
0x28e4   : > { %9331 = vmatprep.mubr.msk.f32.mxu0 %vm10353_vm0, %v10354_v5 }
0x28e7   : > { %9332 = vmatmul.mubr.msk.f32.gmra.mrb[138].mxu0 %vm1050_vm7, %v11695_v2 }
0x28e8   : > { %9354 = vmatpush3.xpose.msk.msra.mxu0 %vm1050_vm7, %v6036_v20  ;;  %9355 = vmatprep.mubr.msk.f32.mxu0 %vm10353_vm0, %v10354_v5 }
0x28e9   : > { %9379 = vmatprep.subr.mxu0 %v10354_v5 }
0x28eb   : > { %9356 = vmatmul.mubr.msk.f32.vlgmr.msra.gmra.mrb[140].mxu0 %vm1050_vm7, %v6026_v21 }
0x28ec   : > { %9358 = vmatprep.mubr.msk.f32.mxu0 %vm10353_vm0, %v10354_v5 }
0x28ef   : > { %9359 = vmatmul.mubr.msk.f32.gmra.mrb[142].mxu0 %vm1050_vm7, %v6028_v52 }
0x28f0   : > { %9361 = vmatprep.mubr.msk.f32.mxu0 %vm10353_vm0, %v10354_v5 }
0x28f3   : > { %9362 = vmatmul.mubr.msk.f32.gmra.mrb[144].mxu0 %vm1050_vm7, %v6030_v22 }
0x28f4   : > { %9381 = vmatprep.mubr.msk.f32.mxu0 %vm10353_vm0, %v10354_v5 }
0x29b2   : > { %v5877_v25 = vpop.f32.mrb[134].mxu0 }
0x29b3   : > { %v5891_v27 = vmul.f32 0.35355338, %v5877_v25  ;;  %v9327_v29 = vpop.f32.mrb[135].mxu0 }
0x29b5   : > { %v5894_v54 = vsel %vm855_vm3, %v5891_v27, -inf }
0x29b6   : > { %5895 = vmax.xlane.f32.xlu1 %v5894_v54  ;;  %v5882_v58 = vpop.f32.mrb[136].mxu0 }
0x29b7   : > { %v5892_v41 = vmul.f32 0.35355338, %v5882_v58  ;;  %v9330_v44 = vpop.f32.mrb[137].mxu0 }
0x29b9   : > { %v5897_v31 = vsel %vm855_vm3, %v5892_v41, -inf }
0x29ba   : > { %5898 = vmax.xlane.f32.xlu0 %v5897_v31  ;;  %v5887_v32 = vpop.f32.mrb[138].mxu0 }
0x29bb   : > { %v5893_v33 = vmul.f32 0.35355338, %v5887_v32  ;;  %v9333_v34 = vpop.f32.mrb[139].mxu0 }
0x29bd   : > { %v5900_v37 = vsel %vm855_vm3, %v5893_v33, -inf }
0x29be   : > { %5901 = vmax.xlane.f32.xlu0 %v5900_v37  ;;  %v6115_v60 = vpop.f32.mrb[140].mxu0 }
0x29bf   : > { %v6129_v39 = vmul.f32 0.35355338, %v6115_v60  ;;  %v9357_v9 = vpop.f32.mrb[141].mxu0 }
0x29c1   : > { %v6132_v4 = vsel %vm855_vm3, %v6129_v39, -inf }
0x29c2   : > { %6133 = vmax.xlane.f32.xlu1 %v6132_v4  ;;  %v6120_v43 = vpop.f32.mrb[142].mxu0 }
0x29c3   : > { %v6130_v45 = vmul.f32 0.35355338, %v6120_v43  ;;  %v9360_v42 = vpop.f32.mrb[143].mxu0 }
0x29c5   : > { %v6135_v36 = vsel %vm855_vm3, %v6130_v45, -inf }
0x29c6   : > { %6136 = vmax.xlane.f32.xlu0 %v6135_v36  ;;  %v6125_v13 = vpop.f32.mrb[144].mxu0 }
0x29c7   : > { %v6131_v47 = vmul.f32 0.35355338, %v6125_v13  ;;  %v9363_v48 = vpop.f32.mrb[145].mxu0 }
0x29c9   : > { %v6138_v16 = vsel %vm855_vm3, %v6131_v47, -inf }
0x29ca   : > { %6139 = vmax.xlane.f32.xlu1 %v6138_v16 }
0x29db   : > { %9995 = vrot.lane.b32.xlu1 %v11693_v63, %s12328_s1 }
0x2a43   : > { %v5896_v24 = vpop.xlane.xlu1 %5895 }
0x2a44   : > { %v5903_v49 = vsub.f32 %v5891_v27, %v5896_v24 }
0x2a46   : > { %v5906_v30 = vmul.f32 1.442695, %v5903_v49 }
0x2a47   : > { %v5899_v53 = vpop.xlane.xlu0 %5898 }
0x2a48   : > { %10192 = vpow2.f32 %v5906_v30  ;;  %v5904_v38 = vsub.f32 %v5892_v41, %v5899_v53 }
0x2a4a   : > { %v5908_v61 = vmul.f32 1.442695, %v5904_v38 }
0x2a4b   : > { %v5902_v0 = vpop.xlane.xlu0 %5901 }
0x2a4c   : > { %10194 = vpow2.f32 %v5908_v61  ;;  %v5905_v35 = vsub.f32 %v5893_v33, %v5902_v0 }
0x2a4e   : > { %v5910_v26 = vmul.f32 1.442695, %v5905_v35  ;;  %v8218_v35 = vld [vmem:[%s12323_s4 + $0x60] sm:$0xff] }
0x2a4f   : > { %v6134_v55 = vpop.xlane.xlu1 %6133 }
0x2a50   : > { %10196 = vpow2.f32 %v5910_v26  ;;  %v6141_v56 = vsub.f32 %v6129_v39, %v6134_v55  ;;  %v8219_v26 = vld [vmem:[%s12323_s4 + $0x68] sm:$0xff] }
0x2a51   : > { %9380 = vmatpush3.msra.mxu0 %v8219_v26 }
0x2a52   : > { %v10193_v62 = vpop.eup %10192  ;;  %v6144_v1 = vmul.f32 1.442695, %v6141_v56  ;;  %9743 = vmatprep.subr.bf16.mxu0 %v10352_v3 }
0x2a53   : > { %v6137_v6 = vpop.xlane.xlu0 %6136  ;;  %v5912_v7 = vsel %vm855_vm3, %v10193_v62, 0.0 }
0x2a54   : > { %10198 = vpow2.f32 %v6144_v1  ;;  %v6142_v10 = vsub.f32 %v6130_v45, %v6137_v6  ;;  %5913 = vadd.xlane.f32.xlu0 %v5912_v7 }
0x2a56   : > { %v10195_v11 = vpop.eup %10194  ;;  %v6146_v12 = vmul.f32 1.442695, %v6142_v10 }
0x2a57   : > { %v6140_v51 = vpop.xlane.xlu1 %6139  ;;  %v5915_v14 = vsel %vm855_vm3, %v10195_v11, 0.0 }
0x2a58   : > { %10200 = vpow2.f32 %v6146_v12  ;;  %v6143_v15 = vsub.f32 %v6131_v47, %v6140_v51  ;;  %5916 = vadd.xlane.f32.xlu1 %v5915_v14 }
0x2a5a   : > { %v10197_v17 = vpop.eup %10196  ;;  %v6148_v40 = vmul.f32 1.442695, %v6143_v15 }
0x2a5b   : > { %v9996_v20 = vpop.permute.xlu1 %9995  ;;  %v5918_v21 = vsel %vm855_vm3, %v10197_v17, 0.0 }
0x2a5c   : > { %10202 = vpow2.f32 %v6148_v40  ;;  %v9998_v52 = vunpack.i.h.bf16 %v9996_v20  ;;  %v9997_v22 = vunpack.i.l.bf16 %v9996_v20  ;;  %5919 = vadd.xlane.f32.xlu0 %v5918_v21 }
0x2a5e   : > { %v10199_v25 = vpop.eup %10198  ;;  %v9734_v27 = vpack.c.bf16 %v9998_v52, %v9997_v22 }
0x2a5f   : > { %v6150_v29 = vsel %vm855_vm3, %v10199_v25, 0.0 }
0x2a60   : > { %6151 = vadd.xlane.f32.xlu1 %v6150_v29  ;;  %9735 = vmatpush3.bf16.msra.mxu1 %v9734_v27 }
0x2a61   : > { %9338 = vmatprep.subr.mxu1 %v10354_v5 }
0x2a62   : > { %v10201_v54 = vpop.eup %10200 }
0x2a63   : > { %v6153_v58 = vsel %vm855_vm3, %v10201_v54, 0.0 }
0x2a64   : > { %6154 = vadd.xlane.f32.xlu0 %v6153_v58 }
0x2a66   : > { %v10203_v41 = vpop.eup %10202 }
0x2a67   : > { %v6156_v44 = vsel %vm855_vm3, %v10203_v41, 0.0 }
0x2a68   : > { %6157 = vadd.xlane.f32.xlu0 %v6156_v44 }
0x2a71   : > { %10000 = vrot.lane.b32.xlu1 %v11693_v63, %s12329_s9 }
0x2a75   : > { %6169 = vrot.lane.b32.xlu1 %v11695_v2, %s12329_s9 }
0x2a79   : > { %10005 = vrot.lane.b32.xlu1 %v11693_v63, %s12330_s0 }
0x2a7d   : > { %6441 = vrot.lane.b32.xlu1 %v11687_v57, %s12331_s8 }
0x2a7e   : > { %5931 = vrot.lane.b32.xlu0 %v11695_v2, %s12328_s1  ;;  %s12337_s1 = sld [smem:[#allocation30_spill]] }
0x2a81   : > { %6445 = vrot.lane.b32.xlu1 %v11695_v2, %s12331_s8 }
0x2a82   : > { %6451 = vrot.lane.b32.xlu0 %v11695_v2, %s12330_s0 }
0x2a84   : > { %s12338_s9 = smov %s12337_s1 }
0x2a86   : > { %6443 = vrot.lane.b32.xlu0 %v11689_v59, %s12331_s8  ;;  %s12347_s8 = sld [smem:[#allocation37_spill]] }
0x2ae1   : > { %v5914_v31 = vpop.xlane.xlu0 %5913 }
0x2ae2   : > { %10204 = vrcp.f32 %v5914_v31 }
0x2ae5   : > { %v5917_v32 = vpop.xlane.xlu1 %5916 }
0x2ae6   : > { %10206 = vrcp.f32 %v5917_v32 }
0x2ae9   : > { %v5920_v33 = vpop.xlane.xlu0 %5919 }
0x2aea   : > { %10208 = vrcp.f32 %v5920_v33 }
0x2aec   : > { %v10205_v9 = vpop.eup %10204 }
0x2aed   : > { %v6152_v34 = vpop.xlane.xlu1 %6151  ;;  %v5924_v45 = vmul.f32 %v10205_v9, %v10193_v62 }
0x2aee   : > { %10210 = vrcp.f32 %v6152_v34 }
0x2af0   : > { %v10207_v36 = vpop.eup %10206 }
0x2af1   : > { %v6155_v37 = vpop.xlane.xlu0 %6154  ;;  %v10001_v60 = vpop.permute.xlu1 %10000  ;;  %v5925_v47 = vmul.f32 %v10207_v36, %v10195_v11 }
0x2af2   : > { %v10003_v4 = vunpack.i.h.bf16 %v10001_v60  ;;  %v10002_v43 = vunpack.i.l.bf16 %v10001_v60  ;;  %10212 = vrcp.f32 %v6155_v37 }
0x2af4   : > { %v9741_v13 = vpack.c.bf16 %v10003_v4, %v10002_v43  ;;  %v10209_v48 = vpop.eup %10208 }
0x2af5   : > { %v6158_v39 = vpop.xlane.xlu0 %6157  ;;  %v6170_v16 = vpop.permute.xlu1 %6169  ;;  %v5926_v24 = vmul.f32 %v10209_v48, %v10197_v17 }
0x2af6   : > { %10214 = vrcp.f32 %v6158_v39 }
0x2af8   : > { %v10211_v49 = vpop.eup %10210 }
0x2af9   : > { %v5932_v42 = vpop.permute.xlu0 %5931  ;;  %v6162_v30 = vmul.f32 %v10211_v49, %v10199_v25  ;;  %v10006_v1 = vpop.permute.xlu1 %10005 }
0x2afa   : > { %9339 = vmatpush3.msra.mxu1 %v5932_v42  ;;  %v10008_v7 = vunpack.i.h.bf16 %v10006_v1  ;;  %v10007_v10 = vunpack.i.l.bf16 %v10006_v1 }
0x2afb   : > { %9341 = vmatmul.mubr.msk.f32.vlgmr.msra.gmra.mrb[122].mxu1 %vm855_vm3, %v5924_v45  ;;  %9740 = vmatprep.subr.bf16.mxu1 %v10352_v3 }
0x2afc   : > { %9742 = vmatpush3.bf16.msra.mxu1 %v9741_v13  ;;  %9343 = vmatprep.mubr.msk.f32.mxu1 %vm10353_vm0, %v10354_v5  ;;  %v10213_v53 = vpop.eup %10212  ;;  %v9744_v51 = vpack.c.bf16 %v10008_v7, %v10007_v10 }
0x2afd   : > { %9368 = vmatprep.subr.mxu1 %v10354_v5  ;;  %v6163_v38 = vmul.f32 %v10213_v53, %v10201_v54  ;;  %v6452_v21 = vpop.permute.xlu0 %6451  ;;  %v6442_v22 = vpop.permute.xlu1 %6441 }
0x2aff   : > { %9344 = vmatmul.mubr.msk.f32.gmra.mrb[124].mxu1 %vm855_vm3, %v5925_v47 }
0x2b00   : > { %9369 = vmatpush3.msra.mxu1 %v6170_v16  ;;  %9346 = vmatprep.mubr.msk.f32.mxu1 %vm10353_vm0, %v10354_v5  ;;  %v10215_v61 = vpop.eup %10214 }
0x2b01   : > { %9390 = vmatprep.subr.mxu1 %v10354_v5  ;;  %v6164_v0 = vmul.f32 %v10215_v61, %v10203_v41  ;;  %v6444_v25 = vpop.permute.xlu0 %6443  ;;  %v6446_v27 = vpop.permute.xlu1 %6445 }
0x2b03   : > { %9347 = vmatmul.mubr.msk.f32.gmra.mrb[126].mxu1 %vm855_vm3, %v5926_v24 }
0x2b04   : > { %9370 = vmatprep.mubr.msk.f32.mxu1 %vm10353_vm0, %v10354_v5 }
0x2b07   : > { %9371 = vmatmul.mubr.msk.f32.vlgmr.msra.gmra.mrb[128].mxu1 %vm855_vm3, %v6162_v30 }
0x2b08   : > { %9373 = vmatprep.mubr.msk.f32.mxu1 %vm10353_vm0, %v10354_v5  ;;  %9391 = vmatpush3.msra.mxu1 %v8218_v35 }
0x2b09   : > { %9747 = vmatprep.subr.bf16.mxu1 %v10352_v3 }
0x2b0b   : > { %9374 = vmatmul.mubr.msk.f32.gmra.mrb[130].mxu1 %vm855_vm3, %v6163_v38 }
0x2b0c   : > { %9376 = vmatprep.mubr.msk.f32.mxu1 %vm10353_vm0, %v10354_v5 }
0x2b0f   : > { %9377 = vmatmul.mubr.msk.f32.gmra.mrb[132].mxu1 %vm855_vm3, %v6164_v0 }
0x2b10   : > { %9392 = vmatprep.mubr.msk.f32.mxu1 %vm10353_vm0, %v10354_v5 }
0x2bce   : > { %v6011_v55 = vpop.f32.mrb[122].mxu1 }
0x2bcf   : > { %v9342_v56 = vpop.f32.mrb[123].mxu1  ;;  %9393 = vmatmul.mubr.msk.f32.vlgmr.msra.gmra.mrb[134].mxu1 %vm1050_vm7, %v6011_v55 }
0x2bd0   : > { %9395 = vmatprep.mubr.msk.f32.mxu1 %vm10353_vm0, %v10354_v5 }
0x2bd2   : > { %v6016_v62 = vpop.f32.mrb[124].mxu1 }
0x2bd3   : > { %v9345_v6 = vpop.f32.mrb[125].mxu1  ;;  %9396 = vmatmul.mubr.msk.f32.gmra.mrb[136].mxu1 %vm1050_vm7, %v6016_v62 }
0x2bd4   : > { %9398 = vmatprep.mubr.msk.f32.mxu1 %vm10353_vm0, %v10354_v5 }
0x2bd6   : > { %v6021_v11 = vpop.f32.mrb[126].mxu1 }
0x2bd7   : > { %v9348_v12 = vpop.f32.mrb[127].mxu1  ;;  %9399 = vmatmul.mubr.msk.f32.gmra.mrb[138].mxu1 %vm1050_vm7, %v6021_v11 }
0x2bd8   : > { %9422 = vmatprep.mubr.msk.f32.mxu1 %vm10353_vm0, %v10354_v5 }
0x2bda   : > { %v6249_v14 = vpop.f32.mrb[128].mxu1 }
0x2bdb   : > { %v9372_v15 = vpop.f32.mrb[129].mxu1  ;;  %9382 = vmatmul.mubr.msk.f32.vlgmr.msra.gmra.mrb[146].mxu0 %vm1050_vm7, %v6249_v14 }
0x2bdc   : > { %9746 = vmatpush3.bf16.xpose.msk.msra.mxu0 %vm10664_vm8, %v9744_v51  ;;  %9384 = vmatprep.mubr.msk.f32.mxu0 %vm10353_vm0, %v10354_v5 }
0x2bdd   : > { %9405 = vmatprep.subr.mxu0 %v10354_v5 }
0x2bde   : > { %v6254_v17 = vpop.f32.mrb[130].mxu1 }
0x2bdf   : > { %v9375_v40 = vpop.f32.mrb[131].mxu1  ;;  %9385 = vmatmul.mubr.msk.f32.gmra.mrb[148].mxu0 %vm1050_vm7, %v6254_v17 }
0x2be0   : > { %9387 = vmatprep.mubr.msk.f32.mxu0 %vm10353_vm0, %v10354_v5 }
0x2be2   : > { %v6259_v20 = vpop.f32.mrb[132].mxu1 }
0x2be3   : > { %v9378_v52 = vpop.f32.mrb[133].mxu1  ;;  %9388 = vmatmul.mubr.msk.f32.gmra.mrb[150].mxu0 %vm1050_vm7, %v6259_v20 }
0x2be4   : > { %9406 = vmatpush3.xpose.msk.msra.mxu0 %vm1050_vm7, %v6452_v21  ;;  %9407 = vmatprep.mubr.msk.f32.mxu0 %vm10353_vm0, %v10354_v5 }
0x2be5   : > { %9431 = vmatprep.subr.mxu0 %v10354_v5 }
0x2be7   : > { %9408 = vmatmul.mubr.msk.f32.vlgmr.msra.gmra.mrb[152].mxu0 %vm1050_vm7, %v6442_v22 }
0x2be8   : > { %9410 = vmatprep.mubr.msk.f32.mxu0 %vm10353_vm0, %v10354_v5 }
0x2beb   : > { %9411 = vmatmul.mubr.msk.f32.gmra.mrb[154].mxu0 %vm1050_vm7, %v6444_v25 }
0x2bec   : > { %9413 = vmatprep.mubr.msk.f32.mxu0 %vm10353_vm0, %v10354_v5 }
0x2bef   : > { %9414 = vmatmul.mubr.msk.f32.gmra.mrb[156].mxu0 %vm1050_vm7, %v6446_v27 }
0x2bf0   : > { %9433 = vmatprep.mubr.msk.f32.mxu0 %vm10353_vm0, %v10354_v5 }
0x2ca2   : > { %v6427_v29 = vpop.f32.mrb[134].mxu1 }
0x2ca3   : > { %v9394_v54 = vpop.f32.mrb[135].mxu1 }
0x2ca6   : > { %v6432_v58 = vpop.f32.mrb[136].mxu1 }
0x2ca7   : > { %v9397_v41 = vpop.f32.mrb[137].mxu1 }
0x2caa   : > { %v6437_v44 = vpop.f32.mrb[138].mxu1 }
0x2cab   : > { %v9400_v31 = vpop.f32.mrb[139].mxu1 }
0x2cae   : > { %v6338_v32 = vpop.f32.mrb[146].mxu0 }
0x2caf   : > { %v11834_v33 = vadd.f32 %v6427_v29, %v6338_v32  ;;  %v9383_v34 = vpop.f32.mrb[147].mxu0 }
0x2cb2   : > { %v6343_v37 = vpop.f32.mrb[148].mxu0 }
0x2cb3   : > { %v11836_v60 = vadd.f32 %v6432_v58, %v6343_v37  ;;  %v9386_v39 = vpop.f32.mrb[149].mxu0 }
0x2cb6   : > { %v6348_v9 = vpop.f32.mrb[150].mxu0 }
0x2cb7   : > { %v11838_v4 = vadd.f32 %v6437_v44, %v6348_v9  ;;  %v9389_v43 = vpop.f32.mrb[151].mxu0  ;;  %v8220_v9 = vld [vmem:[%s12323_s4 + $0x70] sm:$0xff] }
0x2cb8   : > { %9432 = vmatpush3.msra.mxu0 %v8220_v9 }
0x2cb9   : > { %9754 = vmatprep.subr.bf16.mxu0 %v10352_v3 }
0x2cba   : > { %v6531_v45 = vpop.f32.mrb[152].mxu0 }
0x2cbb   : > { %v6545_v42 = vmul.f32 0.35355338, %v6531_v45  ;;  %v9409_v36 = vpop.f32.mrb[153].mxu0 }
0x2cbd   : > { %v6548_v13 = vsel %vm855_vm3, %v6545_v42, -inf }
0x2cbe   : > { %6549 = vmax.xlane.f32.xlu0 %v6548_v13  ;;  %v6536_v47 = vpop.f32.mrb[154].mxu0 }
0x2cbf   : > { %v6546_v48 = vmul.f32 0.35355338, %v6536_v47  ;;  %v9412_v16 = vpop.f32.mrb[155].mxu0 }
0x2cc1   : > { %v6551_v24 = vsel %vm855_vm3, %v6546_v48, -inf }
0x2cc2   : > { %6552 = vmax.xlane.f32.xlu1 %v6551_v24  ;;  %v6541_v49 = vpop.f32.mrb[156].mxu0 }
0x2cc3   : > { %v6547_v30 = vmul.f32 0.35355338, %v6541_v49  ;;  %v9415_v53 = vpop.f32.mrb[157].mxu0 }
0x2cc5   : > { %v6554_v38 = vsel %vm855_vm3, %v6547_v30, -inf }
0x2cc6   : > { %6555 = vmax.xlane.f32.xlu0 %v6554_v38 }
0x2cd3   : > { %10010 = vrot.lane.b32.xlu1 %v11693_v63, %s12332_s26 }
0x2cd7   : > { %10015 = vrot.lane.b32.xlu1 %v11693_v63, %s12333_s21 }
0x2d4b   : > { %v6550_v61 = vpop.xlane.xlu0 %6549 }
0x2d4c   : > { %v6557_v0 = vsub.f32 %v6545_v42, %v6550_v61 }
0x2d4e   : > { %v6560_v35 = vmul.f32 1.442695, %v6557_v0 }
0x2d4f   : > { %v6553_v26 = vpop.xlane.xlu1 %6552 }
0x2d50   : > { %10216 = vpow2.f32 %v6560_v35  ;;  %v6558_v55 = vsub.f32 %v6546_v48, %v6553_v26 }
0x2d52   : > { %v6562_v56 = vmul.f32 1.442695, %v6558_v55 }
0x2d53   : > { %v10011_v62 = vpop.permute.xlu1 %10010  ;;  %v6556_v14 = vpop.xlane.xlu0 %6555 }
0x2d54   : > { %10218 = vpow2.f32 %v6562_v56  ;;  %v10013_v1 = vunpack.i.h.bf16 %v10011_v62  ;;  %v10012_v6 = vunpack.i.l.bf16 %v10011_v62  ;;  %v6559_v15 = vsub.f32 %v6547_v30, %v6556_v14 }
0x2d56   : > { %v9748_v7 = vpack.c.bf16 %v10013_v1, %v10012_v6  ;;  %v6564_v17 = vmul.f32 1.442695, %v6559_v15 }
0x2d57   : > { %v10016_v21 = vpop.permute.xlu1 %10015 }
0x2d58   : > { %9749 = vmatpush3.bf16.msra.mxu1 %v9748_v7  ;;  %10220 = vpow2.f32 %v6564_v17  ;;  %v10017_v27 = vunpack.i.l.bf16 %v10016_v21 }
0x2d59   : > { %9420 = vmatprep.subr.mxu1 %v10354_v5 }
0x2d5a   : > { %v10217_v10 = vpop.eup %10216 }
0x2d5b   : > { %v6566_v11 = vsel %vm855_vm3, %v10217_v10, 0.0 }
0x2d5c   : > { %6567 = vadd.xlane.f32.xlu0 %v6566_v11 }
0x2d5e   : > { %v10219_v12 = vpop.eup %10218 }
0x2d5f   : > { %v6569_v51 = vsel %vm855_vm3, %v10219_v12, 0.0 }
0x2d60   : > { %6570 = vadd.xlane.f32.xlu1 %v6569_v51 }
0x2d62   : > { %v10221_v40 = vpop.eup %10220 }
0x2d63   : > { %v6572_v20 = vsel %vm855_vm3, %v10221_v40, 0.0 }
0x2d71   : > { %6781 = vrot.lane.b32.xlu1 %v11695_v2, %s12333_s21  ;;  %s10288_s21 = sshll.u32 %s10367_s2, 4  ;;  %s10289_s21 = int_to_ptr.vmem [resolvable:$false] %s10288_s21 }
0x2d72   : > { %6585 = vrot.lane.b32.xlu0 %v11695_v2, %s12332_s26  ;;  %s12342_s26 = sld [smem:[#allocation32_spill]] }
0x2d75   : > { %6773 = vrot.lane.b32.xlu1 %v11689_v59, %s12334_s28  ;;  %v10018_v59 = vunpack.i.h.bf16 %v10016_v21 }
0x2d77   : > { %v9751_v58 = vpack.c.bf16 %v10018_v59, %v10017_v27 }
0x2d91   : > { %6573 = vadd.xlane.f32.xlu0 %v6572_v20 }
0x2da7   : > { %6771 = vrot.lane.b32.xlu0 %v11687_v57, %s12334_s28 }
0x2dab   : > { %6775 = vrot.lane.b32.xlu0 %v11695_v2, %s12334_s28  ;;  %s12348_s28 = sld [smem:[#allocation35_spill]] }
0x2de9   : > { %v6568_v52 = vpop.xlane.xlu0 %6567 }
0x2dea   : > { %10222 = vrcp.f32 %v6568_v52 }
0x2ded   : > { %v6571_v22 = vpop.xlane.xlu1 %6570  ;;  %v6586_v25 = vpop.permute.xlu0 %6585 }
0x2dee   : > { %10224 = vrcp.f32 %v6571_v22  ;;  %9421 = vmatpush3.msra.mxu1 %v6586_v25 }
0x2def   : > { %9750 = vmatprep.subr.bf16.mxu1 %v10352_v3 }
0x2df1   : > { %v6782_v44 = vpop.permute.xlu1 %6781 }
0x2df4   : > { %v10223_v29 = vpop.eup %10222 }
0x2df5   : > { %v6578_v54 = vmul.f32 %v10223_v29, %v10217_v10  ;;  %v6774_v37 = vpop.permute.xlu1 %6773 }
0x2df7   : > { %9423 = vmatmul.mubr.msk.f32.vlgmr.msra.gmra.mrb[140].mxu1 %vm855_vm3, %v6578_v54 }
0x2df8   : > { %v10225_v57 = vpop.eup %10224  ;;  %9753 = vmatpush3.bf16.xpose.msk.msra.mxu1 %vm10664_vm8, %v9751_v58  ;;  %9425 = vmatprep.mubr.msk.f32.mxu1 %vm10353_vm0, %v10354_v5 }
0x2df9   : > { %v6579_v41 = vmul.f32 %v10225_v57, %v10219_v12  ;;  %9446 = vmatprep.subr.mxu1 %v10354_v5 }
0x2dfb   : > { %9426 = vmatmul.mubr.msk.f32.gmra.mrb[142].mxu1 %vm855_vm3, %v6579_v41 }
0x2dfc   : > { %9428 = vmatprep.mubr.msk.f32.mxu1 %vm10353_vm0, %v10354_v5 }
0x2e00   : > { %9447 = vmatpush3.xpose.msk.msra.mxu1 %vm1050_vm7, %v6782_v44 }
0x2e01   : > { %9472 = vmatprep.subr.mxu1 %v10354_v5 }
0x2e1e   : > { %v6574_v31 = vpop.xlane.xlu0 %6573 }
0x2e1f   : > { %10226 = vrcp.f32 %v6574_v31 }
0x2e22   : > { %v6772_v34 = vpop.permute.xlu0 %6771 }
0x2e26   : > { %v6776_v39 = vpop.permute.xlu0 %6775 }
0x2e29   : > { %v10227_v46 = vpop.eup %10226 }
0x2e2a   : > { %v6580_v32 = vmul.f32 %v10227_v46, %v10221_v40 }
0x2e2c   : > { %9429 = vmatmul.mubr.msk.f32.gmra.mrb[144].mxu1 %vm855_vm3, %v6580_v32 }
0x2e2d   : > { %9448 = vmatprep.mubr.msk.f32.mxu1 %vm10353_vm0, %v10354_v5 }
0x2e30   : > { %9449 = vmatmul.mubr.msk.f32.vlgmr.msra.gmra.mrb[146].mxu1 %vm1050_vm7, %v6772_v34 }
0x2e31   : > { %9451 = vmatprep.mubr.msk.f32.mxu1 %vm10353_vm0, %v10354_v5 }
0x2e34   : > { %9452 = vmatmul.mubr.msk.f32.gmra.mrb[148].mxu1 %vm1050_vm7, %v6774_v37 }
0x2e35   : > { %9454 = vmatprep.mubr.msk.f32.mxu1 %vm10353_vm0, %v10354_v5 }
0x2e38   : > { %9455 = vmatmul.mubr.msk.f32.gmra.mrb[150].mxu1 %vm1050_vm7, %v6776_v39 }
0x2e39   : > { %9474 = vmatprep.mubr.msk.f32.mxu1 %vm10353_vm0, %v10354_v5 }
0x2eca   : > { %v6665_v43 = vpop.f32.mrb[140].mxu1 }
0x2ecb   : > { %v9424_v45 = vpop.f32.mrb[141].mxu1  ;;  %9434 = vmatmul.mubr.msk.f32.vlgmr.msra.gmra.mrb[158].mxu0 %vm1050_vm7, %v6665_v43 }
0x2ecc   : > { %9436 = vmatprep.mubr.msk.f32.mxu0 %vm10353_vm0, %v10354_v5 }
0x2ece   : > { %v6670_v42 = vpop.f32.mrb[142].mxu1 }
0x2ecf   : > { %v9427_v36 = vpop.f32.mrb[143].mxu1  ;;  %9437 = vmatmul.mubr.msk.f32.gmra.mrb[160].mxu0 %vm1050_vm7, %v6670_v42 }
0x2ed0   : > { %9439 = vmatprep.mubr.msk.f32.mxu0 %vm10353_vm0, %v10354_v5 }
0x2eff   : > { %v6675_v13 = vpop.f32.mrb[144].mxu1 }
0x2f00   : > { %v9430_v47 = vpop.f32.mrb[145].mxu1  ;;  %9440 = vmatmul.mubr.msk.f32.gmra.mrb[162].mxu0 %vm1050_vm7, %v6675_v13 }
0x2f01   : > { %9463 = vmatprep.mubr.msk.f32.mxu0 %vm10353_vm0, %v10354_v5 }
0x2f03   : > { %v6861_v48 = vpop.f32.mrb[146].mxu1 }
0x2f04   : > { %v6875_v16 = vmul.f32 0.35355338, %v6861_v48  ;;  %v9450_v24 = vpop.f32.mrb[147].mxu1 }
0x2f06   : > { %v6878_v49 = vsel %vm855_vm3, %v6875_v16, -inf }
0x2f07   : > { %6879 = vmax.xlane.f32.xlu1 %v6878_v49  ;;  %v6866_v30 = vpop.f32.mrb[148].mxu1 }
0x2f08   : > { %v6876_v53 = vmul.f32 0.35355338, %v6866_v30  ;;  %v9453_v38 = vpop.f32.mrb[149].mxu1 }
0x2f0a   : > { %v6881_v61 = vsel %vm855_vm3, %v6876_v53, -inf }
0x2f0b   : > { %6882 = vmax.xlane.f32.xlu0 %v6881_v61  ;;  %v6871_v0 = vpop.f32.mrb[150].mxu1 }
0x2f0c   : > { %v6877_v35 = vmul.f32 0.35355338, %v6871_v0  ;;  %v9456_v26 = vpop.f32.mrb[151].mxu1 }
0x2f0e   : > { %v6884_v55 = vsel %vm855_vm3, %v6877_v35, -inf }
0x2f0f   : > { %6885 = vmax.xlane.f32.xlu0 %v6884_v55 }
0x2f94   : > { %v6880_v56 = vpop.xlane.xlu1 %6879 }
0x2f95   : > { %v6887_v62 = vsub.f32 %v6875_v16, %v6880_v56  ;;  %v8275_v16 = vld [vmem:[%s12324_s5 + $0x3] ss:$0 sm:$0xff] }
0x2f97   : > { %v6890_v1 = vmul.f32 1.442695, %v6887_v62 }
0x2f98   : > { %v6883_v6 = vpop.xlane.xlu0 %6882 }
0x2f99   : > { %10228 = vpow2.f32 %v6890_v1  ;;  %v6888_v7 = vsub.f32 %v6876_v53, %v6883_v6 }
0x2f9b   : > { %v6892_v10 = vmul.f32 1.442695, %v6888_v7 }
0x2f9c   : > { %v6886_v11 = vpop.xlane.xlu0 %6885 }
0x2f9d   : > { %10230 = vpow2.f32 %v6892_v10  ;;  %v6889_v12 = vsub.f32 %v6877_v35, %v6886_v11 }
0x2f9e   : > { %v6754_v51 = vpop.f32.mrb[158].mxu0 }
0x2f9f   : > { %v6894_v14 = vmul.f32 1.442695, %v6889_v12  ;;  %v11902_v15 = vadd.f32 %v6754_v51, %v11834_v33  ;;  %v9435_v17 = vpop.f32.mrb[159].mxu0  ;;  %v8221_v33 = vld [vmem:[%s12323_s4 + $0x78] sm:$0xff] }
0x2fa0   : > { %9473 = vmatpush3.msra.mxu1 %v8221_v33  ;;  %v8281_v33 = vld [vmem:[%s12223_s14 + $0x28] sm:$0xff] }
0x2fa1   : > { %10232 = vpow2.f32 %v6894_v14  ;;  %9763 = vmatprep.subr.bf16.mxu1 %v10352_v3 }
0x2fa2   : > { %v6759_v40 = vpop.f32.mrb[160].mxu0 }
0x2fa3   : > { %v10229_v20 = vpop.eup %10228  ;;  %v11905_v21 = vadd.f32 %v6759_v40, %v11836_v60  ;;  %v9438_v52 = vpop.f32.mrb[161].mxu0 }
0x2fa4   : > { %v6896_v22 = vsel %vm855_vm3, %v10229_v20, 0.0 }
0x2fa5   : > { %6897 = vadd.xlane.f32.xlu1 %v6896_v22 }
0x2fa7   : > { %v10231_v25 = vpop.eup %10230 }
0x2fa8   : > { %v6899_v59 = vsel %vm855_vm3, %v10231_v25, 0.0 }
0x2fa9   : > { %6900 = vadd.xlane.f32.xlu0 %v6899_v59 }
0x2fab   : > { %v10233_v27 = vpop.eup %10232 }
0x2fac   : > { %v6902_v29 = vsel %vm855_vm3, %v10233_v27, 0.0 }
0x2fad   : > { %6903 = vadd.xlane.f32.xlu1 %v6902_v29  ;;  %v8280_v29 = vld [vmem:[%s12223_s14 + $0x20] sm:$0xff] }
0x2fbe   : > { %6915 = vrot.lane.b32.xlu1 %v11695_v2, %s12335_s23 }
0x2fbf   : > { %10020 = vrot.lane.b32.xlu0 %v11693_v63, %s12335_s23  ;;  %s12343_s23 = sld [smem:[#allocation33_spill]] }
0x2fd3   : > { %v6764_v60 = vpop.f32.mrb[162].mxu0 }
0x2fd4   : > { %v6770_v54 = vadd.f32 %v6764_v60, %v11838_v4  ;;  %v9441_v58 = vpop.f32.mrb[163].mxu0  ;;  %v9758_v60 = vpack.c.bf16 %v8281_v33, %v8280_v29 }
0x2fd5   : > { %v8283_v58 = vld [vmem:[%s12223_s14 + $0x38] sm:$0xff] }
0x3032   : > { %v6898_v57 = vpop.xlane.xlu1 %6897 }
0x3033   : > { %10234 = vrcp.f32 %v6898_v57 }
0x3036   : > { %v6901_v41 = vpop.xlane.xlu0 %6900 }
0x3037   : > { %10236 = vrcp.f32 %v6901_v41  ;;  %v8289_v41 = vld [vmem:[%s12225_s16 + $0x80] sm:$0xff] }
0x303a   : > { %v6904_v44 = vpop.xlane.xlu1 %6903  ;;  %v10021_v2 = vpop.permute.xlu0 %10020 }
0x303b   : > { %v10023_v31 = vunpack.i.h.bf16 %v10021_v2  ;;  %v10022_v46 = vunpack.i.l.bf16 %v10021_v2  ;;  %10238 = vrcp.f32 %v6904_v44  ;;  %v8290_v44 = vld [vmem:[%s12225_s16 + $0x88] sm:$0xff]  ;;  %v8291_v2 = vld [vmem:[%s12225_s16 + $0x90] sm:$0xff] }
0x303d   : > { %v9755_v63 = vpack.c.bf16 %v10023_v31, %v10022_v46  ;;  %v10235_v32 = vpop.eup %10234  ;;  %v9764_v31 = vpack.c.bf16 %v8290_v44, %v8289_v41  ;;  %v8292_v46 = vld [vmem:[%s12225_s16 + $0x98] sm:$0xff]  ;;  %v8306_v44 = vld [vmem:[%s12226_s17 + $0x1] ss:$0 sm:$0xff] }
0x303e   : > { %v6908_v34 = vmul.f32 %v10235_v32, %v10229_v20  ;;  %v6916_v37 = vpop.permute.xlu1 %6915  ;;  %v8293_v32 = vld [vmem:[%s12225_s16 + $0xa0] sm:$0xff] }
0x303f   : > { %9756 = vmatpush3.bf16.msra.mxu0 %v9755_v63  ;;  %v9767_v63 = vpack.c.bf16 %v8292_v46, %v8291_v2 }
0x3040   : > { %9461 = vmatprep.subr.mxu0 %v10354_v5 }
0x3041   : > { %v10237_v39 = vpop.eup %10236 }
0x3042   : > { %v6909_v4 = vmul.f32 %v10237_v39, %v10231_v25  ;;  %v8295_v39 = vld [vmem:[%s12225_s16 + $0xb0] sm:$0xff] }
0x3043   : > { %9462 = vmatpush3.msra.mxu0 %v6916_v37 }
0x3044   : > { %9464 = vmatmul.mubr.msk.f32.vlgmr.msra.gmra.mrb[164].mxu0 %vm855_vm3, %v6908_v34  ;;  %9757 = vmatprep.subr.bf16.mxu0 %v10352_v3  ;;  %v8294_v34 = vld [vmem:[%s12225_s16 + $0xa8] sm:$0xff] }
0x3045   : > { %9466 = vmatprep.mubr.msk.f32.mxu0 %vm10353_vm0, %v10354_v5  ;;  %v10239_v9 = vpop.eup %10238  ;;  %9759 = vmatpush3.bf16.msra.mxu0 %v9758_v60  ;;  %v9770_v37 = vpack.c.bf16 %v8294_v34, %v8293_v32 }
0x3046   : > { %v6910_v43 = vmul.f32 %v10239_v9, %v10233_v27  ;;  %9760 = vmatprep.subr.bf16.mxu0 %v10352_v3 }
0x3048   : > { %9467 = vmatmul.mubr.msk.f32.gmra.mrb[166].mxu0 %vm855_vm3, %v6909_v4  ;;  %v8296_v4 = vld [vmem:[%s12225_s16 + $0xb8] sm:$0xff] }
0x3049   : > { %9469 = vmatprep.mubr.msk.f32.mxu0 %vm10353_vm0, %v10354_v5  ;;  %v9773_v9 = vpack.c.bf16 %v8296_v4, %v8295_v39 }
0x304c   : > { %9470 = vmatmul.mubr.msk.f32.gmra.mrb[168].mxu0 %vm855_vm3, %v6910_v43  ;;  %v8297_v43 = vld [vmem:[%s12225_s16 + $0xc0] sm:$0xff] }
0x304d   : > { %9491 = vmatprep.mubr.msk.f32.mxu0 %vm10353_vm0, %v10354_v5 }
0x3117   : > { %v6995_v45 = vpop.f32.mrb[164].mxu0 }
0x3118   : > { %v9465_v42 = vpop.f32.mrb[165].mxu0  ;;  %9475 = vmatmul.mubr.msk.f32.vlgmr.msra.gmra.mrb[152].mxu1 %vm1050_vm7, %v6995_v45  ;;  %v8298_v45 = vld [vmem:[%s12225_s16 + $0xc8] sm:$0xff] }
0x3119   : > { %9477 = vmatprep.mubr.msk.f32.mxu1 %vm10353_vm0, %v10354_v5  ;;  %9765 = vmatpush3.bf16.msra.mxu1 %v9764_v31  ;;  %v9776_v42 = vpack.c.bf16 %v8298_v45, %v8297_v43 }
0x311a   : > { %9766 = vmatprep.subr.bf16.mxu1 %v10352_v3 }
0x311b   : > { %v7000_v36 = vpop.f32.mrb[166].mxu0 }
0x311c   : > { %v9468_v13 = vpop.f32.mrb[167].mxu0  ;;  %9478 = vmatmul.mubr.msk.f32.gmra.mrb[154].mxu1 %vm1050_vm7, %v7000_v36  ;;  %v8299_v36 = vld [vmem:[%s12225_s16 + $0xd0] sm:$0xff] }
0x311d   : > { %9480 = vmatprep.mubr.msk.f32.mxu1 %vm10353_vm0, %v10354_v5  ;;  %9768 = vmatpush3.bf16.msra.mxu1 %v9767_v63  ;;  %v8300_v13 = vld [vmem:[%s12225_s16 + $0xd8] sm:$0xff] }
0x311e   : > { %9769 = vmatprep.subr.bf16.mxu1 %v10352_v3 }
0x311f   : > { %v7005_v47 = vpop.f32.mrb[168].mxu0 }
0x3120   : > { %v9471_v48 = vpop.f32.mrb[169].mxu0  ;;  %9481 = vmatmul.mubr.msk.f32.gmra.mrb[156].mxu1 %vm1050_vm7, %v7005_v47  ;;  %v9779_v47 = vpack.c.bf16 %v8300_v13, %v8299_v36 }
0x3121   : > { %9532 = vmatprep.mubr.msk.f32.mxu1 %vm10353_vm0, %v10354_v5  ;;  %9771 = vmatpush3.bf16.msra.mxu1 %v9770_v37  ;;  %v8301_v48 = vld [vmem:[%s12225_s16 + $0xe0] sm:$0xff] }
0x3122   : > { %9772 = vmatprep.subr.bf16.mxu1 %v10352_v3 }
0x3125   : > { %9774 = vmatpush3.bf16.msra.mxu1 %v9773_v9 }
0x3126   : > { %9775 = vmatprep.subr.bf16.mxu1 %v10352_v3 }
0x3129   : > { %9777 = vmatpush3.bf16.msra.mxu1 %v9776_v42 }
0x312a   : > { %9778 = vmatprep.subr.bf16.mxu1 %v10352_v3 }
0x312d   : > { %9780 = vmatpush3.bf16.msra.mxu1 %v9779_v47 }
0x312e   : > { %9781 = vmatprep.subr.bf16.mxu1 %v10352_v3 }
0x31eb   : > { %v7084_v24 = vpop.f32.mrb[152].mxu1 }
0x31ec   : > { %v7098_v49 = vadd.f32 %v7084_v24, %v11902_v15  ;;  %v9476_v30 = vpop.f32.mrb[153].mxu1 }
0x31ee   : > { %v7107_v53 = vadd.f32 %v8275_v16, %v7098_v49 }
0x31ef   : > { %v7089_v38 = vpop.f32.mrb[154].mxu1 }
0x31f0   : > { %v7099_v61 = vadd.f32 %v7089_v38, %v11905_v21  ;;  %v9479_v0 = vpop.f32.mrb[155].mxu1  ;;  %v7110_v35 = vadd.f32 %v7107_v53, %v11666_v50 }
0x31f2   : > { %v7108_v26 = vadd.f32 %v8275_v16, %v7099_v61  ;;  %v7117_v55 = vsel %vm957_vm6, %v7110_v35, 0.0 }
0x31f3   : > { %7118 = vadd.xlane.f32.xlu1 %v7117_v55  ;;  %v7094_v56 = vpop.f32.mrb[156].mxu1 }
0x31f4   : > { %v7100_v62 = vadd.f32 %v7094_v56, %v6770_v54  ;;  %v9482_v1 = vpop.f32.mrb[157].mxu1  ;;  %v7111_v6 = vadd.f32 %v7108_v26, %v11672_v23  ;;  %v8282_v54 = vld [vmem:[%s12223_s14 + $0x30] sm:$0xff] }
0x31f5   : > { %v9761_v57 = vpack.c.bf16 %v8283_v58, %v8282_v54 }
0x31f6   : > { %v7109_v7 = vadd.f32 %v8275_v16, %v7100_v62  ;;  %v7120_v10 = vsel %vm957_vm6, %v7111_v6, 0.0  ;;  %v8302_v16 = vld [vmem:[%s12225_s16 + $0xe8] sm:$0xff]  ;;  %v8278_v62 = vld [vmem:[%s12221_s12 + $0x4] ss:$0 sm:$0xff] }
0x31f7   : > { %7121 = vadd.xlane.f32.xlu0 %v7120_v10  ;;  %9762 = vmatpush3.bf16.msra.mxu0 %v9761_v57  ;;  %v9782_v24 = vpack.c.bf16 %v8302_v16, %v8301_v48 }
0x31f8   : > { %v7112_v11 = vadd.f32 %v7109_v7, %v11678_v28  ;;  %9787 = vmatprep.subr.bf16.mxu0 %v10352_v3 }
0x31f9   : > { %9783 = vmatpush3.bf16.msra.mxu1 %v9782_v24 }
0x31fa   : > { %v7123_v12 = vsel %vm957_vm6, %v7112_v11, 0.0  ;;  %9784 = vmatprep.subr.bf16.mxu1 %v10352_v3 }
0x31fb   : > { %7124 = vadd.xlane.f32.xlu0 %v7123_v12 }
0x3280   : > { %v7119_v51 = vpop.xlane.xlu1 %7118 }
0x3281   : > { %v7126_v50 = vmul.f32 0.03125, %v7119_v51 }
0x3283   : > { %v11950_v14 = vsub.f32 %v7110_v35, %v7126_v50 }
0x3284   : > { %v7122_v15 = vpop.xlane.xlu0 %7121 }
0x3285   : > { %v7127_v17 = vmul.f32 0.03125, %v7122_v15  ;;  %v7132_v40 = vmul.f32 %v11950_v14, %v11950_v14 }
0x3287   : > { %v11954_v20 = vsub.f32 %v7111_v6, %v7127_v17  ;;  %v7135_v23 = vsel %vm957_vm6, %v7132_v40, 0.0  ;;  %v8279_v6 = vld [vmem:[%s12222_s13 + $0x4] ss:$0 sm:$0xff] }
0x3288   : > { %7136 = vadd.xlane.f32.xlu1 %v7135_v23  ;;  %v7125_v21 = vpop.xlane.xlu0 %7124  ;;  %v8304_v23 = vld [vmem:[%s12225_s16 + $0xf8] sm:$0xff] }
0x3289   : > { %v7128_v52 = vmul.f32 0.03125, %v7125_v21  ;;  %v7133_v28 = vmul.f32 %v11954_v20, %v11954_v20 }
0x328b   : > { %v11959_v22 = vsub.f32 %v7112_v11, %v7128_v52  ;;  %v7138_v25 = vsel %vm957_vm6, %v7133_v28, 0.0  ;;  %v8285_v52 = vld [vmem:[%s12224_s15 + $0x1] ss:$0 sm:$0xff] }
0x328c   : > { %7139 = vadd.xlane.f32.xlu0 %v7138_v25 }
0x328d   : > { %v7134_v59 = vmul.f32 %v11959_v22, %v11959_v22 }
0x328f   : > { %v7141_v27 = vsel %vm957_vm6, %v7134_v59, 0.0 }
0x3290   : > { %7142 = vadd.xlane.f32.xlu1 %v7141_v27 }
0x3315   : > { %v7137_v49 = vpop.xlane.xlu1 %7136 }
0x3316   : > { %v7144_v30 = vmul.f32 0.03125, %v7137_v49 }
0x3318   : > { %v7147_v53 = vadd.f32 1e-05, %v7144_v30 }
0x3319   : > { %v7140_v38 = vpop.xlane.xlu0 %7139 }
0x331a   : > { %10240 = vrsqrt.f32 %v7147_v53  ;;  %v7145_v61 = vmul.f32 0.03125, %v7140_v38 }
0x331c   : > { %v7148_v0 = vadd.f32 1e-05, %v7145_v61 }
0x331d   : > { %v7143_v35 = vpop.xlane.xlu1 %7142 }
0x331e   : > { %10242 = vrsqrt.f32 %v7148_v0  ;;  %v7146_v26 = vmul.f32 0.03125, %v7143_v35 }
0x3320   : > { %v7149_v55 = vadd.f32 1e-05, %v7146_v26 }
0x3322   : > { %10244 = vrsqrt.f32 %v7149_v55 }
0x3324   : > { %v10241_v56 = vpop.eup %10240 }
0x3325   : > { %v7153_v1 = vmul.f32 %v10241_v56, %v11950_v14 }
0x3327   : > { %v7162_v7 = vmul.f32 %v8278_v62, %v7153_v1 }
0x3328   : > { %v10243_v10 = vpop.eup %10242 }
0x3329   : > { %v7171_v11 = vadd.f32 %v8279_v6, %v7162_v7  ;;  %v7154_v12 = vmul.f32 %v10243_v10, %v11954_v20  ;;  %v8303_v20 = vld [vmem:[%s12225_s16 + $0xf0] sm:$0xff] }
0x332a   : > { %v9785_v21 = vpack.c.bf16 %v8304_v23, %v8303_v20 }
0x332b   : > { %9492 = vmatmul.mubr.msk.f32.vlgmr.msra.gmra.mrb[170].mxu0 %vm957_vm6, %v7171_v11  ;;  %v7163_v51 = vmul.f32 %v8278_v62, %v7154_v12 }
0x332c   : > { %v10245_v50 = vpop.eup %10244  ;;  %9494 = vmatprep.mubr.msk.f32.mxu0 %vm10353_vm0, %v10354_v5  ;;  %9786 = vmatpush3.bf16.msra.mxu1 %v9785_v21 }
0x332d   : > { %v7172_v15 = vadd.f32 %v8279_v6, %v7163_v51  ;;  %v7155_v17 = vmul.f32 %v10245_v50, %v11959_v22  ;;  %9583 = vmatprep.subr.mxu1 %v10354_v5 }
0x332f   : > { %9495 = vmatmul.mubr.msk.f32.gmra.mrb[172].mxu0 %vm957_vm6, %v7172_v15  ;;  %v7164_v14 = vmul.f32 %v8278_v62, %v7155_v17 }
0x3330   : > { %9497 = vmatprep.mubr.msk.f32.mxu0 %vm10353_vm0, %v10354_v5 }
0x3331   : > { %v7173_v40 = vadd.f32 %v8279_v6, %v7164_v14 }
0x3333   : > { %9498 = vmatmul.mubr.msk.f32.gmra.mrb[174].mxu0 %vm957_vm6, %v7173_v40 }
0x3334   : > { %9547 = vmatprep.mubr.msk.f32.mxu0 %vm10353_vm0, %v10354_v5 }
0x33fe   : > { %v7262_v28 = vpop.f32.mrb[170].mxu0 }
0x33ff   : > { %v7263_v22 = vadd.f32 %v8285_v52, %v7262_v28  ;;  %v9493_v25 = vpop.f32.mrb[171].mxu0 }
0x3400   : > { %v7449_v25 = vstv %s7448_s3  ;;  %s12340_s3 = sld [smem:[#allocation34_spill]] }
0x3401   : > { %v7276_v59 = vmax.f32 %v7263_v22, 0.0  ;;  %vm7450_vm9 = vcmp.eq.s32.totalorder %v10578_v8, %v7449_v25  ;;  %v7529_v8 = vld [vmem:[%s12338_s9 + $0x18] sm:$0xff] }
0x3402   : > { %v7267_v27 = vpop.f32.mrb[172].mxu0 }
0x3403   : > { %v7268_v29 = vadd.f32 %v8285_v52, %v7267_v27  ;;  %v9496_v33 = vpop.f32.mrb[173].mxu0  ;;  %9533 = vmatmul.mubr.f32.vlgmr.msra.gmra.mrb[158].mxu1 %v7276_v59 }
0x3404   : > { %9535 = vmatprep.mubr.msk.f32.mxu1 %vm10353_vm0, %v10354_v5 }
0x3405   : > { %v7277_v60 = vmax.f32 %v7268_v29, 0.0 }
0x3406   : > { %v7272_v54 = vpop.f32.mrb[174].mxu0  ;;  %s12341_s30 = smov %s12340_s3 }
0x3407   : > { %v7273_v58 = vadd.f32 %v8285_v52, %v7272_v54  ;;  %v9499_v57 = vpop.f32.mrb[175].mxu0  ;;  %9536 = vmatmul.mubr.f32.gmra.mrb[160].mxu1 %v7277_v60  ;;  %v8310_v52 = vld [vmem:[%s12222_s13 + $0x5] ss:$0 sm:$0xff] }
0x3408   : > { %9538 = vmatprep.mubr.msk.f32.mxu1 %vm10353_vm0, %v10354_v5  ;;  %v7526_v54 = vld [vmem:[%s12337_s1] sm:$0xff] }
0x3409   : > { %v7278_v41 = vmax.f32 %v7273_v58, 0.0  ;;  %v7527_v58 = vld [vmem:[%s12338_s9 + $0x8] sm:$0xff] }
0x340b   : > { %9539 = vmatmul.mubr.f32.gmra.mrb[162].mxu1 %v7278_v41  ;;  %v8311_v41 = vsel %vm7450_vm9, 1.0, %v10354_v5 }
0x340c   : > { %9585 = vmatprep.mubr.msk.f32.mxu1 %vm10353_vm0, %v10354_v5 }
0x34d6   : > { %v7370_v2 = vpop.f32.mrb[158].mxu1 }
0x34d7   : > { %v7371_v31 = vadd.f32 %v8306_v44, %v7370_v2  ;;  %v9534_v46 = vpop.f32.mrb[159].mxu1  ;;  %v7528_v2 = vld [vmem:[%s12338_s9 + $0x10] sm:$0xff] }
0x34d9   : > { %v7384_v63 = vadd.f32 %v7371_v31, %v7171_v11  ;;  %v9794_v31 = vpack.c.bf16 %v7529_v8, %v7528_v2 }
0x34da   : > { %v7375_v32 = vpop.f32.mrb[160].mxu1 }
0x34db   : > { %v7376_v34 = vadd.f32 %v8306_v44, %v7375_v32  ;;  %v9537_v37 = vpop.f32.mrb[161].mxu1  ;;  %v7391_v39 = vsel %vm957_vm6, %v7384_v63, 0.0  ;;  %v7530_v32 = vld [vmem:[%s12339_s25] sm:$0x1]  ;;  %s12344_s25 = sld [smem:[#allocation36_spill]] }
0x34dc   : > { %7392 = vadd.xlane.f32.xlu0 %v7391_v39 }
0x34dd   : > { %v7385_v4 = vadd.f32 %v7376_v34, %v7172_v15 }
0x34de   : > { %v7380_v9 = vpop.f32.mrb[162].mxu1 }
0x34df   : > { %v7381_v43 = vadd.f32 %v8306_v44, %v7380_v9  ;;  %v9540_v45 = vpop.f32.mrb[163].mxu1  ;;  %v7394_v42 = vsel %vm957_vm6, %v7385_v4, 0.0  ;;  %v9791_v44 = vpack.c.bf16 %v7527_v58, %v7526_v54 }
0x34e0   : > { %7395 = vadd.xlane.f32.xlu1 %v7394_v42 }
0x34e1   : > { %v7386_v36 = vadd.f32 %v7381_v43, %v7173_v40  ;;  %v8309_v40 = vld [vmem:[%s12221_s12 + $0x5] ss:$0 sm:$0xff] }
0x34e3   : > { %v7397_v13 = vsel %vm957_vm6, %v7386_v36, 0.0 }
0x34e4   : > { %7398 = vadd.xlane.f32.xlu0 %v7397_v13 }
0x3569   : > { %v7393_v47 = vpop.xlane.xlu0 %7392 }
0x356a   : > { %v7400_v48 = vmul.f32 0.03125, %v7393_v47 }
0x356c   : > { %v7403_v16 = vsub.f32 %v7384_v63, %v7400_v48 }
0x356d   : > { %v7396_v24 = vpop.xlane.xlu1 %7395 }
0x356e   : > { %v7401_v49 = vmul.f32 0.03125, %v7396_v24  ;;  %v7406_v30 = vmul.f32 %v7403_v16, %v7403_v16 }
0x3570   : > { %v7404_v53 = vsub.f32 %v7385_v4, %v7401_v49  ;;  %v7409_v38 = vsel %vm957_vm6, %v7406_v30, 0.0 }
0x3571   : > { %7410 = vadd.xlane.f32.xlu1 %v7409_v38  ;;  %v7399_v61 = vpop.xlane.xlu0 %7398 }
0x3572   : > { %v7402_v0 = vmul.f32 0.03125, %v7399_v61  ;;  %v7407_v35 = vmul.f32 %v7404_v53, %v7404_v53 }
0x3574   : > { %v7405_v26 = vsub.f32 %v7386_v36, %v7402_v0  ;;  %v7412_v55 = vsel %vm957_vm6, %v7407_v35, 0.0 }
0x3575   : > { %7413 = vadd.xlane.f32.xlu0 %v7412_v55 }
0x3576   : > { %v7408_v56 = vmul.f32 %v7405_v26, %v7405_v26 }
0x3578   : > { %v7415_v62 = vsel %vm957_vm6, %v7408_v56, 0.0  ;;  %v7682_v56 = vld [vmem:[%s12340_s3] sm:$0xff] }
0x3579   : > { %7416 = vadd.xlane.f32.xlu1 %v7415_v62  ;;  %v7683_v62 = vld [vmem:[%s12341_s30 + $0x8] sm:$0xff] }
0x35fe   : > { %v7411_v1 = vpop.xlane.xlu1 %7410 }
0x35ff   : > { %v7418_v6 = vmul.f32 0.03125, %v7411_v1  ;;  %v7684_v1 = vld [vmem:[%s12341_s30 + $0x10] sm:$0xff] }
0x3601   : > { %v7421_v7 = vadd.f32 1e-05, %v7418_v6  ;;  %v9797_v6 = vpack.c.bf16 %v7683_v62, %v7682_v56 }
0x3602   : > { %v7414_v10 = vpop.xlane.xlu0 %7413 }
0x3603   : > { %10246 = vrsqrt.f32 %v7421_v7  ;;  %v7419_v11 = vmul.f32 0.03125, %v7414_v10  ;;  %v7685_v7 = vld [vmem:[%s12341_s30 + $0x18] sm:$0xff] }
0x3604   : > { %v9800_v10 = vpack.c.bf16 %v7685_v7, %v7684_v1 }
0x3605   : > { %v7422_v12 = vadd.f32 1e-05, %v7419_v11 }
0x3606   : > { %v7417_v51 = vpop.xlane.xlu1 %7416 }
0x3607   : > { %10248 = vrsqrt.f32 %v7422_v12  ;;  %v7420_v50 = vmul.f32 0.03125, %v7417_v51 }
0x3609   : > { %v7423_v15 = vadd.f32 1e-05, %v7420_v50 }
0x360b   : > { %10250 = vrsqrt.f32 %v7423_v15 }
0x360d   : > { %v10247_v17 = vpop.eup %10246 }
0x360e   : > { %v7427_v14 = vmul.f32 %v10247_v17, %v7403_v16 }
0x3610   : > { %v7436_v21 = vmul.f32 %v8309_v40, %v7427_v14 }
0x3611   : > { %v10249_v20 = vpop.eup %10248 }
0x3612   : > { %v7428_v23 = vmul.f32 %v10249_v20, %v7404_v53  ;;  %v7445_v59 = vadd.f32 %v8310_v52, %v7436_v21  ;;  %v8314_v21 = vld [vmem:[%s12342_s26] ss:$0 sm:$0xff] }
0x3614   : > { %v7437_v28 = vmul.f32 %v8309_v40, %v7428_v23 }
0x3615   : > { %v10251_v22 = vpop.eup %10250 }
0x3616   : > { %v7446_v27 = vadd.f32 %v8310_v52, %v7437_v28  ;;  %v7429_v29 = vmul.f32 %v10251_v22, %v7405_v26  ;;  %v8315_v22 = vld [vmem:[%s12343_s23] ss:$0 sm:$0xff]  ;;  %s749_s23 = sand.u32 1, %s12345_s7  }
0x3617   : > { %s750_s19 = scalar_lea.vmem [#allocation5], %s749_s23  ;;  %s7929_s7 = scalar_lea.sflag [#allocation6], %s749_s23 }
0x3618   : > { %v9788_v33 = vpack.c.bf16 %v7446_v27, %v7445_v59  ;;  %v7438_v60 = vmul.f32 %v8309_v40, %v7429_v29  ;;  %s7941_s6 = sshll.u32 %s750_s19, 4  ;;  %s12170_s6 = int_to_ptr.vmem [resolvable:$true] %s7941_s6 }
0x3619   : > { %s10284_s11 = scalar_lea.vmem %s12170_s6, 16  ;;  %p10291_p10 = scmp.lt.s32.totalorder %s12170_s6, %s10289_s21 }
0x361a   : > { %9789 = vmatpush3.bf16.msra.mxu0 %v9788_v33  ;;  %v7447_v57 = vadd.f32 %v8310_v52, %v7438_v60  ;;  %p10285_p7 = scmp.ne.s32.totalorder %s12170_s6, %s10284_s11 }
0x361b   : > { %9545 = vmatprep.subr.mxu0 %v10354_v5 }
0x361c   : > { %p10286_p8 = pnand %p10285_p7, %p10547_p1 }
0x361e   : > { %9546 = vmatpush3.msra.mxu0 %v7447_v57  ;;  %p10287_p9 = pneg %p10286_p8 }
0x361f   : > { %9548 = vmatmul.mubr.msk.f32.vlgmr.msra.gmra.mrb[176].mxu0 %vm855_vm3, %v8311_v41  ;;  %9790 = vmatprep.subr.bf16.mxu0 %v10352_v3 }
0x3620   : > { %9792 = vmatpush3.bf16.msra.mxu0 %v9791_v44  ;;  %9558 = vmatprep.mubr.msk.f32.mxu0 %vm10353_vm0, %v10354_v5 }
0x3621   : > { %9793 = vmatprep.subr.bf16.mxu0 %v10352_v3 }
0x3624   : > { %9795 = vmatpush3.bf16.msra.mxu0 %v9794_v31 }
0x3625   : > { %9796 = vmatprep.subr.bf16.mxu0 %v10352_v3 }
0x36f2   : > { %v7522_v46 = vpop.f32.mrb[176].mxu0 }
0x36f3   : > { %v9549_v63 = vpop.f32.mrb[177].mxu0  ;;  %9559 = vmatmul.mubr.msk.f32.vlgmr.msra.gmra.mrb[178].mxu0 %vm957_vm6, %v7522_v46 }
0x36f4   : > { %9569 = vmatprep.mubr.msk.f32.mxu0 %vm10353_vm0, %v10354_v5  ;;  %9798 = vmatpush3.bf16.msra.mxu0 %v9797_v6 }
0x36f5   : > { %9799 = vmatprep.subr.bf16.mxu0 %v10352_v3 }
0x36f8   : > { %9801 = vmatpush3.bf16.msra.mxu0 %v9800_v10 }
0x36f9   : > { %9802 = vmatprep.subr.bf16.mxu0 %v10352_v3 }
0x37c6   : > { %v7600_v34 = vpop.f32.mrb[178].mxu0 }
0x37c7   : > { %v7601_v37 = vadd.f32 %v7600_v34, %v7530_v32  ;;  %v9560_v39 = vpop.f32.mrb[179].mxu0 }
0x37c8   : > { %v7761_v39 = vld [vmem:[%s12344_s25 + $0x8] sm:$0xff] }
0x37c9   : > { %v7607_v4 = vrot.slane %v7601_v37, %v931_v19  ;;  %v7760_v37 = vld [vmem:[%s12344_s25] sm:$0xff] }
0x37cb   : > { %v7609_v9 = vadd.f32 %v7607_v4, %v7446_v27  ;;  %v7608_v43 = vadd.f32 %v7607_v4, %v7445_v59  ;;  %v7610_v36 = vadd.f32 %v7607_v4, %v7447_v57 }
0x37cd   : > { %v7616_v45 = vsel %vm957_vm6, %v7609_v9, 0.0  ;;  %v7613_v42 = vsel %vm957_vm6, %v7608_v43, 0.0  ;;  %v7619_v13 = vsel %vm957_vm6, %v7610_v36, 0.0 }
0x37ce   : > { %7617 = vadd.xlane.f32.xlu1 %v7616_v45  ;;  %7614 = vadd.xlane.f32.xlu0 %v7613_v42  ;;  %v7762_v45 = vld [vmem:[%s12344_s25 + $0x10] sm:$0xff]  ;;  %v7763_v42 = vld [vmem:[%s12344_s25 + $0x18] sm:$0xff] }
0x37d2   : > { %7620 = vadd.xlane.f32.xlu0 %v7619_v13 }
0x385b   : > { %v7618_v47 = vpop.xlane.xlu1 %7617  ;;  %v7615_v48 = vpop.xlane.xlu0 %7614 }
0x385c   : > { %v7623_v16 = vmul.f32 0.03125, %v7618_v47  ;;  %v7622_v24 = vmul.f32 0.03125, %v7615_v48  ;;  %v8317_v48 = vld [vmem:[%s12347_s8] ss:$0 sm:$0xff]  ;;  %s12351_s8 = sld [smem:[#allocation38_spill]] }
0x385e   : > { %v7626_v49 = vsub.f32 %v7609_v9, %v7623_v16  ;;  %v7625_v30 = vsub.f32 %v7608_v43, %v7622_v24  ;;  %v9803_v9 = vpack.c.bf16 %v7761_v39, %v7760_v37  ;;  %v7686_v24 = vld [vmem:[%s12348_s28] sm:$0x1]  ;;  %s10290_s28 = scalar_lea.vmem %s10289_s21, 32 }
0x385f   : > { %v7621_v18 = vpop.xlane.xlu0 %7620  ;;  %p10292_p11 = scmp.lt.s32.totalorder %s10290_s28, %s10284_s11 }
0x3860   : > { %v7624_v19 = vmul.f32 0.03125, %v7621_v18  ;;  %v7629_v53 = vmul.f32 %v7626_v49, %v7626_v49  ;;  %v7628_v38 = vmul.f32 %v7625_v30, %v7625_v30 }
0x3861   : > { %p10293_p12 = por %p10292_p11, %p10291_p10 }
0x3862   : > { %v7627_v61 = vsub.f32 %v7610_v36, %v7624_v19  ;;  %v7634_v0 = vsel %vm957_vm6, %v7629_v53, 0.0  ;;  %v7631_v35 = vsel %vm957_vm6, %v7628_v38, 0.0  ;;  %v9806_v36 = vpack.c.bf16 %v7763_v42, %v7762_v45  ;;  %v7923_v53 = vld [vmem:[%s757_s18] sm:$0x1]  ;;  %s12168_s26 = scalar_lea.hbm %s12351_s8, %s8321_s20 }
0x3863   : > { %7635 = vadd.xlane.f32.xlu0 %v7634_v0  ;;  %7632 = vadd.xlane.f32.xlu1 %v7631_v35  ;;  %vm7924_vm10 = vcmp.gt.f32.partialorder %v7923_v53, 0.0  ;;  %p10294_p13 = pnand %p10293_p12, %p10287_p9 }
0x3864   : > { %v7630_v26 = vmul.f32 %v7627_v61, %v7627_v61 }
0x3866   : > { %v7637_v55 = vsel %vm957_vm6, %v7630_v26, 0.0 }
0x3867   : > { %7638 = vadd.xlane.f32.xlu1 %v7637_v55 }
0x38f0   : > { %v7633_v11 = vpop.xlane.xlu1 %7632  ;;  %v7636_v12 = vpop.xlane.xlu0 %7635 }
0x38f1   : > { %v7640_v51 = vmul.f32 0.03125, %v7633_v11  ;;  %v7641_v50 = vmul.f32 0.03125, %v7636_v12 }
0x38f3   : > { %v7643_v15 = vadd.f32 1e-05, %v7640_v51  ;;  %v7644_v17 = vadd.f32 1e-05, %v7641_v50 }
0x38f4   : > { %v7639_v14 = vpop.xlane.xlu1 %7638 }
0x38f5   : > { %10252 = vrsqrt.f32 %v7643_v15  ;;  %v7642_v40 = vmul.f32 0.03125, %v7639_v14 }
0x38f6   : > { %10254 = vrsqrt.f32 %v7644_v17 }
0x38f7   : > { %v7645_v20 = vadd.f32 1e-05, %v7642_v40 }
0x38f9   : > { %10256 = vrsqrt.f32 %v7645_v20 }
0x38ff   : > { %v10253_v23 = vpop.eup %10252 }
0x3900   : > { %v10255_v52 = vpop.eup %10254  ;;  %v7649_v28 = vmul.f32 %v10253_v23, %v7625_v30 }
0x3901   : > { %v7650_v25 = vmul.f32 %v10255_v52, %v7626_v49 }
0x3902   : > { %v7658_v59 = vmul.f32 %v8314_v21, %v7649_v28 }
0x3903   : > { %v10257_v27 = vpop.eup %10256  ;;  %v7659_v29 = vmul.f32 %v8314_v21, %v7650_v25 }
0x3904   : > { %v7667_v33 = vadd.f32 %v8315_v22, %v7658_v59  ;;  %v7651_v60 = vmul.f32 %v10257_v27, %v7627_v61 }
0x3905   : > { %v7668_v54 = vadd.f32 %v8315_v22, %v7659_v29 }
0x3906   : > { %v7660_v58 = vmul.f32 %v8314_v21, %v7651_v60 }
0x3907   : > { %v7670_v57 = vadd.f32 %v7668_v54, %v7667_v33 }
0x3908   : > { %v7669_v41 = vadd.f32 %v8315_v22, %v7660_v58 }
0x390a   : > { %v7671_v44 = vadd.f32 %v7670_v57, %v7669_v41 }
0x390c   : > { %v7672_v2 = vmul.f32 0.33333334, %v7671_v44 }
0x390e   : > { %v7673_v8 = vsel %vm957_vm6, %v7672_v2, 0.0 }
0x390f   : > { %v7674_v31 = vrot.slane %v7673_v8, 4 }
0x3911   : > { %v7675_v46 = vadd.f32 %v7674_v31, %v7673_v8 }
0x3913   : > { %v7676_v63 = vrot.slane %v7675_v46, 2 }
0x3915   : > { %v7677_v32 = vadd.f32 %v7676_v63, %v7675_v46 }
0x3917   : > { %v7678_v34 = vrot.slane %v7677_v32, 1 }
0x3919   : > { %v7679_v4 = vadd.f32 %v7678_v34, %v7677_v32 }
0x391b   : > { %v7681_v43 = vmul.f32 0.125, %v7679_v4 }
0x391d   : > { %9570 = vmatmul.mubr.msk.f32.vlgmr.msra.gmra.mrb[180].mxu0 %vm957_vm6, %v7681_v43 }
0x391e   : > { %9804 = vmatpush3.bf16.msra.mxu0 %v9803_v9  ;;  %9580 = vmatprep.mubr.msk.f32.mxu0 %vm10353_vm0, %v10354_v5 }
0x391f   : > { %9805 = vmatprep.subr.bf16.mxu0 %v10352_v3 }
0x3922   : > { %9807 = vmatpush3.bf16.msra.mxu0 %v9806_v36 }
0x3925   : > { %9581 = vmatmul.mubr.msk.f32.vlgmr.msra.gmra.mrb[182].mxu0 %vm957_vm6, %v7672_v2 }
0x39f0   : > { %v7756_v13 = vpop.f32.mrb[180].mxu0 }
0x39f1   : > { %v9571_v47 = vpop.f32.mrb[181].mxu0  ;;  %v7757_v3 = vadd.f32 %v7756_v13, %v7686_v24 }
0x39f8   : > { %v7840_v16 = vpop.f32.mrb[182].mxu0 }
0x39f9   : > { %v7841_v5 = vadd.f32 %v8317_v48, %v7840_v16  ;;  %v9582_v49 = vpop.f32.mrb[183].mxu0 }
0x39fb   : > { %9584 = vmatpush3.xpose.msk.msra.mxu1 %vm957_vm6, %v7841_v5 }
0x39fe   : > { %9586 = vmatmul.mubr.msk.f32.vlgmr.msra.gmra.mrb[164].mxu1 %vm957_vm6, %v7757_v3 }
0x3ad1   : > { %v7916_v30 = vpop.f32.mrb[164].mxu1 }
0x3ad2   : > { %v7920_v18 = vmul.f32 0.17677669, %v7916_v30  ;;  %v9587_v19 = vpop.f32.mrb[165].mxu1 }
0x3ad4   : > { %10258 = vtanh.f32 %v7920_v18 }
0x3ade   : > { %v10259_v38 = vpop.eup %10258 }
0x3adf   : > { %v7922_v61 = vmul.f32 10.0, %v10259_v38 }
0x3ae1   : > { %v7925_v0 = vsel %vm7924_vm10, -1e+09, %v7922_v61 }
0x3ae2   : > { %7927 = vst.msk [vmem:[%s750_s19] sm:$0x1] %vm7926_vm11, %v7925_v0 }
0x3ae3   : > { %10297 = shalt.err (!%p10294_p13)
}
0x3ae4   : > { %s10298_s23 = scalar_lea.hbm %s12168_s26, 16  ;;  %s10302_s27 = scalar_lea.hbm %s12351_s8, 32 }
0x3ae5   : > { %p10299_p0 = scmp.ne.s32.totalorder %s12168_s26, %s10298_s23  ;;  %p10303_p5 = scmp.lt.u32.totalorder %s12168_s26, %s12351_s8 }
0x3ae6   : > { %p10304_p6 = scmp.lt.u32.totalorder %s10302_s27, %s10298_s23  ;;  %p10306_p8 = scmp.lt.u32.totalorder %s10298_s23, %s12168_s26 }
0x3ae7   : > { %p10300_p3 = pnand %p10299_p0, %p10547_p1 }
0x3ae8   : > { %p10305_p7 = por %p10304_p6, %p10303_p5 }
0x3ae9   : > { %p10301_p4 = pneg %p10300_p3 }
0x3aea   : > { %p10307_p9 = por %p10306_p8, %p10305_p7 }
0x3aec   : > { %p10308_p10 = pnand %p10307_p9, %p10301_p4 }
0x3aee   : > { %10311 = shalt.err (!%p10308_p10)
}
0x3aef   : > { %9808 = dma.vmem_to_hbm [thread:$0]  (%p10547_p1), %s12170_s6, 16, %s12168_s26, %s7929_s7  }
0x3af0 PF: > { %s12352_s19 = sld [smem:[#allocation12_spill]]  ;;  %s12353_s1 = sld [smem:[#allocation9_spill]] }
0x3af6   : > { %p9814_p11 = scmp.ge.s32.totalorder %s12352_s19, 2  ;;  %s7953_s11 = sand.u32 1, %s12353_s1  }
0x3af7   : > { %s7954_s2 = scalar_lea.sflag [#allocation6], %s7953_s11 }
0x3af8   : > { %p9811_p12 = pnand %p9814_p11, %p10551_p2 }
0x3afa   : > { %10331 = dma.done.wait (!%p9811_p12), %s7954_s2, 16  }
0x3afb   : > { %10333 = vsyncadd (!%p9811_p12), %s7954_s2, 4294967280  ;;  %s12355_s21 = sld [smem:[#allocation14_spill]]  ;;  %s12356_s1 = sld [smem:[#allocation10_spill]] }
0x3afc   : > { %s12357_s3 = sld [smem:[#allocation11_spill]]  ;;  %s12358_s6 = sld [smem:[#allocation15_spill]] }
0x3b01   : > { %p46_p13 = scmp.ge.s32.totalorder %s12355_s21, 4  }
0x3b03   :  { %48 = sbr.rel (!%p46_p13) target bundleno = 44 (0x2c), region = 180 }
0x3b0a   :  { %7958 = vsyncpa [#allocation6], 1 }
0x3b0b   :  { %7960 = vsyncpa [#allocation6 + $0x1], 1 }

</bundles_post_ra>
